<compile_context>
chip_gen: v6e
topology: v6e:2x2x1
jax: 0.10.0
libtpu: 0.0.40
codegen_flags: <defaults>
</compile_context>

<pallas_src>
import math

import jax
import jax.numpy as jnp
from jax.experimental import pallas as pl
from jax.experimental.pallas import tpu as pltpu

B, S, H, F, NH, T, VOCAB = 2, 8, 32, 64, 2, 3, 50
HD = H // NH
BS = B * S
LANE = 128
LN_EPS = 1e-12
NEG = -1e9


def _layernorm(x, gamma, beta):
    mu = jnp.mean(x, axis=-1, keepdims=True)
    var = jnp.mean((x - mu) ** 2, axis=-1, keepdims=True)
    return (x - mu) * jax.lax.rsqrt(var + LN_EPS) * gamma + beta


def _gelu(x):
    # TODO(synk): HF BERT uses exact erf GELU; tanh approximation used here.
    c = 0.7978845608028654  # sqrt(2/pi)
    return 0.5 * x * (1.0 + jnp.tanh(c * (x + 0.044715 * x * x * x)))


# -----------------------------------------------------------------------------
# Fused kernel: 1 BERT encoder layer + classifier head + CRF -log-likelihood.
# grid=(1,), everything resident in VMEM/vregs.
# -----------------------------------------------------------------------------
def bert_crf_kernel(lens_ref,                                     # scalar prefetch (SMEM)
                    x_ref, tags_ref,
                    wq_ref, wk_ref, wv_ref, bq_ref, bk_ref, bv_ref,
                    wo_ref, bo_ref, ln1_ref,
                    w1_ref, b1_ref, w2_ref, b2_ref, ln2_ref,
                    wc_ref, bc_ref, crf_ref,
                    loss_ref, em_ref):
    f32 = jnp.float32
    bf16 = jnp.bfloat16
    x = x_ref[...]                                                # (BS, H) f32

    # ---- token masks from sequence lengths + iota (no mask DMA) -------------
    row = jax.lax.broadcasted_iota(jnp.int32, (BS, 1), 0)
    false_col = row < 0
    valid, first, last = false_col, false_col, false_col
    for b in range(B):                                            # static, B=2
        in_b = (row >= b * S) & (row < (b + 1) * S)
        valid = valid | (in_b & (row < b * S + lens_ref[b]))
        first = first | (row == b * S)
        last = last | (row == b * S + lens_ref[b] - 1)
    maskf = valid.astype(f32)                                     # (BS, 1)
    firstf = first.astype(f32)
    lastf = last.astype(f32)

    # block-diagonal attention bias over the flattened (BS, BS) score matrix
    r_ids = jax.lax.broadcasted_iota(jnp.int32, (BS, BS), 0)
    c_ids = jax.lax.broadcasted_iota(jnp.int32, (BS, BS), 1)
    attend = r_ids < 0
    for b in range(B):
        r_in = (r_ids >= b * S) & (r_ids < (b + 1) * S)
        c_in = (c_ids >= b * S) & (c_ids < b * S + lens_ref[b])
        attend = attend | (r_in & c_in)
    bias = jnp.where(attend, 0.0, NEG)                            # (BS, BS)

    # ---- self-attention: static head loop, head weights pre-split -----------
    scale = 1.0 / math.sqrt(HD)
    x16 = x.astype(bf16)
    attn = jnp.zeros((BS, H), f32)
    for h in range(NH):                                           # static, NH=2
        qh = jnp.dot(x16, wq_ref[h], preferred_element_type=f32) + bq_ref[h]
        kh = jnp.dot(x16, wk_ref[h], preferred_element_type=f32) + bk_ref[h]
        vh = jnp.dot(x16, wv_ref[h], preferred_element_type=f32) + bv_ref[h]
        s = jax.lax.dot_general(qh.astype(bf16), kh.astype(bf16),
                                (((1,), (1,)), ((), ())),
                                preferred_element_type=f32) * scale + bias
        s = s - jnp.max(s, axis=-1, keepdims=True)
        prob = jnp.exp(s)
        prob = prob / jnp.sum(prob, axis=-1, keepdims=True)
        ctx = jnp.dot(prob.astype(bf16), vh.astype(bf16), preferred_element_type=f32)
        attn = attn + jnp.dot(ctx.astype(bf16), wo_ref[h], preferred_element_type=f32)
    attn = attn + bo_ref[...]

    h1 = _layernorm(x + attn, ln1_ref[0:1, :], ln1_ref[1:2, :])
    ff = _gelu(jnp.dot(h1.astype(bf16), w1_ref[...], preferred_element_type=f32) + b1_ref[...])
    ff = jnp.dot(ff.astype(bf16), w2_ref[...], preferred_element_type=f32) + b2_ref[...]
    h2 = _layernorm(h1 + ff, ln2_ref[0:1, :], ln2_ref[1:2, :])

    # lane-dense (BS, 128) logits; columns >= T are exactly zero (zero-padded wc/bc)
    logits = jnp.dot(h2.astype(bf16), wc_ref[...], preferred_element_type=f32) + bc_ref[...]
    em_ref[...] = logits

    # ------------------- CRF log-likelihood (torchcrf, reduction='sum') ------
    crf = crf_ref[...]                                            # (8, 128) packed params
    trans = crf[0:T, 0:T]                                         # (T, T)
    start_full = crf[3:4, :]                                      # (1, 128), zero beyond T
    end_full = crf[4:5, :]
    end_row = crf[4:5, 0:T]                                       # (1, T)
    tg = tags_ref[...]                                            # (BS, 128) one-hot gold tags

    # numerator: emission / start / end terms (flat over rows, lane reductions)
    em_sel = jnp.sum(logits * tg, axis=-1, keepdims=True)         # emission[n, tag_n]
    st_sel = jnp.sum(start_full * tg, axis=-1, keepdims=True)     # start[tag_n]
    en_sel = jnp.sum(end_full * tg, axis=-1, keepdims=True)       # end[tag_n]
    score_col = maskf * em_sel + firstf * st_sel + lastf * en_sel  # (BS, 1)

    # per-batch lengths as a (B,1) vector
    bcol = jax.lax.broadcasted_iota(jnp.int32, (B, 1), 0)
    lenB = jnp.zeros((B, 1), jnp.int32)
    for b in range(B):
        lenB = jnp.where(bcol == b, lens_ref[b], lenB)

    # forward recursion (log partition) + gold transition term, alpha kept in vregs
    alpha = crf[3:4, 0:T] + em_ref[pl.ds(0, B, stride=S), :][:, 0:T]     # (B, T)
    prev_tg = tags_ref[pl.ds(0, B, stride=S), :][:, 0:T]                 # (B, T)
    num_trans = jnp.zeros((B, 1), f32)
    for t in range(1, S):                                         # static unroll over time
        em_t = em_ref[pl.ds(t, B, stride=S), :][:, 0:T]           # (B, T)
        cur_tg = tags_ref[pl.ds(t, B, stride=S), :][:, 0:T]       # (B, T)
        live = lenB > t                                           # (B, 1) bool

        # gold transition score trans[tag_{t-1}, tag_t]  (pure VPU, T=3 unroll)
        ptv = jnp.zeros((B, T), f32)
        for i in range(T):
            ptv = ptv + prev_tg[:, i:i + 1] * trans[i:i + 1, :]
        pair = jnp.sum(ptv * cur_tg, axis=-1, keepdims=True)
        num_trans = num_trans + live.astype(f32) * pair

        # logsumexp over previous tag (T=3 static unroll, all (B,T) register ops)
        terms = [alpha[:, i:i + 1] + trans[i:i + 1, :] for i in range(T)]
        m = terms[0]
        for i in range(1, T):
            m = jnp.maximum(m, terms[i])
        ssum = jnp.exp(terms[0] - m)
        for i in range(1, T):
            ssum = ssum + jnp.exp(terms[i] - m)
        alpha = jnp.where(live, m + jnp.log(ssum) + em_t, alpha)
        prev_tg = cur_tg

    af = alpha + end_row                                          # (B, T)
    mz = jnp.max(af, axis=-1, keepdims=True)
    logz = mz + jnp.log(jnp.sum(jnp.exp(af - mz), axis=-1, keepdims=True))   # (B, 1)

    num = (jnp.sum(score_col, axis=0, keepdims=True)
           + jnp.sum(num_trans, axis=0, keepdims=True))           # (1, 1)
    den = jnp.sum(logz, axis=0, keepdims=True)                    # (1, 1)
    loss_ref[...] = den - num                                     # -llh, reduction='sum'


# -----------------------------------------------------------------------------
# Wrapper: weight plumbing + single pallas_call.
# -----------------------------------------------------------------------------
def bert_crf_forward(x_emb, lengths, labels, p):
    f32, bf16 = jnp.float32, jnp.bfloat16

    x_flat = x_emb.reshape(BS, H).astype(f32)

    tags_oh = jax.nn.one_hot(labels.reshape(BS), T, dtype=f32)              # (BS, T)
    tags_pad = jnp.zeros((BS, LANE), f32).at[:, :T].set(tags_oh)

    # pre-split per-head attention weights: heads live on the leading dim
    wq = p['wqkv'][:, 0:H].reshape(H, NH, HD).transpose(1, 0, 2).astype(bf16)
    wk = p['wqkv'][:, H:2 * H].reshape(H, NH, HD).transpose(1, 0, 2).astype(bf16)
    wv = p['wqkv'][:, 2 * H:3 * H].reshape(H, NH, HD).transpose(1, 0, 2).astype(bf16)
    bq = p['bqkv'][:, 0:H].reshape(NH, 1, HD).astype(f32)
    bk = p['bqkv'][:, H:2 * H].reshape(NH, 1, HD).astype(f32)
    bv = p['bqkv'][:, 2 * H:3 * H].reshape(NH, 1, HD).astype(f32)
    wo_r = p['wo'].reshape(NH, HD, H).astype(bf16)

    w1b = p['w1'].astype(bf16)
    w2b = p['w2'].astype(bf16)

    # lane-dense classifier head + packed CRF parameters
    wc_pad = jnp.zeros((H, LANE), f32).at[:, :T].set(p['wc']).astype(bf16)
    bc_pad = jnp.zeros((1, LANE), f32).at[:, :T].set(p['bc'])
    crf_pack = (jnp.zeros((8, LANE), f32)
                .at[0:T, 0:T].set(p['trans'])
                .at[3:4, 0:T].set(p['start'])
                .at[4:5, 0:T].set(p['end']))

    in_arrays = [x_flat, tags_pad,
                 wq, wk, wv, bq, bk, bv,
                 wo_r, p['bo'], p['ln1'],
                 w1b, p['b1'], w2b, p['b2'], p['ln2'],
                 wc_pad, bc_pad, crf_pack]

    def _const(a):
        nd = a.ndim
        return pl.BlockSpec(a.shape, lambda i, lens, nd=nd: (0,) * nd)

    loss2d, em_pad = pl.pallas_call(
        bert_crf_kernel,
        out_shape=(jax.ShapeDtypeStruct((1, 1), f32),
                   jax.ShapeDtypeStruct((BS, LANE), f32)),
        grid_spec=pltpu.PrefetchScalarGridSpec(
            num_scalar_prefetch=1,
            grid=(1,),
            in_specs=[_const(a) for a in in_arrays],
            out_specs=[pl.BlockSpec((1, 1), lambda i, lens: (0, 0)),
                       pl.BlockSpec((BS, LANE), lambda i, lens: (0, 0))]),
        compiler_params=pltpu.CompilerParams(dimension_semantics=("arbitrary",)),
    )(lengths.astype(jnp.int32), *in_arrays)

    neg_llh = loss2d[0, 0]
    sequence_output = em_pad[:, :T].reshape(B, S, T)
    return neg_llh, sequence_output


if __name__ == "__main__":
    key = jax.random.PRNGKey(0)
    ks = jax.random.split(key, 16)

    def nrm(k, shape, s=0.02):
        return s * jax.random.normal(k, shape, jnp.float32)

    params = {
        'word_emb': nrm(ks[0], (VOCAB, H)),
        'pos_emb': nrm(ks[1], (S, H)),
        'type_emb': nrm(ks[2], (2, H)),
        'emb_gamma': jnp.ones((H,), jnp.float32),
        'emb_beta': jnp.zeros((H,), jnp.float32),
        'wqkv': nrm(ks[3], (H, 3 * H)),
        'bqkv': jnp.zeros((1, 3 * H), jnp.float32),
        'wo': nrm(ks[4], (H, H)),
        'bo': jnp.zeros((1, H), jnp.float32),
        'ln1': jnp.concatenate([jnp.ones((1, H)), jnp.zeros((1, H))], 0).astype(jnp.float32),
        'w1': nrm(ks[5], (H, F)),
        'b1': jnp.zeros((1, F), jnp.float32),
        'w2': nrm(ks[6], (F, H)),
        'b2': jnp.zeros((1, H), jnp.float32),
        'ln2': jnp.concatenate([jnp.ones((1, H)), jnp.zeros((1, H))], 0).astype(jnp.float32),
        'wc': nrm(ks[7], (H, T)),
        'bc': jnp.zeros((1, T), jnp.float32),
        'trans': nrm(ks[8], (T, T), 0.1),
        'start': nrm(ks[9], (1, T), 0.1),
        'end': nrm(ks[10], (1, T), 0.1),
    }

    input_ids = jax.random.randint(ks[11], (B, S), 0, VOCAB)
    token_type_ids = jnp.zeros((B, S), jnp.int32)
    lengths = jnp.array([S, S - 2], jnp.int32)      # variable sequence lengths (mask[:,0]=1)
    labels = jax.random.randint(ks[12], (B, S), 0, T)

    # Embedding lookup + embedding LayerNorm (glue, plain JAX).
    emb = (params['word_emb'][input_ids]
           + params['pos_emb'][None, :, :]
           + params['type_emb'][token_type_ids])
    emb = _layernorm(emb, params['emb_gamma'], params['emb_beta'])
    # TODO(synk): nn.Dropout(0.1) is identity at inference; training-mode RNG dropout not modeled.

    neg_llh, sequence_output = bert_crf_forward(emb, lengths, labels, params)

    # Matches BertCRF.forward(..., labels=...) -> (-1 * crf_log_likelihood, sequence_output)
    outputs = (neg_llh, sequence_output)
    jax.block_until_ready(outputs)
    assert bool(jnp.isfinite(neg_llh)) and bool(jnp.all(jnp.isfinite(sequence_output)))
    print("KERNEL_OK")
</pallas_src>

<mosaic_0001>
module attributes {stable_mosaic.version = 11 : i64} {
  func.func @bert_crf_kernel(%arg0: i32, %arg1: memref<2xi32, #tpu.memory_space<smem>>, %arg2: memref<16x32xf32, #tpu.memory_space<vmem>>, %arg3: memref<16x128xf32, #tpu.memory_space<vmem>>, %arg4: memref<2x32x16xbf16, #tpu.memory_space<vmem>>, %arg5: memref<2x32x16xbf16, #tpu.memory_space<vmem>>, %arg6: memref<2x32x16xbf16, #tpu.memory_space<vmem>>, %arg7: memref<2x1x16xf32, #tpu.memory_space<vmem>>, %arg8: memref<2x1x16xf32, #tpu.memory_space<vmem>>, %arg9: memref<2x1x16xf32, #tpu.memory_space<vmem>>, %arg10: memref<2x16x32xbf16, #tpu.memory_space<vmem>>, %arg11: memref<1x32xf32, #tpu.memory_space<vmem>>, %arg12: memref<2x32xf32, #tpu.memory_space<vmem>>, %arg13: memref<32x64xbf16, #tpu.memory_space<vmem>>, %arg14: memref<1x64xf32, #tpu.memory_space<vmem>>, %arg15: memref<64x32xbf16, #tpu.memory_space<vmem>>, %arg16: memref<1x32xf32, #tpu.memory_space<vmem>>, %arg17: memref<2x32xf32, #tpu.memory_space<vmem>>, %arg18: memref<32x128xbf16, #tpu.memory_space<vmem>>, %arg19: memref<1x128xf32, #tpu.memory_space<vmem>>, %arg20: memref<8x128xf32, #tpu.memory_space<vmem>>, %arg21: memref<1x1xf32, #tpu.memory_space<vmem>>, %arg22: memref<16x128xf32, #tpu.memory_space<vmem>>) attributes {dimension_semantics = [#tpu.dimension_semantics<arbitrary>], iteration_bounds = array<i64: 1>, scalar_prefetch = 1 : i64, scratch_operands = 0 : i64, tpu.core_type = #tpu.core_type<tc>, window_params = [{pipeline_mode = #tpu.pipeline_mode<synchronous>, transform_indices = @transform_0, window_bounds = array<i64: 16, 32>}, {pipeline_mode = #tpu.pipeline_mode<synchronous>, transform_indices = @transform_1, window_bounds = array<i64: 16, 128>}, {pipeline_mode = #tpu.pipeline_mode<synchronous>, transform_indices = @transform_2, window_bounds = array<i64: 2, 32, 16>}, {pipeline_mode = #tpu.pipeline_mode<synchronous>, transform_indices = @transform_3, window_bounds = array<i64: 2, 32, 16>}, {pipeline_mode = #tpu.pipeline_mode<synchronous>, transform_indices = @transform_4, window_bounds = array<i64: 2, 32, 16>}, {pipeline_mode = #tpu.pipeline_mode<synchronous>, transform_indices = @transform_5, window_bounds = array<i64: 2, 1, 16>}, {pipeline_mode = #tpu.pipeline_mode<synchronous>, transform_indices = @transform_6, window_bounds = array<i64: 2, 1, 16>}, {pipeline_mode = #tpu.pipeline_mode<synchronous>, transform_indices = @transform_7, window_bounds = array<i64: 2, 1, 16>}, {pipeline_mode = #tpu.pipeline_mode<synchronous>, transform_indices = @transform_8, window_bounds = array<i64: 2, 16, 32>}, {pipeline_mode = #tpu.pipeline_mode<synchronous>, transform_indices = @transform_9, window_bounds = array<i64: 1, 32>}, {pipeline_mode = #tpu.pipeline_mode<synchronous>, transform_indices = @transform_10, window_bounds = array<i64: 2, 32>}, {pipeline_mode = #tpu.pipeline_mode<synchronous>, transform_indices = @transform_11, window_bounds = array<i64: 32, 64>}, {pipeline_mode = #tpu.pipeline_mode<synchronous>, transform_indices = @transform_12, window_bounds = array<i64: 1, 64>}, {pipeline_mode = #tpu.pipeline_mode<synchronous>, transform_indices = @transform_13, window_bounds = array<i64: 64, 32>}, {pipeline_mode = #tpu.pipeline_mode<synchronous>, transform_indices = @transform_14, window_bounds = array<i64: 1, 32>}, {pipeline_mode = #tpu.pipeline_mode<synchronous>, transform_indices = @transform_15, window_bounds = array<i64: 2, 32>}, {pipeline_mode = #tpu.pipeline_mode<synchronous>, transform_indices = @transform_16, window_bounds = array<i64: 32, 128>}, {pipeline_mode = #tpu.pipeline_mode<synchronous>, transform_indices = @transform_17, window_bounds = array<i64: 1, 128>}, {pipeline_mode = #tpu.pipeline_mode<synchronous>, transform_indices = @transform_18, window_bounds = array<i64: 8, 128>}, {pipeline_mode = #tpu.pipeline_mode<synchronous>, transform_indices = @transform_19, window_bounds = array<i64: 1, 1>}, {pipeline_mode = #tpu.pipeline_mode<synchronous>, transform_indices = @transform_20, window_bounds = array<i64: 16, 128>}]} {
    %c0 = arith.constant 0 : index
    %c0_0 = arith.constant 0 : index
    %0 = vector.load %arg2[%c0, %c0_0] : memref<16x32xf32, #tpu.memory_space<vmem>>, vector<16x32xf32>
    %1 = tpu.iota {dimensions = array<i32: 0>} : vector<16x1xi32>
    %c0_i32 = arith.constant 0 : i32
    %2 = vector.broadcast %c0_i32 : i32 to vector<16x1xi32>
    %3 = arith.cmpi slt, %1, %2 : vector<16x1xi32>
    %c0_i32_1 = arith.constant 0 : i32
    %4 = vector.broadcast %c0_i32_1 : i32 to vector<16x1xi32>
    %5 = arith.cmpi sge, %1, %4 : vector<16x1xi32>
    %c8_i32 = arith.constant 8 : i32
    %6 = vector.broadcast %c8_i32 : i32 to vector<16x1xi32>
    %7 = arith.cmpi slt, %1, %6 : vector<16x1xi32>
    %8 = arith.andi %5, %7 : vector<16x1xi1>
    %c0_2 = arith.constant 0 : index
    %9 = memref.load %arg1[%c0_2] : memref<2xi32, #tpu.memory_space<smem>>
    %c0_i32_3 = arith.constant 0 : i32
    %10 = arith.addi %c0_i32_3, %9 : i32
    %11 = vector.broadcast %10 : i32 to vector<16x1xi32>
    %12 = arith.cmpi slt, %1, %11 : vector<16x1xi32>
    %13 = arith.andi %8, %12 : vector<16x1xi1>
    %14 = arith.ori %3, %13 : vector<16x1xi1>
    %c0_i32_4 = arith.constant 0 : i32
    %15 = vector.broadcast %c0_i32_4 : i32 to vector<16x1xi32>
    %16 = arith.cmpi eq, %1, %15 : vector<16x1xi32>
    %17 = arith.ori %3, %16 : vector<16x1xi1>
    %c0_5 = arith.constant 0 : index
    %18 = memref.load %arg1[%c0_5] : memref<2xi32, #tpu.memory_space<smem>>
    %c0_i32_6 = arith.constant 0 : i32
    %19 = arith.addi %c0_i32_6, %18 : i32
    %c1_i32 = arith.constant 1 : i32
    %20 = arith.subi %19, %c1_i32 : i32
    %21 = vector.broadcast %20 : i32 to vector<16x1xi32>
    %22 = arith.cmpi eq, %1, %21 : vector<16x1xi32>
    %23 = arith.ori %3, %22 : vector<16x1xi1>
    %c8_i32_7 = arith.constant 8 : i32
    %24 = vector.broadcast %c8_i32_7 : i32 to vector<16x1xi32>
    %25 = arith.cmpi sge, %1, %24 : vector<16x1xi32>
    %c16_i32 = arith.constant 16 : i32
    %26 = vector.broadcast %c16_i32 : i32 to vector<16x1xi32>
    %27 = arith.cmpi slt, %1, %26 : vector<16x1xi32>
    %28 = arith.andi %25, %27 : vector<16x1xi1>
    %c1 = arith.constant 1 : index
    %29 = memref.load %arg1[%c1] : memref<2xi32, #tpu.memory_space<smem>>
    %c8_i32_8 = arith.constant 8 : i32
    %30 = arith.addi %c8_i32_8, %29 : i32
    %31 = vector.broadcast %30 : i32 to vector<16x1xi32>
    %32 = arith.cmpi slt, %1, %31 : vector<16x1xi32>
    %33 = arith.andi %28, %32 : vector<16x1xi1>
    %34 = arith.ori %14, %33 : vector<16x1xi1>
    %c8_i32_9 = arith.constant 8 : i32
    %35 = vector.broadcast %c8_i32_9 : i32 to vector<16x1xi32>
    %36 = arith.cmpi eq, %1, %35 : vector<16x1xi32>
    %37 = arith.ori %17, %36 : vector<16x1xi1>
    %c1_10 = arith.constant 1 : index
    %38 = memref.load %arg1[%c1_10] : memref<2xi32, #tpu.memory_space<smem>>
    %c8_i32_11 = arith.constant 8 : i32
    %39 = arith.addi %c8_i32_11, %38 : i32
    %c1_i32_12 = arith.constant 1 : i32
    %40 = arith.subi %39, %c1_i32_12 : i32
    %41 = vector.broadcast %40 : i32 to vector<16x1xi32>
    %42 = arith.cmpi eq, %1, %41 : vector<16x1xi32>
    %43 = arith.ori %23, %42 : vector<16x1xi1>
    %44 = arith.extui %34 : vector<16x1xi1> to vector<16x1xi32>
    %45 = arith.sitofp %44 : vector<16x1xi32> to vector<16x1xf32>
    %46 = arith.extui %37 : vector<16x1xi1> to vector<16x1xi32>
    %47 = arith.sitofp %46 : vector<16x1xi32> to vector<16x1xf32>
    %48 = arith.extui %43 : vector<16x1xi1> to vector<16x1xi32>
    %49 = arith.sitofp %48 : vector<16x1xi32> to vector<16x1xf32>
    %50 = tpu.iota {dimensions = array<i32: 0>} : vector<16x16xi32>
    %51 = tpu.iota {dimensions = array<i32: 1>} : vector<16x16xi32>
    %c0_i32_13 = arith.constant 0 : i32
    %52 = vector.broadcast %c0_i32_13 : i32 to vector<16x16xi32>
    %53 = arith.cmpi slt, %50, %52 : vector<16x16xi32>
    %c0_i32_14 = arith.constant 0 : i32
    %54 = vector.broadcast %c0_i32_14 : i32 to vector<16x16xi32>
    %55 = arith.cmpi sge, %50, %54 : vector<16x16xi32>
    %c8_i32_15 = arith.constant 8 : i32
    %56 = vector.broadcast %c8_i32_15 : i32 to vector<16x16xi32>
    %57 = arith.cmpi slt, %50, %56 : vector<16x16xi32>
    %58 = arith.andi %55, %57 : vector<16x16xi1>
    %c0_i32_16 = arith.constant 0 : i32
    %59 = vector.broadcast %c0_i32_16 : i32 to vector<16x16xi32>
    %60 = arith.cmpi sge, %51, %59 : vector<16x16xi32>
    %c0_17 = arith.constant 0 : index
    %61 = memref.load %arg1[%c0_17] : memref<2xi32, #tpu.memory_space<smem>>
    %c0_i32_18 = arith.constant 0 : i32
    %62 = arith.addi %c0_i32_18, %61 : i32
    %63 = vector.broadcast %62 : i32 to vector<16x16xi32>
    %64 = arith.cmpi slt, %51, %63 : vector<16x16xi32>
    %65 = arith.andi %60, %64 : vector<16x16xi1>
    %66 = arith.andi %58, %65 : vector<16x16xi1>
    %67 = arith.ori %53, %66 : vector<16x16xi1>
    %c8_i32_19 = arith.constant 8 : i32
    %68 = vector.broadcast %c8_i32_19 : i32 to vector<16x16xi32>
    %69 = arith.cmpi sge, %50, %68 : vector<16x16xi32>
    %c16_i32_20 = arith.constant 16 : i32
    %70 = vector.broadcast %c16_i32_20 : i32 to vector<16x16xi32>
    %71 = arith.cmpi slt, %50, %70 : vector<16x16xi32>
    %72 = arith.andi %69, %71 : vector<16x16xi1>
    %c8_i32_21 = arith.constant 8 : i32
    %73 = vector.broadcast %c8_i32_21 : i32 to vector<16x16xi32>
    %74 = arith.cmpi sge, %51, %73 : vector<16x16xi32>
    %c1_22 = arith.constant 1 : index
    %75 = memref.load %arg1[%c1_22] : memref<2xi32, #tpu.memory_space<smem>>
    %c8_i32_23 = arith.constant 8 : i32
    %76 = arith.addi %c8_i32_23, %75 : i32
    %77 = vector.broadcast %76 : i32 to vector<16x16xi32>
    %78 = arith.cmpi slt, %51, %77 : vector<16x16xi32>
    %79 = arith.andi %74, %78 : vector<16x16xi1>
    %80 = arith.andi %72, %79 : vector<16x16xi1>
    %81 = arith.ori %67, %80 : vector<16x16xi1>
    %cst = arith.constant 0.000000e+00 : f32
    %cst_24 = arith.constant -1.000000e+09 : f32
    %82 = vector.broadcast %cst : f32 to vector<16x16xf32>
    %83 = vector.broadcast %cst_24 : f32 to vector<16x16xf32>
    %84 = arith.select %81, %82, %83 : vector<16x16xi1>, vector<16x16xf32>
    %85 = arith.truncf %0 : vector<16x32xf32> to vector<16x32xbf16>
    %cst_25 = arith.constant 0.000000e+00 : f32
    %86 = vector.broadcast %cst_25 : f32 to vector<16x32xf32>
    %c0_26 = arith.constant 0 : index
    %c0_27 = arith.constant 0 : index
    %c0_28 = arith.constant 0 : index
    %87 = vector.load %arg4[%c0_26, %c0_27, %c0_28] : memref<2x32x16xbf16, #tpu.memory_space<vmem>>, vector<1x32x16xbf16>
    %88 = vector.shape_cast %87 : vector<1x32x16xbf16> to vector<32x16xbf16>
    %cst_29 = arith.constant dense<0.000000e+00> : vector<16x16xf32>
    %89 = tpu.matmul %85, %88, %cst_29 {dimension_numbers = #tpu.dot_dimension_numbers<[1], [0], [0], [1], [0, 0, 1, 1], [], []>} : vector<16x32xbf16>, vector<32x16xbf16>, vector<16x16xf32> -> vector<16x16xf32>
    %c0_30 = arith.constant 0 : index
    %c0_31 = arith.constant 0 : index
    %c0_32 = arith.constant 0 : index
    %90 = vector.load %arg7[%c0_30, %c0_31, %c0_32] : memref<2x1x16xf32, #tpu.memory_space<vmem>>, vector<1x1x16xf32>
    %91 = vector.shape_cast %90 : vector<1x1x16xf32> to vector<1x16xf32>
    %92 = vector.broadcast %91 : vector<1x16xf32> to vector<16x16xf32>
    %93 = arith.addf %89, %92 : vector<16x16xf32>
    %c0_33 = arith.constant 0 : index
    %c0_34 = arith.constant 0 : index
    %c0_35 = arith.constant 0 : index
    %94 = vector.load %arg5[%c0_33, %c0_34, %c0_35] : memref<2x32x16xbf16, #tpu.memory_space<vmem>>, vector<1x32x16xbf16>
    %95 = vector.shape_cast %94 : vector<1x32x16xbf16> to vector<32x16xbf16>
    %cst_36 = arith.constant dense<0.000000e+00> : vector<16x16xf32>
    %96 = tpu.matmul %85, %95, %cst_36 {dimension_numbers = #tpu.dot_dimension_numbers<[1], [0], [0], [1], [0, 0, 1, 1], [], []>} : vector<16x32xbf16>, vector<32x16xbf16>, vector<16x16xf32> -> vector<16x16xf32>
    %c0_37 = arith.constant 0 : index
    %c0_38 = arith.constant 0 : index
    %c0_39 = arith.constant 0 : index
    %97 = vector.load %arg8[%c0_37, %c0_38, %c0_39] : memref<2x1x16xf32, #tpu.memory_space<vmem>>, vector<1x1x16xf32>
    %98 = vector.shape_cast %97 : vector<1x1x16xf32> to vector<1x16xf32>
    %99 = vector.broadcast %98 : vector<1x16xf32> to vector<16x16xf32>
    %100 = arith.addf %96, %99 : vector<16x16xf32>
    %c0_40 = arith.constant 0 : index
    %c0_41 = arith.constant 0 : index
    %c0_42 = arith.constant 0 : index
    %101 = vector.load %arg6[%c0_40, %c0_41, %c0_42] : memref<2x32x16xbf16, #tpu.memory_space<vmem>>, vector<1x32x16xbf16>
    %102 = vector.shape_cast %101 : vector<1x32x16xbf16> to vector<32x16xbf16>
    %cst_43 = arith.constant dense<0.000000e+00> : vector<16x16xf32>
    %103 = tpu.matmul %85, %102, %cst_43 {dimension_numbers = #tpu.dot_dimension_numbers<[1], [0], [0], [1], [0, 0, 1, 1], [], []>} : vector<16x32xbf16>, vector<32x16xbf16>, vector<16x16xf32> -> vector<16x16xf32>
    %c0_44 = arith.constant 0 : index
    %c0_45 = arith.constant 0 : index
    %c0_46 = arith.constant 0 : index
    %104 = vector.load %arg9[%c0_44, %c0_45, %c0_46] : memref<2x1x16xf32, #tpu.memory_space<vmem>>, vector<1x1x16xf32>
    %105 = vector.shape_cast %104 : vector<1x1x16xf32> to vector<1x16xf32>
    %106 = vector.broadcast %105 : vector<1x16xf32> to vector<16x16xf32>
    %107 = arith.addf %103, %106 : vector<16x16xf32>
    %108 = arith.truncf %93 : vector<16x16xf32> to vector<16x16xbf16>
    %109 = arith.truncf %100 : vector<16x16xf32> to vector<16x16xbf16>
    %cst_47 = arith.constant dense<0.000000e+00> : vector<16x16xf32>
    %110 = tpu.matmul %108, %109, %cst_47 {dimension_numbers = #tpu.dot_dimension_numbers<[1], [1], [0], [0], [0, 0, 1, 0], [], []>} : vector<16x16xbf16>, vector<16x16xbf16>, vector<16x16xf32> -> vector<16x16xf32>
    %cst_48 = arith.constant 2.500000e-01 : f32
    %111 = vector.broadcast %cst_48 : f32 to vector<16x16xf32>
    %112 = arith.mulf %110, %111 : vector<16x16xf32>
    %113 = arith.addf %112, %84 : vector<16x16xf32>
    %cst_49 = arith.constant dense<0xFF800000> : vector<16xf32>
    %114 = vector.multi_reduction <maximumf>, %113, %cst_49 [1] : vector<16x16xf32> to vector<16xf32>
    %115 = vector.shape_cast %114 : vector<16xf32> to vector<16x1xf32>
    %116 = vector.broadcast %115 : vector<16x1xf32> to vector<16x16xf32>
    %117 = arith.subf %113, %116 : vector<16x16xf32>
    %118 = math.exp %117 : vector<16x16xf32>
    %cst_50 = arith.constant dense<0.000000e+00> : vector<16xf32>
    %119 = vector.multi_reduction <add>, %118, %cst_50 [1] : vector<16x16xf32> to vector<16xf32>
    %120 = vector.shape_cast %119 : vector<16xf32> to vector<16x1xf32>
    %121 = vector.broadcast %120 : vector<16x1xf32> to vector<16x16xf32>
    %122 = arith.divf %118, %121 : vector<16x16xf32>
    %123 = arith.truncf %122 : vector<16x16xf32> to vector<16x16xbf16>
    %124 = arith.truncf %107 : vector<16x16xf32> to vector<16x16xbf16>
    %cst_51 = arith.constant dense<0.000000e+00> : vector<16x16xf32>
    %125 = tpu.matmul %123, %124, %cst_51 {dimension_numbers = #tpu.dot_dimension_numbers<[1], [0], [0], [1], [0, 0, 1, 1], [], []>} : vector<16x16xbf16>, vector<16x16xbf16>, vector<16x16xf32> -> vector<16x16xf32>
    %126 = arith.truncf %125 : vector<16x16xf32> to vector<16x16xbf16>
    %c0_52 = arith.constant 0 : index
    %c0_53 = arith.constant 0 : index
    %c0_54 = arith.constant 0 : index
    %127 = vector.load %arg10[%c0_52, %c0_53, %c0_54] : memref<2x16x32xbf16, #tpu.memory_space<vmem>>, vector<1x16x32xbf16>
    %128 = vector.shape_cast %127 : vector<1x16x32xbf16> to vector<16x32xbf16>
    %cst_55 = arith.constant dense<0.000000e+00> : vector<16x32xf32>
    %129 = tpu.matmul %126, %128, %cst_55 {dimension_numbers = #tpu.dot_dimension_numbers<[1], [0], [0], [1], [0, 0, 1, 1], [], []>} : vector<16x16xbf16>, vector<16x32xbf16>, vector<16x32xf32> -> vector<16x32xf32>
    %130 = arith.addf %86, %129 : vector<16x32xf32>
    %c1_56 = arith.constant 1 : index
    %c0_57 = arith.constant 0 : index
    %c0_58 = arith.constant 0 : index
    %131 = vector.load %arg4[%c1_56, %c0_57, %c0_58] : memref<2x32x16xbf16, #tpu.memory_space<vmem>>, vector<1x32x16xbf16>
    %132 = vector.shape_cast %131 : vector<1x32x16xbf16> to vector<32x16xbf16>
    %cst_59 = arith.constant dense<0.000000e+00> : vector<16x16xf32>
    %133 = tpu.matmul %85, %132, %cst_59 {dimension_numbers = #tpu.dot_dimension_numbers<[1], [0], [0], [1], [0, 0, 1, 1], [], []>} : vector<16x32xbf16>, vector<32x16xbf16>, vector<16x16xf32> -> vector<16x16xf32>
    %c1_60 = arith.constant 1 : index
    %c0_61 = arith.constant 0 : index
    %c0_62 = arith.constant 0 : index
    %134 = vector.load %arg7[%c1_60, %c0_61, %c0_62] : memref<2x1x16xf32, #tpu.memory_space<vmem>>, vector<1x1x16xf32>
    %135 = vector.shape_cast %134 : vector<1x1x16xf32> to vector<1x16xf32>
    %136 = vector.broadcast %135 : vector<1x16xf32> to vector<16x16xf32>
    %137 = arith.addf %133, %136 : vector<16x16xf32>
    %c1_63 = arith.constant 1 : index
    %c0_64 = arith.constant 0 : index
    %c0_65 = arith.constant 0 : index
    %138 = vector.load %arg5[%c1_63, %c0_64, %c0_65] : memref<2x32x16xbf16, #tpu.memory_space<vmem>>, vector<1x32x16xbf16>
    %139 = vector.shape_cast %138 : vector<1x32x16xbf16> to vector<32x16xbf16>
    %cst_66 = arith.constant dense<0.000000e+00> : vector<16x16xf32>
    %140 = tpu.matmul %85, %139, %cst_66 {dimension_numbers = #tpu.dot_dimension_numbers<[1], [0], [0], [1], [0, 0, 1, 1], [], []>} : vector<16x32xbf16>, vector<32x16xbf16>, vector<16x16xf32> -> vector<16x16xf32>
    %c1_67 = arith.constant 1 : index
    %c0_68 = arith.constant 0 : index
    %c0_69 = arith.constant 0 : index
    %141 = vector.load %arg8[%c1_67, %c0_68, %c0_69] : memref<2x1x16xf32, #tpu.memory_space<vmem>>, vector<1x1x16xf32>
    %142 = vector.shape_cast %141 : vector<1x1x16xf32> to vector<1x16xf32>
    %143 = vector.broadcast %142 : vector<1x16xf32> to vector<16x16xf32>
    %144 = arith.addf %140, %143 : vector<16x16xf32>
    %c1_70 = arith.constant 1 : index
    %c0_71 = arith.constant 0 : index
    %c0_72 = arith.constant 0 : index
    %145 = vector.load %arg6[%c1_70, %c0_71, %c0_72] : memref<2x32x16xbf16, #tpu.memory_space<vmem>>, vector<1x32x16xbf16>
    %146 = vector.shape_cast %145 : vector<1x32x16xbf16> to vector<32x16xbf16>
    %cst_73 = arith.constant dense<0.000000e+00> : vector<16x16xf32>
    %147 = tpu.matmul %85, %146, %cst_73 {dimension_numbers = #tpu.dot_dimension_numbers<[1], [0], [0], [1], [0, 0, 1, 1], [], []>} : vector<16x32xbf16>, vector<32x16xbf16>, vector<16x16xf32> -> vector<16x16xf32>
    %c1_74 = arith.constant 1 : index
    %c0_75 = arith.constant 0 : index
    %c0_76 = arith.constant 0 : index
    %148 = vector.load %arg9[%c1_74, %c0_75, %c0_76] : memref<2x1x16xf32, #tpu.memory_space<vmem>>, vector<1x1x16xf32>
    %149 = vector.shape_cast %148 : vector<1x1x16xf32> to vector<1x16xf32>
    %150 = vector.broadcast %149 : vector<1x16xf32> to vector<16x16xf32>
    %151 = arith.addf %147, %150 : vector<16x16xf32>
    %152 = arith.truncf %137 : vector<16x16xf32> to vector<16x16xbf16>
    %153 = arith.truncf %144 : vector<16x16xf32> to vector<16x16xbf16>
    %cst_77 = arith.constant dense<0.000000e+00> : vector<16x16xf32>
    %154 = tpu.matmul %152, %153, %cst_77 {dimension_numbers = #tpu.dot_dimension_numbers<[1], [1], [0], [0], [0, 0, 1, 0], [], []>} : vector<16x16xbf16>, vector<16x16xbf16>, vector<16x16xf32> -> vector<16x16xf32>
    %cst_78 = arith.constant 2.500000e-01 : f32
    %155 = vector.broadcast %cst_78 : f32 to vector<16x16xf32>
    %156 = arith.mulf %154, %155 : vector<16x16xf32>
    %157 = arith.addf %156, %84 : vector<16x16xf32>
    %cst_79 = arith.constant dense<0xFF800000> : vector<16xf32>
    %158 = vector.multi_reduction <maximumf>, %157, %cst_79 [1] : vector<16x16xf32> to vector<16xf32>
    %159 = vector.shape_cast %158 : vector<16xf32> to vector<16x1xf32>
    %160 = vector.broadcast %159 : vector<16x1xf32> to vector<16x16xf32>
    %161 = arith.subf %157, %160 : vector<16x16xf32>
    %162 = math.exp %161 : vector<16x16xf32>
    %cst_80 = arith.constant dense<0.000000e+00> : vector<16xf32>
    %163 = vector.multi_reduction <add>, %162, %cst_80 [1] : vector<16x16xf32> to vector<16xf32>
    %164 = vector.shape_cast %163 : vector<16xf32> to vector<16x1xf32>
    %165 = vector.broadcast %164 : vector<16x1xf32> to vector<16x16xf32>
    %166 = arith.divf %162, %165 : vector<16x16xf32>
    %167 = arith.truncf %166 : vector<16x16xf32> to vector<16x16xbf16>
    %168 = arith.truncf %151 : vector<16x16xf32> to vector<16x16xbf16>
    %cst_81 = arith.constant dense<0.000000e+00> : vector<16x16xf32>
    %169 = tpu.matmul %167, %168, %cst_81 {dimension_numbers = #tpu.dot_dimension_numbers<[1], [0], [0], [1], [0, 0, 1, 1], [], []>} : vector<16x16xbf16>, vector<16x16xbf16>, vector<16x16xf32> -> vector<16x16xf32>
    %170 = arith.truncf %169 : vector<16x16xf32> to vector<16x16xbf16>
    %c1_82 = arith.constant 1 : index
    %c0_83 = arith.constant 0 : index
    %c0_84 = arith.constant 0 : index
    %171 = vector.load %arg10[%c1_82, %c0_83, %c0_84] : memref<2x16x32xbf16, #tpu.memory_space<vmem>>, vector<1x16x32xbf16>
    %172 = vector.shape_cast %171 : vector<1x16x32xbf16> to vector<16x32xbf16>
    %cst_85 = arith.constant dense<0.000000e+00> : vector<16x32xf32>
    %173 = tpu.matmul %170, %172, %cst_85 {dimension_numbers = #tpu.dot_dimension_numbers<[1], [0], [0], [1], [0, 0, 1, 1], [], []>} : vector<16x16xbf16>, vector<16x32xbf16>, vector<16x32xf32> -> vector<16x32xf32>
    %174 = arith.addf %130, %173 : vector<16x32xf32>
    %c0_86 = arith.constant 0 : index
    %c0_87 = arith.constant 0 : index
    %175 = vector.load %arg11[%c0_86, %c0_87] : memref<1x32xf32, #tpu.memory_space<vmem>>, vector<1x32xf32>
    %176 = vector.broadcast %175 : vector<1x32xf32> to vector<16x32xf32>
    %177 = arith.addf %174, %176 : vector<16x32xf32>
    %178 = arith.addf %0, %177 : vector<16x32xf32>
    %c0_88 = arith.constant 0 : index
    %c0_89 = arith.constant 0 : index
    %179 = vector.load %arg12[%c0_88, %c0_89] : memref<2x32xf32, #tpu.memory_space<vmem>>, vector<1x32xf32>
    %c1_90 = arith.constant 1 : index
    %c0_91 = arith.constant 0 : index
    %180 = vector.load %arg12[%c1_90, %c0_91] : memref<2x32xf32, #tpu.memory_space<vmem>>, vector<1x32xf32>
    %cst_92 = arith.constant dense<0.000000e+00> : vector<16xf32>
    %181 = vector.multi_reduction <add>, %178, %cst_92 [1] : vector<16x32xf32> to vector<16xf32>
    %182 = vector.shape_cast %181 : vector<16xf32> to vector<16x1xf32>
    %cst_93 = arith.constant 3.200000e+01 : f32
    %183 = vector.broadcast %cst_93 : f32 to vector<16x1xf32>
    %184 = arith.divf %182, %183 : vector<16x1xf32>
    %185 = vector.broadcast %184 : vector<16x1xf32> to vector<16x32xf32>
    %186 = arith.subf %178, %185 : vector<16x32xf32>
    %187 = arith.mulf %186, %186 : vector<16x32xf32>
    %cst_94 = arith.constant dense<0.000000e+00> : vector<16xf32>
    %188 = vector.multi_reduction <add>, %187, %cst_94 [1] : vector<16x32xf32> to vector<16xf32>
    %189 = vector.shape_cast %188 : vector<16xf32> to vector<16x1xf32>
    %cst_95 = arith.constant 3.200000e+01 : f32
    %190 = vector.broadcast %cst_95 : f32 to vector<16x1xf32>
    %191 = arith.divf %189, %190 : vector<16x1xf32>
    %192 = vector.broadcast %184 : vector<16x1xf32> to vector<16x32xf32>
    %193 = arith.subf %178, %192 : vector<16x32xf32>
    %cst_96 = arith.constant 9.99999996E-13 : f32
    %194 = vector.broadcast %cst_96 : f32 to vector<16x1xf32>
    %195 = arith.addf %191, %194 : vector<16x1xf32>
    %196 = math.rsqrt %195 : vector<16x1xf32>
    %197 = vector.broadcast %196 : vector<16x1xf32> to vector<16x32xf32>
    %198 = arith.mulf %193, %197 : vector<16x32xf32>
    %199 = vector.broadcast %179 : vector<1x32xf32> to vector<16x32xf32>
    %200 = arith.mulf %198, %199 : vector<16x32xf32>
    %201 = vector.broadcast %180 : vector<1x32xf32> to vector<16x32xf32>
    %202 = arith.addf %200, %201 : vector<16x32xf32>
    %203 = arith.truncf %202 : vector<16x32xf32> to vector<16x32xbf16>
    %c0_97 = arith.constant 0 : index
    %c0_98 = arith.constant 0 : index
    %204 = vector.load %arg13[%c0_97, %c0_98] : memref<32x64xbf16, #tpu.memory_space<vmem>>, vector<32x64xbf16>
    %cst_99 = arith.constant dense<0.000000e+00> : vector<16x64xf32>
    %205 = tpu.matmul %203, %204, %cst_99 {dimension_numbers = #tpu.dot_dimension_numbers<[1], [0], [0], [1], [0, 0, 1, 1], [], []>} : vector<16x32xbf16>, vector<32x64xbf16>, vector<16x64xf32> -> vector<16x64xf32>
    %c0_100 = arith.constant 0 : index
    %c0_101 = arith.constant 0 : index
    %206 = vector.load %arg14[%c0_100, %c0_101] : memref<1x64xf32, #tpu.memory_space<vmem>>, vector<1x64xf32>
    %207 = vector.broadcast %206 : vector<1x64xf32> to vector<16x64xf32>
    %208 = arith.addf %205, %207 : vector<16x64xf32>
    %cst_102 = arith.constant 5.000000e-01 : f32
    %209 = vector.broadcast %cst_102 : f32 to vector<16x64xf32>
    %210 = arith.mulf %209, %208 : vector<16x64xf32>
    %cst_103 = arith.constant 4.471500e-02 : f32
    %211 = vector.broadcast %cst_103 : f32 to vector<16x64xf32>
    %212 = arith.mulf %211, %208 : vector<16x64xf32>
    %213 = arith.mulf %212, %208 : vector<16x64xf32>
    %214 = arith.mulf %213, %208 : vector<16x64xf32>
    %215 = arith.addf %208, %214 : vector<16x64xf32>
    %cst_104 = arith.constant 0.797884583 : f32
    %216 = vector.broadcast %cst_104 : f32 to vector<16x64xf32>
    %217 = arith.mulf %216, %215 : vector<16x64xf32>
    %218 = math.tanh %217 : vector<16x64xf32>
    %cst_105 = arith.constant 1.000000e+00 : f32
    %219 = vector.broadcast %cst_105 : f32 to vector<16x64xf32>
    %220 = arith.addf %219, %218 : vector<16x64xf32>
    %221 = arith.mulf %210, %220 : vector<16x64xf32>
    %222 = arith.truncf %221 : vector<16x64xf32> to vector<16x64xbf16>
    %c0_106 = arith.constant 0 : index
    %c0_107 = arith.constant 0 : index
    %223 = vector.load %arg15[%c0_106, %c0_107] : memref<64x32xbf16, #tpu.memory_space<vmem>>, vector<64x32xbf16>
    %cst_108 = arith.constant dense<0.000000e+00> : vector<16x32xf32>
    %224 = tpu.matmul %222, %223, %cst_108 {dimension_numbers = #tpu.dot_dimension_numbers<[1], [0], [0], [1], [0, 0, 1, 1], [], []>} : vector<16x64xbf16>, vector<64x32xbf16>, vector<16x32xf32> -> vector<16x32xf32>
    %c0_109 = arith.constant 0 : index
    %c0_110 = arith.constant 0 : index
    %225 = vector.load %arg16[%c0_109, %c0_110] : memref<1x32xf32, #tpu.memory_space<vmem>>, vector<1x32xf32>
    %226 = vector.broadcast %225 : vector<1x32xf32> to vector<16x32xf32>
    %227 = arith.addf %224, %226 : vector<16x32xf32>
    %228 = arith.addf %202, %227 : vector<16x32xf32>
    %c0_111 = arith.constant 0 : index
    %c0_112 = arith.constant 0 : index
    %229 = vector.load %arg17[%c0_111, %c0_112] : memref<2x32xf32, #tpu.memory_space<vmem>>, vector<1x32xf32>
    %c1_113 = arith.constant 1 : index
    %c0_114 = arith.constant 0 : index
    %230 = vector.load %arg17[%c1_113, %c0_114] : memref<2x32xf32, #tpu.memory_space<vmem>>, vector<1x32xf32>
    %cst_115 = arith.constant dense<0.000000e+00> : vector<16xf32>
    %231 = vector.multi_reduction <add>, %228, %cst_115 [1] : vector<16x32xf32> to vector<16xf32>
    %232 = vector.shape_cast %231 : vector<16xf32> to vector<16x1xf32>
    %cst_116 = arith.constant 3.200000e+01 : f32
    %233 = vector.broadcast %cst_116 : f32 to vector<16x1xf32>
    %234 = arith.divf %232, %233 : vector<16x1xf32>
    %235 = vector.broadcast %234 : vector<16x1xf32> to vector<16x32xf32>
    %236 = arith.subf %228, %235 : vector<16x32xf32>
    %237 = arith.mulf %236, %236 : vector<16x32xf32>
    %cst_117 = arith.constant dense<0.000000e+00> : vector<16xf32>
    %238 = vector.multi_reduction <add>, %237, %cst_117 [1] : vector<16x32xf32> to vector<16xf32>
    %239 = vector.shape_cast %238 : vector<16xf32> to vector<16x1xf32>
    %cst_118 = arith.constant 3.200000e+01 : f32
    %240 = vector.broadcast %cst_118 : f32 to vector<16x1xf32>
    %241 = arith.divf %239, %240 : vector<16x1xf32>
    %242 = vector.broadcast %234 : vector<16x1xf32> to vector<16x32xf32>
    %243 = arith.subf %228, %242 : vector<16x32xf32>
    %cst_119 = arith.constant 9.99999996E-13 : f32
    %244 = vector.broadcast %cst_119 : f32 to vector<16x1xf32>
    %245 = arith.addf %241, %244 : vector<16x1xf32>
    %246 = math.rsqrt %245 : vector<16x1xf32>
    %247 = vector.broadcast %246 : vector<16x1xf32> to vector<16x32xf32>
    %248 = arith.mulf %243, %247 : vector<16x32xf32>
    %249 = vector.broadcast %229 : vector<1x32xf32> to vector<16x32xf32>
    %250 = arith.mulf %248, %249 : vector<16x32xf32>
    %251 = vector.broadcast %230 : vector<1x32xf32> to vector<16x32xf32>
    %252 = arith.addf %250, %251 : vector<16x32xf32>
    %253 = arith.truncf %252 : vector<16x32xf32> to vector<16x32xbf16>
    %c0_120 = arith.constant 0 : index
    %c0_121 = arith.constant 0 : index
    %254 = vector.load %arg18[%c0_120, %c0_121] : memref<32x128xbf16, #tpu.memory_space<vmem>>, vector<32x128xbf16>
    %cst_122 = arith.constant dense<0.000000e+00> : vector<16x128xf32>
    %255 = tpu.matmul %253, %254, %cst_122 {dimension_numbers = #tpu.dot_dimension_numbers<[1], [0], [0], [1], [0, 0, 1, 1], [], []>} : vector<16x32xbf16>, vector<32x128xbf16>, vector<16x128xf32> -> vector<16x128xf32>
    %c0_123 = arith.constant 0 : index
    %c0_124 = arith.constant 0 : index
    %256 = vector.load %arg19[%c0_123, %c0_124] : memref<1x128xf32, #tpu.memory_space<vmem>>, vector<1x128xf32>
    %257 = vector.broadcast %256 : vector<1x128xf32> to vector<16x128xf32>
    %258 = arith.addf %255, %257 : vector<16x128xf32>
    %c0_125 = arith.constant 0 : index
    %c0_126 = arith.constant 0 : index
    %259 = vector.load %arg22[%c0_125, %c0_126] : memref<16x128xf32, #tpu.memory_space<vmem>>, vector<16x128xf32>
    tpu.vector_store %arg22[%c0_125, %c0_126], %258 {strides = array<i32>} : memref<16x128xf32, #tpu.memory_space<vmem>>, vector<16x128xf32>,
    %c0_127 = arith.constant 0 : index
    %c0_128 = arith.constant 0 : index
    %260 = vector.load %arg20[%c0_127, %c0_128] : memref<8x128xf32, #tpu.memory_space<vmem>>, vector<8x128xf32>
    %261 = vector.extract_strided_slice %260 {offsets = [0, 0], sizes = [3, 3], strides = [1, 1]} : vector<8x128xf32> to vector<3x3xf32>
    %262 = vector.extract_strided_slice %260 {offsets = [3, 0], sizes = [1, 128], strides = [1, 1]} : vector<8x128xf32> to vector<1x128xf32>
    %263 = vector.extract_strided_slice %260 {offsets = [4, 0], sizes = [1, 128], strides = [1, 1]} : vector<8x128xf32> to vector<1x128xf32>
    %264 = vector.extract_strided_slice %260 {offsets = [4, 0], sizes = [1, 3], strides = [1, 1]} : vector<8x128xf32> to vector<1x3xf32>
    %c0_129 = arith.constant 0 : index
    %c0_130 = arith.constant 0 : index
    %265 = vector.load %arg3[%c0_129, %c0_130] : memref<16x128xf32, #tpu.memory_space<vmem>>, vector<16x128xf32>
    %266 = arith.mulf %258, %265 : vector<16x128xf32>
    %cst_131 = arith.constant dense<0.000000e+00> : vector<16xf32>
    %267 = vector.multi_reduction <add>, %266, %cst_131 [1] : vector<16x128xf32> to vector<16xf32>
    %268 = vector.shape_cast %267 : vector<16xf32> to vector<16x1xf32>
    %269 = vector.broadcast %262 : vector<1x128xf32> to vector<16x128xf32>
    %270 = arith.mulf %269, %265 : vector<16x128xf32>
    %cst_132 = arith.constant dense<0.000000e+00> : vector<16xf32>
    %271 = vector.multi_reduction <add>, %270, %cst_132 [1] : vector<16x128xf32> to vector<16xf32>
    %272 = vector.shape_cast %271 : vector<16xf32> to vector<16x1xf32>
    %273 = vector.broadcast %263 : vector<1x128xf32> to vector<16x128xf32>
    %274 = arith.mulf %273, %265 : vector<16x128xf32>
    %cst_133 = arith.constant dense<0.000000e+00> : vector<16xf32>
    %275 = vector.multi_reduction <add>, %274, %cst_133 [1] : vector<16x128xf32> to vector<16xf32>
    %276 = vector.shape_cast %275 : vector<16xf32> to vector<16x1xf32>
    %277 = arith.mulf %45, %268 : vector<16x1xf32>
    %278 = arith.mulf %47, %272 : vector<16x1xf32>
    %279 = arith.addf %277, %278 : vector<16x1xf32>
    %280 = arith.mulf %49, %276 : vector<16x1xf32>
    %281 = arith.addf %279, %280 : vector<16x1xf32>
    %282 = tpu.iota {dimensions = array<i32: 0>} : vector<2x1xi32>
    %c0_i32_134 = arith.constant 0 : i32
    %283 = vector.broadcast %c0_i32_134 : i32 to vector<2x1xi32>
    %c0_i32_135 = arith.constant 0 : i32
    %284 = vector.broadcast %c0_i32_135 : i32 to vector<2x1xi32>
    %285 = arith.cmpi eq, %282, %284 : vector<2x1xi32>
    %c0_136 = arith.constant 0 : index
    %286 = memref.load %arg1[%c0_136] : memref<2xi32, #tpu.memory_space<smem>>
    %287 = vector.broadcast %286 : i32 to vector<2x1xi32>
    %288 = arith.select %285, %287, %283 : vector<2x1xi1>, vector<2x1xi32>
    %c1_i32_137 = arith.constant 1 : i32
    %289 = vector.broadcast %c1_i32_137 : i32 to vector<2x1xi32>
    %290 = arith.cmpi eq, %282, %289 : vector<2x1xi32>
    %c1_138 = arith.constant 1 : index
    %291 = memref.load %arg1[%c1_138] : memref<2xi32, #tpu.memory_space<smem>>
    %292 = vector.broadcast %291 : i32 to vector<2x1xi32>
    %293 = arith.select %290, %292, %288 : vector<2x1xi1>, vector<2x1xi32>
    %294 = vector.extract_strided_slice %260 {offsets = [3, 0], sizes = [1, 3], strides = [1, 1]} : vector<8x128xf32> to vector<1x3xf32>
    %c0_139 = arith.constant 0 : index
    %c0_140 = arith.constant 0 : index
    %295 = tpu.strided_load %arg22[%c0_139, %c0_140] {strides = array<i32: 8, 1>} : memref<16x128xf32, #tpu.memory_space<vmem>>, vector<2x128xf32>
    %296 = vector.extract_strided_slice %295 {offsets = [0, 0], sizes = [2, 3], strides = [1, 1]} : vector<2x128xf32> to vector<2x3xf32>
    %297 = vector.broadcast %294 : vector<1x3xf32> to vector<2x3xf32>
    %298 = arith.addf %297, %296 : vector<2x3xf32>
    %c0_141 = arith.constant 0 : index
    %c0_142 = arith.constant 0 : index
    %299 = tpu.strided_load %arg3[%c0_141, %c0_142] {strides = array<i32: 8, 1>} : memref<16x128xf32, #tpu.memory_space<vmem>>, vector<2x128xf32>
    %300 = vector.extract_strided_slice %299 {offsets = [0, 0], sizes = [2, 3], strides = [1, 1]} : vector<2x128xf32> to vector<2x3xf32>
    %cst_143 = arith.constant 0.000000e+00 : f32
    %301 = vector.broadcast %cst_143 : f32 to vector<2x1xf32>
    %c1_144 = arith.constant 1 : index
    %c0_145 = arith.constant 0 : index
    %302 = tpu.strided_load %arg22[%c1_144, %c0_145] {strides = array<i32: 8, 1>} : memref<16x128xf32, #tpu.memory_space<vmem>>, vector<2x128xf32>
    %303 = vector.extract_strided_slice %302 {offsets = [0, 0], sizes = [2, 3], strides = [1, 1]} : vector<2x128xf32> to vector<2x3xf32>
    %c1_146 = arith.constant 1 : index
    %c0_147 = arith.constant 0 : index
    %304 = tpu.strided_load %arg3[%c1_146, %c0_147] {strides = array<i32: 8, 1>} : memref<16x128xf32, #tpu.memory_space<vmem>>, vector<2x128xf32>
    %305 = vector.extract_strided_slice %304 {offsets = [0, 0], sizes = [2, 3], strides = [1, 1]} : vector<2x128xf32> to vector<2x3xf32>
    %c1_i32_148 = arith.constant 1 : i32
    %306 = vector.broadcast %c1_i32_148 : i32 to vector<2x1xi32>
    %307 = arith.cmpi sgt, %293, %306 : vector<2x1xi32>
    %cst_149 = arith.constant 0.000000e+00 : f32
    %308 = vector.broadcast %cst_149 : f32 to vector<2x3xf32>
    %309 = vector.extract_strided_slice %300 {offsets = [0, 0], sizes = [2, 1], strides = [1, 1]} : vector<2x3xf32> to vector<2x1xf32>
    %310 = vector.extract_strided_slice %261 {offsets = [0, 0], sizes = [1, 3], strides = [1, 1]} : vector<3x3xf32> to vector<1x3xf32>
    %311 = vector.broadcast %309 : vector<2x1xf32> to vector<2x3xf32>
    %312 = vector.broadcast %310 : vector<1x3xf32> to vector<2x3xf32>
    %313 = arith.mulf %311, %312 : vector<2x3xf32>
    %314 = arith.addf %308, %313 : vector<2x3xf32>
    %315 = vector.extract_strided_slice %300 {offsets = [0, 1], sizes = [2, 1], strides = [1, 1]} : vector<2x3xf32> to vector<2x1xf32>
    %316 = vector.extract_strided_slice %261 {offsets = [1, 0], sizes = [1, 3], strides = [1, 1]} : vector<3x3xf32> to vector<1x3xf32>
    %317 = vector.broadcast %315 : vector<2x1xf32> to vector<2x3xf32>
    %318 = vector.broadcast %316 : vector<1x3xf32> to vector<2x3xf32>
    %319 = arith.mulf %317, %318 : vector<2x3xf32>
    %320 = arith.addf %314, %319 : vector<2x3xf32>
    %321 = vector.extract_strided_slice %300 {offsets = [0, 2], sizes = [2, 1], strides = [1, 1]} : vector<2x3xf32> to vector<2x1xf32>
    %322 = vector.extract_strided_slice %261 {offsets = [2, 0], sizes = [1, 3], strides = [1, 1]} : vector<3x3xf32> to vector<1x3xf32>
    %323 = vector.broadcast %321 : vector<2x1xf32> to vector<2x3xf32>
    %324 = vector.broadcast %322 : vector<1x3xf32> to vector<2x3xf32>
    %325 = arith.mulf %323, %324 : vector<2x3xf32>
    %326 = arith.addf %320, %325 : vector<2x3xf32>
    %327 = arith.mulf %326, %305 : vector<2x3xf32>
    %cst_150 = arith.constant dense<0.000000e+00> : vector<2xf32>
    %328 = vector.multi_reduction <add>, %327, %cst_150 [1] : vector<2x3xf32> to vector<2xf32>
    %329 = vector.shape_cast %328 : vector<2xf32> to vector<2x1xf32>
    %330 = arith.extui %307 : vector<2x1xi1> to vector<2x1xi32>
    %331 = arith.sitofp %330 : vector<2x1xi32> to vector<2x1xf32>
    %332 = arith.mulf %331, %329 : vector<2x1xf32>
    %333 = arith.addf %301, %332 : vector<2x1xf32>
    %334 = vector.extract_strided_slice %298 {offsets = [0, 0], sizes = [2, 1], strides = [1, 1]} : vector<2x3xf32> to vector<2x1xf32>
    %335 = vector.extract_strided_slice %261 {offsets = [0, 0], sizes = [1, 3], strides = [1, 1]} : vector<3x3xf32> to vector<1x3xf32>
    %336 = vector.broadcast %334 : vector<2x1xf32> to vector<2x3xf32>
    %337 = vector.broadcast %335 : vector<1x3xf32> to vector<2x3xf32>
    %338 = arith.addf %336, %337 : vector<2x3xf32>
    %339 = vector.extract_strided_slice %298 {offsets = [0, 1], sizes = [2, 1], strides = [1, 1]} : vector<2x3xf32> to vector<2x1xf32>
    %340 = vector.extract_strided_slice %261 {offsets = [1, 0], sizes = [1, 3], strides = [1, 1]} : vector<3x3xf32> to vector<1x3xf32>
    %341 = vector.broadcast %339 : vector<2x1xf32> to vector<2x3xf32>
    %342 = vector.broadcast %340 : vector<1x3xf32> to vector<2x3xf32>
    %343 = arith.addf %341, %342 : vector<2x3xf32>
    %344 = vector.extract_strided_slice %298 {offsets = [0, 2], sizes = [2, 1], strides = [1, 1]} : vector<2x3xf32> to vector<2x1xf32>
    %345 = vector.extract_strided_slice %261 {offsets = [2, 0], sizes = [1, 3], strides = [1, 1]} : vector<3x3xf32> to vector<1x3xf32>
    %346 = vector.broadcast %344 : vector<2x1xf32> to vector<2x3xf32>
    %347 = vector.broadcast %345 : vector<1x3xf32> to vector<2x3xf32>
    %348 = arith.addf %346, %347 : vector<2x3xf32>
    %349 = arith.maximumf %338, %343 : vector<2x3xf32>
    %350 = arith.maximumf %349, %348 : vector<2x3xf32>
    %351 = arith.subf %338, %350 : vector<2x3xf32>
    %352 = math.exp %351 : vector<2x3xf32>
    %353 = arith.subf %343, %350 : vector<2x3xf32>
    %354 = math.exp %353 : vector<2x3xf32>
    %355 = arith.addf %352, %354 : vector<2x3xf32>
    %356 = arith.subf %348, %350 : vector<2x3xf32>
    %357 = math.exp %356 : vector<2x3xf32>
    %358 = arith.addf %355, %357 : vector<2x3xf32>
    %359 = math.log %358 : vector<2x3xf32>
    %360 = arith.addf %350, %359 : vector<2x3xf32>
    %361 = arith.addf %360, %303 : vector<2x3xf32>
    %362 = vector.shape_cast %307 : vector<2x1xi1> to vector<2x1xi1>
    %363 = vector.broadcast %362 : vector<2x1xi1> to vector<2x3xi1>
    %364 = arith.select %363, %361, %298 : vector<2x3xi1>, vector<2x3xf32>
    %c2 = arith.constant 2 : index
    %c0_151 = arith.constant 0 : index
    %365 = tpu.strided_load %arg22[%c2, %c0_151] {strides = array<i32: 8, 1>} : memref<16x128xf32, #tpu.memory_space<vmem>>, vector<2x128xf32>
    %366 = vector.extract_strided_slice %365 {offsets = [0, 0], sizes = [2, 3], strides = [1, 1]} : vector<2x128xf32> to vector<2x3xf32>
    %c2_152 = arith.constant 2 : index
    %c0_153 = arith.constant 0 : index
    %367 = tpu.strided_load %arg3[%c2_152, %c0_153] {strides = array<i32: 8, 1>} : memref<16x128xf32, #tpu.memory_space<vmem>>, vector<2x128xf32>
    %368 = vector.extract_strided_slice %367 {offsets = [0, 0], sizes = [2, 3], strides = [1, 1]} : vector<2x128xf32> to vector<2x3xf32>
    %c2_i32 = arith.constant 2 : i32
    %369 = vector.broadcast %c2_i32 : i32 to vector<2x1xi32>
    %370 = arith.cmpi sgt, %293, %369 : vector<2x1xi32>
    %cst_154 = arith.constant 0.000000e+00 : f32
    %371 = vector.broadcast %cst_154 : f32 to vector<2x3xf32>
    %372 = vector.extract_strided_slice %305 {offsets = [0, 0], sizes = [2, 1], strides = [1, 1]} : vector<2x3xf32> to vector<2x1xf32>
    %373 = vector.extract_strided_slice %261 {offsets = [0, 0], sizes = [1, 3], strides = [1, 1]} : vector<3x3xf32> to vector<1x3xf32>
    %374 = vector.broadcast %372 : vector<2x1xf32> to vector<2x3xf32>
    %375 = vector.broadcast %373 : vector<1x3xf32> to vector<2x3xf32>
    %376 = arith.mulf %374, %375 : vector<2x3xf32>
    %377 = arith.addf %371, %376 : vector<2x3xf32>
    %378 = vector.extract_strided_slice %305 {offsets = [0, 1], sizes = [2, 1], strides = [1, 1]} : vector<2x3xf32> to vector<2x1xf32>
    %379 = vector.extract_strided_slice %261 {offsets = [1, 0], sizes = [1, 3], strides = [1, 1]} : vector<3x3xf32> to vector<1x3xf32>
    %380 = vector.broadcast %378 : vector<2x1xf32> to vector<2x3xf32>
    %381 = vector.broadcast %379 : vector<1x3xf32> to vector<2x3xf32>
    %382 = arith.mulf %380, %381 : vector<2x3xf32>
    %383 = arith.addf %377, %382 : vector<2x3xf32>
    %384 = vector.extract_strided_slice %305 {offsets = [0, 2], sizes = [2, 1], strides = [1, 1]} : vector<2x3xf32> to vector<2x1xf32>
    %385 = vector.extract_strided_slice %261 {offsets = [2, 0], sizes = [1, 3], strides = [1, 1]} : vector<3x3xf32> to vector<1x3xf32>
    %386 = vector.broadcast %384 : vector<2x1xf32> to vector<2x3xf32>
    %387 = vector.broadcast %385 : vector<1x3xf32> to vector<2x3xf32>
    %388 = arith.mulf %386, %387 : vector<2x3xf32>
    %389 = arith.addf %383, %388 : vector<2x3xf32>
    %390 = arith.mulf %389, %368 : vector<2x3xf32>
    %cst_155 = arith.constant dense<0.000000e+00> : vector<2xf32>
    %391 = vector.multi_reduction <add>, %390, %cst_155 [1] : vector<2x3xf32> to vector<2xf32>
    %392 = vector.shape_cast %391 : vector<2xf32> to vector<2x1xf32>
    %393 = arith.extui %370 : vector<2x1xi1> to vector<2x1xi32>
    %394 = arith.sitofp %393 : vector<2x1xi32> to vector<2x1xf32>
    %395 = arith.mulf %394, %392 : vector<2x1xf32>
    %396 = arith.addf %333, %395 : vector<2x1xf32>
    %397 = vector.extract_strided_slice %364 {offsets = [0, 0], sizes = [2, 1], strides = [1, 1]} : vector<2x3xf32> to vector<2x1xf32>
    %398 = vector.extract_strided_slice %261 {offsets = [0, 0], sizes = [1, 3], strides = [1, 1]} : vector<3x3xf32> to vector<1x3xf32>
    %399 = vector.broadcast %397 : vector<2x1xf32> to vector<2x3xf32>
    %400 = vector.broadcast %398 : vector<1x3xf32> to vector<2x3xf32>
    %401 = arith.addf %399, %400 : vector<2x3xf32>
    %402 = vector.extract_strided_slice %364 {offsets = [0, 1], sizes = [2, 1], strides = [1, 1]} : vector<2x3xf32> to vector<2x1xf32>
    %403 = vector.extract_strided_slice %261 {offsets = [1, 0], sizes = [1, 3], strides = [1, 1]} : vector<3x3xf32> to vector<1x3xf32>
    %404 = vector.broadcast %402 : vector<2x1xf32> to vector<2x3xf32>
    %405 = vector.broadcast %403 : vector<1x3xf32> to vector<2x3xf32>
    %406 = arith.addf %404, %405 : vector<2x3xf32>
    %407 = vector.extract_strided_slice %364 {offsets = [0, 2], sizes = [2, 1], strides = [1, 1]} : vector<2x3xf32> to vector<2x1xf32>
    %408 = vector.extract_strided_slice %261 {offsets = [2, 0], sizes = [1, 3], strides = [1, 1]} : vector<3x3xf32> to vector<1x3xf32>
    %409 = vector.broadcast %407 : vector<2x1xf32> to vector<2x3xf32>
    %410 = vector.broadcast %408 : vector<1x3xf32> to vector<2x3xf32>
    %411 = arith.addf %409, %410 : vector<2x3xf32>
    %412 = arith.maximumf %401, %406 : vector<2x3xf32>
    %413 = arith.maximumf %412, %411 : vector<2x3xf32>
    %414 = arith.subf %401, %413 : vector<2x3xf32>
    %415 = math.exp %414 : vector<2x3xf32>
    %416 = arith.subf %406, %413 : vector<2x3xf32>
    %417 = math.exp %416 : vector<2x3xf32>
    %418 = arith.addf %415, %417 : vector<2x3xf32>
    %419 = arith.subf %411, %413 : vector<2x3xf32>
    %420 = math.exp %419 : vector<2x3xf32>
    %421 = arith.addf %418, %420 : vector<2x3xf32>
    %422 = math.log %421 : vector<2x3xf32>
    %423 = arith.addf %413, %422 : vector<2x3xf32>
    %424 = arith.addf %423, %366 : vector<2x3xf32>
    %425 = vector.shape_cast %370 : vector<2x1xi1> to vector<2x1xi1>
    %426 = vector.broadcast %425 : vector<2x1xi1> to vector<2x3xi1>
    %427 = arith.select %426, %424, %364 : vector<2x3xi1>, vector<2x3xf32>
    %c3 = arith.constant 3 : index
    %c0_156 = arith.constant 0 : index
    %428 = tpu.strided_load %arg22[%c3, %c0_156] {strides = array<i32: 8, 1>} : memref<16x128xf32, #tpu.memory_space<vmem>>, vector<2x128xf32>
    %429 = vector.extract_strided_slice %428 {offsets = [0, 0], sizes = [2, 3], strides = [1, 1]} : vector<2x128xf32> to vector<2x3xf32>
    %c3_157 = arith.constant 3 : index
    %c0_158 = arith.constant 0 : index
    %430 = tpu.strided_load %arg3[%c3_157, %c0_158] {strides = array<i32: 8, 1>} : memref<16x128xf32, #tpu.memory_space<vmem>>, vector<2x128xf32>
    %431 = vector.extract_strided_slice %430 {offsets = [0, 0], sizes = [2, 3], strides = [1, 1]} : vector<2x128xf32> to vector<2x3xf32>
    %c3_i32 = arith.constant 3 : i32
    %432 = vector.broadcast %c3_i32 : i32 to vector<2x1xi32>
    %433 = arith.cmpi sgt, %293, %432 : vector<2x1xi32>
    %cst_159 = arith.constant 0.000000e+00 : f32
    %434 = vector.broadcast %cst_159 : f32 to vector<2x3xf32>
    %435 = vector.extract_strided_slice %368 {offsets = [0, 0], sizes = [2, 1], strides = [1, 1]} : vector<2x3xf32> to vector<2x1xf32>
    %436 = vector.extract_strided_slice %261 {offsets = [0, 0], sizes = [1, 3], strides = [1, 1]} : vector<3x3xf32> to vector<1x3xf32>
    %437 = vector.broadcast %435 : vector<2x1xf32> to vector<2x3xf32>
    %438 = vector.broadcast %436 : vector<1x3xf32> to vector<2x3xf32>
    %439 = arith.mulf %437, %438 : vector<2x3xf32>
    %440 = arith.addf %434, %439 : vector<2x3xf32>
    %441 = vector.extract_strided_slice %368 {offsets = [0, 1], sizes = [2, 1], strides = [1, 1]} : vector<2x3xf32> to vector<2x1xf32>
    %442 = vector.extract_strided_slice %261 {offsets = [1, 0], sizes = [1, 3], strides = [1, 1]} : vector<3x3xf32> to vector<1x3xf32>
    %443 = vector.broadcast %441 : vector<2x1xf32> to vector<2x3xf32>
    %444 = vector.broadcast %442 : vector<1x3xf32> to vector<2x3xf32>
    %445 = arith.mulf %443, %444 : vector<2x3xf32>
    %446 = arith.addf %440, %445 : vector<2x3xf32>
    %447 = vector.extract_strided_slice %368 {offsets = [0, 2], sizes = [2, 1], strides = [1, 1]} : vector<2x3xf32> to vector<2x1xf32>
    %448 = vector.extract_strided_slice %261 {offsets = [2, 0], sizes = [1, 3], strides = [1, 1]} : vector<3x3xf32> to vector<1x3xf32>
    %449 = vector.broadcast %447 : vector<2x1xf32> to vector<2x3xf32>
    %450 = vector.broadcast %448 : vector<1x3xf32> to vector<2x3xf32>
    %451 = arith.mulf %449, %450 : vector<2x3xf32>
    %452 = arith.addf %446, %451 : vector<2x3xf32>
    %453 = arith.mulf %452, %431 : vector<2x3xf32>
    %cst_160 = arith.constant dense<0.000000e+00> : vector<2xf32>
    %454 = vector.multi_reduction <add>, %453, %cst_160 [1] : vector<2x3xf32> to vector<2xf32>
    %455 = vector.shape_cast %454 : vector<2xf32> to vector<2x1xf32>
    %456 = arith.extui %433 : vector<2x1xi1> to vector<2x1xi32>
    %457 = arith.sitofp %456 : vector<2x1xi32> to vector<2x1xf32>
    %458 = arith.mulf %457, %455 : vector<2x1xf32>
    %459 = arith.addf %396, %458 : vector<2x1xf32>
    %460 = vector.extract_strided_slice %427 {offsets = [0, 0], sizes = [2, 1], strides = [1, 1]} : vector<2x3xf32> to vector<2x1xf32>
    %461 = vector.extract_strided_slice %261 {offsets = [0, 0], sizes = [1, 3], strides = [1, 1]} : vector<3x3xf32> to vector<1x3xf32>
    %462 = vector.broadcast %460 : vector<2x1xf32> to vector<2x3xf32>
    %463 = vector.broadcast %461 : vector<1x3xf32> to vector<2x3xf32>
    %464 = arith.addf %462, %463 : vector<2x3xf32>
    %465 = vector.extract_strided_slice %427 {offsets = [0, 1], sizes = [2, 1], strides = [1, 1]} : vector<2x3xf32> to vector<2x1xf32>
    %466 = vector.extract_strided_slice %261 {offsets = [1, 0], sizes = [1, 3], strides = [1, 1]} : vector<3x3xf32> to vector<1x3xf32>
    %467 = vector.broadcast %465 : vector<2x1xf32> to vector<2x3xf32>
    %468 = vector.broadcast %466 : vector<1x3xf32> to vector<2x3xf32>
    %469 = arith.addf %467, %468 : vector<2x3xf32>
    %470 = vector.extract_strided_slice %427 {offsets = [0, 2], sizes = [2, 1], strides = [1, 1]} : vector<2x3xf32> to vector<2x1xf32>
    %471 = vector.extract_strided_slice %261 {offsets = [2, 0], sizes = [1, 3], strides = [1, 1]} : vector<3x3xf32> to vector<1x3xf32>
    %472 = vector.broadcast %470 : vector<2x1xf32> to vector<2x3xf32>
    %473 = vector.broadcast %471 : vector<1x3xf32> to vector<2x3xf32>
    %474 = arith.addf %472, %473 : vector<2x3xf32>
    %475 = arith.maximumf %464, %469 : vector<2x3xf32>
    %476 = arith.maximumf %475, %474 : vector<2x3xf32>
    %477 = arith.subf %464, %476 : vector<2x3xf32>
    %478 = math.exp %477 : vector<2x3xf32>
    %479 = arith.subf %469, %476 : vector<2x3xf32>
    %480 = math.exp %479 : vector<2x3xf32>
    %481 = arith.addf %478, %480 : vector<2x3xf32>
    %482 = arith.subf %474, %476 : vector<2x3xf32>
    %483 = math.exp %482 : vector<2x3xf32>
    %484 = arith.addf %481, %483 : vector<2x3xf32>
    %485 = math.log %484 : vector<2x3xf32>
    %486 = arith.addf %476, %485 : vector<2x3xf32>
    %487 = arith.addf %486, %429 : vector<2x3xf32>
    %488 = vector.shape_cast %433 : vector<2x1xi1> to vector<2x1xi1>
    %489 = vector.broadcast %488 : vector<2x1xi1> to vector<2x3xi1>
    %490 = arith.select %489, %487, %427 : vector<2x3xi1>, vector<2x3xf32>
    %c4 = arith.constant 4 : index
    %c0_161 = arith.constant 0 : index
    %491 = tpu.strided_load %arg22[%c4, %c0_161] {strides = array<i32: 8, 1>} : memref<16x128xf32, #tpu.memory_space<vmem>>, vector<2x128xf32>
    %492 = vector.extract_strided_slice %491 {offsets = [0, 0], sizes = [2, 3], strides = [1, 1]} : vector<2x128xf32> to vector<2x3xf32>
    %c4_162 = arith.constant 4 : index
    %c0_163 = arith.constant 0 : index
    %493 = tpu.strided_load %arg3[%c4_162, %c0_163] {strides = array<i32: 8, 1>} : memref<16x128xf32, #tpu.memory_space<vmem>>, vector<2x128xf32>
    %494 = vector.extract_strided_slice %493 {offsets = [0, 0], sizes = [2, 3], strides = [1, 1]} : vector<2x128xf32> to vector<2x3xf32>
    %c4_i32 = arith.constant 4 : i32
    %495 = vector.broadcast %c4_i32 : i32 to vector<2x1xi32>
    %496 = arith.cmpi sgt, %293, %495 : vector<2x1xi32>
    %cst_164 = arith.constant 0.000000e+00 : f32
    %497 = vector.broadcast %cst_164 : f32 to vector<2x3xf32>
    %498 = vector.extract_strided_slice %431 {offsets = [0, 0], sizes = [2, 1], strides = [1, 1]} : vector<2x3xf32> to vector<2x1xf32>
    %499 = vector.extract_strided_slice %261 {offsets = [0, 0], sizes = [1, 3], strides = [1, 1]} : vector<3x3xf32> to vector<1x3xf32>
    %500 = vector.broadcast %498 : vector<2x1xf32> to vector<2x3xf32>
    %501 = vector.broadcast %499 : vector<1x3xf32> to vector<2x3xf32>
    %502 = arith.mulf %500, %501 : vector<2x3xf32>
    %503 = arith.addf %497, %502 : vector<2x3xf32>
    %504 = vector.extract_strided_slice %431 {offsets = [0, 1], sizes = [2, 1], strides = [1, 1]} : vector<2x3xf32> to vector<2x1xf32>
    %505 = vector.extract_strided_slice %261 {offsets = [1, 0], sizes = [1, 3], strides = [1, 1]} : vector<3x3xf32> to vector<1x3xf32>
    %506 = vector.broadcast %504 : vector<2x1xf32> to vector<2x3xf32>
    %507 = vector.broadcast %505 : vector<1x3xf32> to vector<2x3xf32>
    %508 = arith.mulf %506, %507 : vector<2x3xf32>
    %509 = arith.addf %503, %508 : vector<2x3xf32>
    %510 = vector.extract_strided_slice %431 {offsets = [0, 2], sizes = [2, 1], strides = [1, 1]} : vector<2x3xf32> to vector<2x1xf32>
    %511 = vector.extract_strided_slice %261 {offsets = [2, 0], sizes = [1, 3], strides = [1, 1]} : vector<3x3xf32> to vector<1x3xf32>
    %512 = vector.broadcast %510 : vector<2x1xf32> to vector<2x3xf32>
    %513 = vector.broadcast %511 : vector<1x3xf32> to vector<2x3xf32>
    %514 = arith.mulf %512, %513 : vector<2x3xf32>
    %515 = arith.addf %509, %514 : vector<2x3xf32>
    %516 = arith.mulf %515, %494 : vector<2x3xf32>
    %cst_165 = arith.constant dense<0.000000e+00> : vector<2xf32>
    %517 = vector.multi_reduction <add>, %516, %cst_165 [1] : vector<2x3xf32> to vector<2xf32>
    %518 = vector.shape_cast %517 : vector<2xf32> to vector<2x1xf32>
    %519 = arith.extui %496 : vector<2x1xi1> to vector<2x1xi32>
    %520 = arith.sitofp %519 : vector<2x1xi32> to vector<2x1xf32>
    %521 = arith.mulf %520, %518 : vector<2x1xf32>
    %522 = arith.addf %459, %521 : vector<2x1xf32>
    %523 = vector.extract_strided_slice %490 {offsets = [0, 0], sizes = [2, 1], strides = [1, 1]} : vector<2x3xf32> to vector<2x1xf32>
    %524 = vector.extract_strided_slice %261 {offsets = [0, 0], sizes = [1, 3], strides = [1, 1]} : vector<3x3xf32> to vector<1x3xf32>
    %525 = vector.broadcast %523 : vector<2x1xf32> to vector<2x3xf32>
    %526 = vector.broadcast %524 : vector<1x3xf32> to vector<2x3xf32>
    %527 = arith.addf %525, %526 : vector<2x3xf32>
    %528 = vector.extract_strided_slice %490 {offsets = [0, 1], sizes = [2, 1], strides = [1, 1]} : vector<2x3xf32> to vector<2x1xf32>
    %529 = vector.extract_strided_slice %261 {offsets = [1, 0], sizes = [1, 3], strides = [1, 1]} : vector<3x3xf32> to vector<1x3xf32>
    %530 = vector.broadcast %528 : vector<2x1xf32> to vector<2x3xf32>
    %531 = vector.broadcast %529 : vector<1x3xf32> to vector<2x3xf32>
    %532 = arith.addf %530, %531 : vector<2x3xf32>
    %533 = vector.extract_strided_slice %490 {offsets = [0, 2], sizes = [2, 1], strides = [1, 1]} : vector<2x3xf32> to vector<2x1xf32>
    %534 = vector.extract_strided_slice %261 {offsets = [2, 0], sizes = [1, 3], strides = [1, 1]} : vector<3x3xf32> to vector<1x3xf32>
    %535 = vector.broadcast %533 : vector<2x1xf32> to vector<2x3xf32>
    %536 = vector.broadcast %534 : vector<1x3xf32> to vector<2x3xf32>
    %537 = arith.addf %535, %536 : vector<2x3xf32>
    %538 = arith.maximumf %527, %532 : vector<2x3xf32>
    %539 = arith.maximumf %538, %537 : vector<2x3xf32>
    %540 = arith.subf %527, %539 : vector<2x3xf32>
    %541 = math.exp %540 : vector<2x3xf32>
    %542 = arith.subf %532, %539 : vector<2x3xf32>
    %543 = math.exp %542 : vector<2x3xf32>
    %544 = arith.addf %541, %543 : vector<2x3xf32>
    %545 = arith.subf %537, %539 : vector<2x3xf32>
    %546 = math.exp %545 : vector<2x3xf32>
    %547 = arith.addf %544, %546 : vector<2x3xf32>
    %548 = math.log %547 : vector<2x3xf32>
    %549 = arith.addf %539, %548 : vector<2x3xf32>
    %550 = arith.addf %549, %492 : vector<2x3xf32>
    %551 = vector.shape_cast %496 : vector<2x1xi1> to vector<2x1xi1>
    %552 = vector.broadcast %551 : vector<2x1xi1> to vector<2x3xi1>
    %553 = arith.select %552, %550, %490 : vector<2x3xi1>, vector<2x3xf32>
    %c5 = arith.constant 5 : index
    %c0_166 = arith.constant 0 : index
    %554 = tpu.strided_load %arg22[%c5, %c0_166] {strides = array<i32: 8, 1>} : memref<16x128xf32, #tpu.memory_space<vmem>>, vector<2x128xf32>
    %555 = vector.extract_strided_slice %554 {offsets = [0, 0], sizes = [2, 3], strides = [1, 1]} : vector<2x128xf32> to vector<2x3xf32>
    %c5_167 = arith.constant 5 : index
    %c0_168 = arith.constant 0 : index
    %556 = tpu.strided_load %arg3[%c5_167, %c0_168] {strides = array<i32: 8, 1>} : memref<16x128xf32, #tpu.memory_space<vmem>>, vector<2x128xf32>
    %557 = vector.extract_strided_slice %556 {offsets = [0, 0], sizes = [2, 3], strides = [1, 1]} : vector<2x128xf32> to vector<2x3xf32>
    %c5_i32 = arith.constant 5 : i32
    %558 = vector.broadcast %c5_i32 : i32 to vector<2x1xi32>
    %559 = arith.cmpi sgt, %293, %558 : vector<2x1xi32>
    %cst_169 = arith.constant 0.000000e+00 : f32
    %560 = vector.broadcast %cst_169 : f32 to vector<2x3xf32>
    %561 = vector.extract_strided_slice %494 {offsets = [0, 0], sizes = [2, 1], strides = [1, 1]} : vector<2x3xf32> to vector<2x1xf32>
    %562 = vector.extract_strided_slice %261 {offsets = [0, 0], sizes = [1, 3], strides = [1, 1]} : vector<3x3xf32> to vector<1x3xf32>
    %563 = vector.broadcast %561 : vector<2x1xf32> to vector<2x3xf32>
    %564 = vector.broadcast %562 : vector<1x3xf32> to vector<2x3xf32>
    %565 = arith.mulf %563, %564 : vector<2x3xf32>
    %566 = arith.addf %560, %565 : vector<2x3xf32>
    %567 = vector.extract_strided_slice %494 {offsets = [0, 1], sizes = [2, 1], strides = [1, 1]} : vector<2x3xf32> to vector<2x1xf32>
    %568 = vector.extract_strided_slice %261 {offsets = [1, 0], sizes = [1, 3], strides = [1, 1]} : vector<3x3xf32> to vector<1x3xf32>
    %569 = vector.broadcast %567 : vector<2x1xf32> to vector<2x3xf32>
    %570 = vector.broadcast %568 : vector<1x3xf32> to vector<2x3xf32>
    %571 = arith.mulf %569, %570 : vector<2x3xf32>
    %572 = arith.addf %566, %571 : vector<2x3xf32>
    %573 = vector.extract_strided_slice %494 {offsets = [0, 2], sizes = [2, 1], strides = [1, 1]} : vector<2x3xf32> to vector<2x1xf32>
    %574 = vector.extract_strided_slice %261 {offsets = [2, 0], sizes = [1, 3], strides = [1, 1]} : vector<3x3xf32> to vector<1x3xf32>
    %575 = vector.broadcast %573 : vector<2x1xf32> to vector<2x3xf32>
    %576 = vector.broadcast %574 : vector<1x3xf32> to vector<2x3xf32>
    %577 = arith.mulf %575, %576 : vector<2x3xf32>
    %578 = arith.addf %572, %577 : vector<2x3xf32>
    %579 = arith.mulf %578, %557 : vector<2x3xf32>
    %cst_170 = arith.constant dense<0.000000e+00> : vector<2xf32>
    %580 = vector.multi_reduction <add>, %579, %cst_170 [1] : vector<2x3xf32> to vector<2xf32>
    %581 = vector.shape_cast %580 : vector<2xf32> to vector<2x1xf32>
    %582 = arith.extui %559 : vector<2x1xi1> to vector<2x1xi32>
    %583 = arith.sitofp %582 : vector<2x1xi32> to vector<2x1xf32>
    %584 = arith.mulf %583, %581 : vector<2x1xf32>
    %585 = arith.addf %522, %584 : vector<2x1xf32>
    %586 = vector.extract_strided_slice %553 {offsets = [0, 0], sizes = [2, 1], strides = [1, 1]} : vector<2x3xf32> to vector<2x1xf32>
    %587 = vector.extract_strided_slice %261 {offsets = [0, 0], sizes = [1, 3], strides = [1, 1]} : vector<3x3xf32> to vector<1x3xf32>
    %588 = vector.broadcast %586 : vector<2x1xf32> to vector<2x3xf32>
    %589 = vector.broadcast %587 : vector<1x3xf32> to vector<2x3xf32>
    %590 = arith.addf %588, %589 : vector<2x3xf32>
    %591 = vector.extract_strided_slice %553 {offsets = [0, 1], sizes = [2, 1], strides = [1, 1]} : vector<2x3xf32> to vector<2x1xf32>
    %592 = vector.extract_strided_slice %261 {offsets = [1, 0], sizes = [1, 3], strides = [1, 1]} : vector<3x3xf32> to vector<1x3xf32>
    %593 = vector.broadcast %591 : vector<2x1xf32> to vector<2x3xf32>
    %594 = vector.broadcast %592 : vector<1x3xf32> to vector<2x3xf32>
    %595 = arith.addf %593, %594 : vector<2x3xf32>
    %596 = vector.extract_strided_slice %553 {offsets = [0, 2], sizes = [2, 1], strides = [1, 1]} : vector<2x3xf32> to vector<2x1xf32>
    %597 = vector.extract_strided_slice %261 {offsets = [2, 0], sizes = [1, 3], strides = [1, 1]} : vector<3x3xf32> to vector<1x3xf32>
    %598 = vector.broadcast %596 : vector<2x1xf32> to vector<2x3xf32>
    %599 = vector.broadcast %597 : vector<1x3xf32> to vector<2x3xf32>
    %600 = arith.addf %598, %599 : vector<2x3xf32>
    %601 = arith.maximumf %590, %595 : vector<2x3xf32>
    %602 = arith.maximumf %601, %600 : vector<2x3xf32>
    %603 = arith.subf %590, %602 : vector<2x3xf32>
    %604 = math.exp %603 : vector<2x3xf32>
    %605 = arith.subf %595, %602 : vector<2x3xf32>
    %606 = math.exp %605 : vector<2x3xf32>
    %607 = arith.addf %604, %606 : vector<2x3xf32>
    %608 = arith.subf %600, %602 : vector<2x3xf32>
    %609 = math.exp %608 : vector<2x3xf32>
    %610 = arith.addf %607, %609 : vector<2x3xf32>
    %611 = math.log %610 : vector<2x3xf32>
    %612 = arith.addf %602, %611 : vector<2x3xf32>
    %613 = arith.addf %612, %555 : vector<2x3xf32>
    %614 = vector.shape_cast %559 : vector<2x1xi1> to vector<2x1xi1>
    %615 = vector.broadcast %614 : vector<2x1xi1> to vector<2x3xi1>
    %616 = arith.select %615, %613, %553 : vector<2x3xi1>, vector<2x3xf32>
    %c6 = arith.constant 6 : index
    %c0_171 = arith.constant 0 : index
    %617 = tpu.strided_load %arg22[%c6, %c0_171] {strides = array<i32: 8, 1>} : memref<16x128xf32, #tpu.memory_space<vmem>>, vector<2x128xf32>
    %618 = vector.extract_strided_slice %617 {offsets = [0, 0], sizes = [2, 3], strides = [1, 1]} : vector<2x128xf32> to vector<2x3xf32>
    %c6_172 = arith.constant 6 : index
    %c0_173 = arith.constant 0 : index
    %619 = tpu.strided_load %arg3[%c6_172, %c0_173] {strides = array<i32: 8, 1>} : memref<16x128xf32, #tpu.memory_space<vmem>>, vector<2x128xf32>
    %620 = vector.extract_strided_slice %619 {offsets = [0, 0], sizes = [2, 3], strides = [1, 1]} : vector<2x128xf32> to vector<2x3xf32>
    %c6_i32 = arith.constant 6 : i32
    %621 = vector.broadcast %c6_i32 : i32 to vector<2x1xi32>
    %622 = arith.cmpi sgt, %293, %621 : vector<2x1xi32>
    %cst_174 = arith.constant 0.000000e+00 : f32
    %623 = vector.broadcast %cst_174 : f32 to vector<2x3xf32>
    %624 = vector.extract_strided_slice %557 {offsets = [0, 0], sizes = [2, 1], strides = [1, 1]} : vector<2x3xf32> to vector<2x1xf32>
    %625 = vector.extract_strided_slice %261 {offsets = [0, 0], sizes = [1, 3], strides = [1, 1]} : vector<3x3xf32> to vector<1x3xf32>
    %626 = vector.broadcast %624 : vector<2x1xf32> to vector<2x3xf32>
    %627 = vector.broadcast %625 : vector<1x3xf32> to vector<2x3xf32>
    %628 = arith.mulf %626, %627 : vector<2x3xf32>
    %629 = arith.addf %623, %628 : vector<2x3xf32>
    %630 = vector.extract_strided_slice %557 {offsets = [0, 1], sizes = [2, 1], strides = [1, 1]} : vector<2x3xf32> to vector<2x1xf32>
    %631 = vector.extract_strided_slice %261 {offsets = [1, 0], sizes = [1, 3], strides = [1, 1]} : vector<3x3xf32> to vector<1x3xf32>
    %632 = vector.broadcast %630 : vector<2x1xf32> to vector<2x3xf32>
    %633 = vector.broadcast %631 : vector<1x3xf32> to vector<2x3xf32>
    %634 = arith.mulf %632, %633 : vector<2x3xf32>
    %635 = arith.addf %629, %634 : vector<2x3xf32>
    %636 = vector.extract_strided_slice %557 {offsets = [0, 2], sizes = [2, 1], strides = [1, 1]} : vector<2x3xf32> to vector<2x1xf32>
    %637 = vector.extract_strided_slice %261 {offsets = [2, 0], sizes = [1, 3], strides = [1, 1]} : vector<3x3xf32> to vector<1x3xf32>
    %638 = vector.broadcast %636 : vector<2x1xf32> to vector<2x3xf32>
    %639 = vector.broadcast %637 : vector<1x3xf32> to vector<2x3xf32>
    %640 = arith.mulf %638, %639 : vector<2x3xf32>
    %641 = arith.addf %635, %640 : vector<2x3xf32>
    %642 = arith.mulf %641, %620 : vector<2x3xf32>
    %cst_175 = arith.constant dense<0.000000e+00> : vector<2xf32>
    %643 = vector.multi_reduction <add>, %642, %cst_175 [1] : vector<2x3xf32> to vector<2xf32>
    %644 = vector.shape_cast %643 : vector<2xf32> to vector<2x1xf32>
    %645 = arith.extui %622 : vector<2x1xi1> to vector<2x1xi32>
    %646 = arith.sitofp %645 : vector<2x1xi32> to vector<2x1xf32>
    %647 = arith.mulf %646, %644 : vector<2x1xf32>
    %648 = arith.addf %585, %647 : vector<2x1xf32>
    %649 = vector.extract_strided_slice %616 {offsets = [0, 0], sizes = [2, 1], strides = [1, 1]} : vector<2x3xf32> to vector<2x1xf32>
    %650 = vector.extract_strided_slice %261 {offsets = [0, 0], sizes = [1, 3], strides = [1, 1]} : vector<3x3xf32> to vector<1x3xf32>
    %651 = vector.broadcast %649 : vector<2x1xf32> to vector<2x3xf32>
    %652 = vector.broadcast %650 : vector<1x3xf32> to vector<2x3xf32>
    %653 = arith.addf %651, %652 : vector<2x3xf32>
    %654 = vector.extract_strided_slice %616 {offsets = [0, 1], sizes = [2, 1], strides = [1, 1]} : vector<2x3xf32> to vector<2x1xf32>
    %655 = vector.extract_strided_slice %261 {offsets = [1, 0], sizes = [1, 3], strides = [1, 1]} : vector<3x3xf32> to vector<1x3xf32>
    %656 = vector.broadcast %654 : vector<2x1xf32> to vector<2x3xf32>
    %657 = vector.broadcast %655 : vector<1x3xf32> to vector<2x3xf32>
    %658 = arith.addf %656, %657 : vector<2x3xf32>
    %659 = vector.extract_strided_slice %616 {offsets = [0, 2], sizes = [2, 1], strides = [1, 1]} : vector<2x3xf32> to vector<2x1xf32>
    %660 = vector.extract_strided_slice %261 {offsets = [2, 0], sizes = [1, 3], strides = [1, 1]} : vector<3x3xf32> to vector<1x3xf32>
    %661 = vector.broadcast %659 : vector<2x1xf32> to vector<2x3xf32>
    %662 = vector.broadcast %660 : vector<1x3xf32> to vector<2x3xf32>
    %663 = arith.addf %661, %662 : vector<2x3xf32>
    %664 = arith.maximumf %653, %658 : vector<2x3xf32>
    %665 = arith.maximumf %664, %663 : vector<2x3xf32>
    %666 = arith.subf %653, %665 : vector<2x3xf32>
    %667 = math.exp %666 : vector<2x3xf32>
    %668 = arith.subf %658, %665 : vector<2x3xf32>
    %669 = math.exp %668 : vector<2x3xf32>
    %670 = arith.addf %667, %669 : vector<2x3xf32>
    %671 = arith.subf %663, %665 : vector<2x3xf32>
    %672 = math.exp %671 : vector<2x3xf32>
    %673 = arith.addf %670, %672 : vector<2x3xf32>
    %674 = math.log %673 : vector<2x3xf32>
    %675 = arith.addf %665, %674 : vector<2x3xf32>
    %676 = arith.addf %675, %618 : vector<2x3xf32>
    %677 = vector.shape_cast %622 : vector<2x1xi1> to vector<2x1xi1>
    %678 = vector.broadcast %677 : vector<2x1xi1> to vector<2x3xi1>
    %679 = arith.select %678, %676, %616 : vector<2x3xi1>, vector<2x3xf32>
    %c7 = arith.constant 7 : index
    %c0_176 = arith.constant 0 : index
    %680 = tpu.strided_load %arg22[%c7, %c0_176] {strides = array<i32: 8, 1>} : memref<16x128xf32, #tpu.memory_space<vmem>>, vector<2x128xf32>
    %681 = vector.extract_strided_slice %680 {offsets = [0, 0], sizes = [2, 3], strides = [1, 1]} : vector<2x128xf32> to vector<2x3xf32>
    %c7_177 = arith.constant 7 : index
    %c0_178 = arith.constant 0 : index
    %682 = tpu.strided_load %arg3[%c7_177, %c0_178] {strides = array<i32: 8, 1>} : memref<16x128xf32, #tpu.memory_space<vmem>>, vector<2x128xf32>
    %683 = vector.extract_strided_slice %682 {offsets = [0, 0], sizes = [2, 3], strides = [1, 1]} : vector<2x128xf32> to vector<2x3xf32>
    %c7_i32 = arith.constant 7 : i32
    %684 = vector.broadcast %c7_i32 : i32 to vector<2x1xi32>
    %685 = arith.cmpi sgt, %293, %684 : vector<2x1xi32>
    %cst_179 = arith.constant 0.000000e+00 : f32
    %686 = vector.broadcast %cst_179 : f32 to vector<2x3xf32>
    %687 = vector.extract_strided_slice %620 {offsets = [0, 0], sizes = [2, 1], strides = [1, 1]} : vector<2x3xf32> to vector<2x1xf32>
    %688 = vector.extract_strided_slice %261 {offsets = [0, 0], sizes = [1, 3], strides = [1, 1]} : vector<3x3xf32> to vector<1x3xf32>
    %689 = vector.broadcast %687 : vector<2x1xf32> to vector<2x3xf32>
    %690 = vector.broadcast %688 : vector<1x3xf32> to vector<2x3xf32>
    %691 = arith.mulf %689, %690 : vector<2x3xf32>
    %692 = arith.addf %686, %691 : vector<2x3xf32>
    %693 = vector.extract_strided_slice %620 {offsets = [0, 1], sizes = [2, 1], strides = [1, 1]} : vector<2x3xf32> to vector<2x1xf32>
    %694 = vector.extract_strided_slice %261 {offsets = [1, 0], sizes = [1, 3], strides = [1, 1]} : vector<3x3xf32> to vector<1x3xf32>
    %695 = vector.broadcast %693 : vector<2x1xf32> to vector<2x3xf32>
    %696 = vector.broadcast %694 : vector<1x3xf32> to vector<2x3xf32>
    %697 = arith.mulf %695, %696 : vector<2x3xf32>
    %698 = arith.addf %692, %697 : vector<2x3xf32>
    %699 = vector.extract_strided_slice %620 {offsets = [0, 2], sizes = [2, 1], strides = [1, 1]} : vector<2x3xf32> to vector<2x1xf32>
    %700 = vector.extract_strided_slice %261 {offsets = [2, 0], sizes = [1, 3], strides = [1, 1]} : vector<3x3xf32> to vector<1x3xf32>
    %701 = vector.broadcast %699 : vector<2x1xf32> to vector<2x3xf32>
    %702 = vector.broadcast %700 : vector<1x3xf32> to vector<2x3xf32>
    %703 = arith.mulf %701, %702 : vector<2x3xf32>
    %704 = arith.addf %698, %703 : vector<2x3xf32>
    %705 = arith.mulf %704, %683 : vector<2x3xf32>
    %cst_180 = arith.constant dense<0.000000e+00> : vector<2xf32>
    %706 = vector.multi_reduction <add>, %705, %cst_180 [1] : vector<2x3xf32> to vector<2xf32>
    %707 = vector.shape_cast %706 : vector<2xf32> to vector<2x1xf32>
    %708 = arith.extui %685 : vector<2x1xi1> to vector<2x1xi32>
    %709 = arith.sitofp %708 : vector<2x1xi32> to vector<2x1xf32>
    %710 = arith.mulf %709, %707 : vector<2x1xf32>
    %711 = arith.addf %648, %710 : vector<2x1xf32>
    %712 = vector.extract_strided_slice %679 {offsets = [0, 0], sizes = [2, 1], strides = [1, 1]} : vector<2x3xf32> to vector<2x1xf32>
    %713 = vector.extract_strided_slice %261 {offsets = [0, 0], sizes = [1, 3], strides = [1, 1]} : vector<3x3xf32> to vector<1x3xf32>
    %714 = vector.broadcast %712 : vector<2x1xf32> to vector<2x3xf32>
    %715 = vector.broadcast %713 : vector<1x3xf32> to vector<2x3xf32>
    %716 = arith.addf %714, %715 : vector<2x3xf32>
    %717 = vector.extract_strided_slice %679 {offsets = [0, 1], sizes = [2, 1], strides = [1, 1]} : vector<2x3xf32> to vector<2x1xf32>
    %718 = vector.extract_strided_slice %261 {offsets = [1, 0], sizes = [1, 3], strides = [1, 1]} : vector<3x3xf32> to vector<1x3xf32>
    %719 = vector.broadcast %717 : vector<2x1xf32> to vector<2x3xf32>
    %720 = vector.broadcast %718 : vector<1x3xf32> to vector<2x3xf32>
    %721 = arith.addf %719, %720 : vector<2x3xf32>
    %722 = vector.extract_strided_slice %679 {offsets = [0, 2], sizes = [2, 1], strides = [1, 1]} : vector<2x3xf32> to vector<2x1xf32>
    %723 = vector.extract_strided_slice %261 {offsets = [2, 0], sizes = [1, 3], strides = [1, 1]} : vector<3x3xf32> to vector<1x3xf32>
    %724 = vector.broadcast %722 : vector<2x1xf32> to vector<2x3xf32>
    %725 = vector.broadcast %723 : vector<1x3xf32> to vector<2x3xf32>
    %726 = arith.addf %724, %725 : vector<2x3xf32>
    %727 = arith.maximumf %716, %721 : vector<2x3xf32>
    %728 = arith.maximumf %727, %726 : vector<2x3xf32>
    %729 = arith.subf %716, %728 : vector<2x3xf32>
    %730 = math.exp %729 : vector<2x3xf32>
    %731 = arith.subf %721, %728 : vector<2x3xf32>
    %732 = math.exp %731 : vector<2x3xf32>
    %733 = arith.addf %730, %732 : vector<2x3xf32>
    %734 = arith.subf %726, %728 : vector<2x3xf32>
    %735 = math.exp %734 : vector<2x3xf32>
    %736 = arith.addf %733, %735 : vector<2x3xf32>
    %737 = math.log %736 : vector<2x3xf32>
    %738 = arith.addf %728, %737 : vector<2x3xf32>
    %739 = arith.addf %738, %681 : vector<2x3xf32>
    %740 = vector.shape_cast %685 : vector<2x1xi1> to vector<2x1xi1>
    %741 = vector.broadcast %740 : vector<2x1xi1> to vector<2x3xi1>
    %742 = arith.select %741, %739, %679 : vector<2x3xi1>, vector<2x3xf32>
    %743 = vector.broadcast %264 : vector<1x3xf32> to vector<2x3xf32>
    %744 = arith.addf %742, %743 : vector<2x3xf32>
    %cst_181 = arith.constant dense<0xFF800000> : vector<2xf32>
    %745 = vector.multi_reduction <maximumf>, %744, %cst_181 [1] : vector<2x3xf32> to vector<2xf32>
    %746 = vector.shape_cast %745 : vector<2xf32> to vector<2x1xf32>
    %747 = vector.broadcast %746 : vector<2x1xf32> to vector<2x3xf32>
    %748 = arith.subf %744, %747 : vector<2x3xf32>
    %749 = math.exp %748 : vector<2x3xf32>
    %cst_182 = arith.constant dense<0.000000e+00> : vector<2xf32>
    %750 = vector.multi_reduction <add>, %749, %cst_182 [1] : vector<2x3xf32> to vector<2xf32>
    %751 = vector.shape_cast %750 : vector<2xf32> to vector<2x1xf32>
    %752 = math.log %751 : vector<2x1xf32>
    %753 = arith.addf %746, %752 : vector<2x1xf32>
    %cst_183 = arith.constant dense<0.000000e+00> : vector<1xf32>
    %754 = vector.multi_reduction <add>, %281, %cst_183 [0] : vector<16x1xf32> to vector<1xf32>
    %755 = vector.shape_cast %754 : vector<1xf32> to vector<1x1xf32>
    %cst_184 = arith.constant dense<0.000000e+00> : vector<1xf32>
    %756 = vector.multi_reduction <add>, %711, %cst_184 [0] : vector<2x1xf32> to vector<1xf32>
    %757 = vector.shape_cast %756 : vector<1xf32> to vector<1x1xf32>
    %758 = arith.addf %755, %757 : vector<1x1xf32>
    %cst_185 = arith.constant dense<0.000000e+00> : vector<1xf32>
    %759 = vector.multi_reduction <add>, %753, %cst_185 [0] : vector<2x1xf32> to vector<1xf32>
    %760 = vector.shape_cast %759 : vector<1xf32> to vector<1x1xf32>
    %761 = arith.subf %760, %758 : vector<1x1xf32>
    %c0_186 = arith.constant 0 : index
    %c0_187 = arith.constant 0 : index
    %762 = vector.load %arg21[%c0_186, %c0_187] : memref<1x1xf32, #tpu.memory_space<vmem>>, vector<1x1xf32>
    tpu.vector_store %arg21[%c0_186, %c0_187], %761 {strides = array<i32>} : memref<1x1xf32, #tpu.memory_space<vmem>>, vector<1x1xf32>,
    return
  }
  func.func @transform_0(%arg0: i32, %arg1: memref<2xi32, #tpu.memory_space<smem>>) -> (i32, i32) {
    %c0_i32 = arith.constant 0 : i32
    %c0_i32_0 = arith.constant 0 : i32
    %c0_i32_1 = arith.constant 0 : i32
    return %c0_i32, %c0_i32_0 : i32, i32
  }
  func.func @transform_1(%arg0: i32, %arg1: memref<2xi32, #tpu.memory_space<smem>>) -> (i32, i32) {
    %c0_i32 = arith.constant 0 : i32
    %c0_i32_0 = arith.constant 0 : i32
    %c0_i32_1 = arith.constant 0 : i32
    return %c0_i32, %c0_i32_0 : i32, i32
  }
  func.func @transform_2(%arg0: i32, %arg1: memref<2xi32, #tpu.memory_space<smem>>) -> (i32, i32, i32) {
    %c0_i32 = arith.constant 0 : i32
    %c0_i32_0 = arith.constant 0 : i32
    %c0_i32_1 = arith.constant 0 : i32
    %c0_i32_2 = arith.constant 0 : i32
    return %c0_i32, %c0_i32_0, %c0_i32_1 : i32, i32, i32
  }
  func.func @transform_3(%arg0: i32, %arg1: memref<2xi32, #tpu.memory_space<smem>>) -> (i32, i32, i32) {
    %c0_i32 = arith.constant 0 : i32
    %c0_i32_0 = arith.constant 0 : i32
    %c0_i32_1 = arith.constant 0 : i32
    %c0_i32_2 = arith.constant 0 : i32
    return %c0_i32, %c0_i32_0, %c0_i32_1 : i32, i32, i32
  }
  func.func @transform_4(%arg0: i32, %arg1: memref<2xi32, #tpu.memory_space<smem>>) -> (i32, i32, i32) {
    %c0_i32 = arith.constant 0 : i32
    %c0_i32_0 = arith.constant 0 : i32
    %c0_i32_1 = arith.constant 0 : i32
    %c0_i32_2 = arith.constant 0 : i32
    return %c0_i32, %c0_i32_0, %c0_i32_1 : i32, i32, i32
  }
  func.func @transform_5(%arg0: i32, %arg1: memref<2xi32, #tpu.memory_space<smem>>) -> (i32, i32, i32) {
    %c0_i32 = arith.constant 0 : i32
    %c0_i32_0 = arith.constant 0 : i32
    %c0_i32_1 = arith.constant 0 : i32
    %c0_i32_2 = arith.constant 0 : i32
    return %c0_i32, %c0_i32_0, %c0_i32_1 : i32, i32, i32
  }
  func.func @transform_6(%arg0: i32, %arg1: memref<2xi32, #tpu.memory_space<smem>>) -> (i32, i32, i32) {
    %c0_i32 = arith.constant 0 : i32
    %c0_i32_0 = arith.constant 0 : i32
    %c0_i32_1 = arith.constant 0 : i32
    %c0_i32_2 = arith.constant 0 : i32
    return %c0_i32, %c0_i32_0, %c0_i32_1 : i32, i32, i32
  }
  func.func @transform_7(%arg0: i32, %arg1: memref<2xi32, #tpu.memory_space<smem>>) -> (i32, i32, i32) {
    %c0_i32 = arith.constant 0 : i32
    %c0_i32_0 = arith.constant 0 : i32
    %c0_i32_1 = arith.constant 0 : i32
    %c0_i32_2 = arith.constant 0 : i32
    return %c0_i32, %c0_i32_0, %c0_i32_1 : i32, i32, i32
  }
  func.func @transform_8(%arg0: i32, %arg1: memref<2xi32, #tpu.memory_space<smem>>) -> (i32, i32, i32) {
    %c0_i32 = arith.constant 0 : i32
    %c0_i32_0 = arith.constant 0 : i32
    %c0_i32_1 = arith.constant 0 : i32
    %c0_i32_2 = arith.constant 0 : i32
    return %c0_i32, %c0_i32_0, %c0_i32_1 : i32, i32, i32
  }
  func.func @transform_9(%arg0: i32, %arg1: memref<2xi32, #tpu.memory_space<smem>>) -> (i32, i32) {
    %c0_i32 = arith.constant 0 : i32
    %c0_i32_0 = arith.constant 0 : i32
    %c0_i32_1 = arith.constant 0 : i32
    return %c0_i32, %c0_i32_0 : i32, i32
  }
  func.func @transform_10(%arg0: i32, %arg1: memref<2xi32, #tpu.memory_space<smem>>) -> (i32, i32) {
    %c0_i32 = arith.constant 0 : i32
    %c0_i32_0 = arith.constant 0 : i32
    %c0_i32_1 = arith.constant 0 : i32
    return %c0_i32, %c0_i32_0 : i32, i32
  }
  func.func @transform_11(%arg0: i32, %arg1: memref<2xi32, #tpu.memory_space<smem>>) -> (i32, i32) {
    %c0_i32 = arith.constant 0 : i32
    %c0_i32_0 = arith.constant 0 : i32
    %c0_i32_1 = arith.constant 0 : i32
    return %c0_i32, %c0_i32_0 : i32, i32
  }
  func.func @transform_12(%arg0: i32, %arg1: memref<2xi32, #tpu.memory_space<smem>>) -> (i32, i32) {
    %c0_i32 = arith.constant 0 : i32
    %c0_i32_0 = arith.constant 0 : i32
    %c0_i32_1 = arith.constant 0 : i32
    return %c0_i32, %c0_i32_0 : i32, i32
  }
  func.func @transform_13(%arg0: i32, %arg1: memref<2xi32, #tpu.memory_space<smem>>) -> (i32, i32) {
    %c0_i32 = arith.constant 0 : i32
    %c0_i32_0 = arith.constant 0 : i32
    %c0_i32_1 = arith.constant 0 : i32
    return %c0_i32, %c0_i32_0 : i32, i32
  }
  func.func @transform_14(%arg0: i32, %arg1: memref<2xi32, #tpu.memory_space<smem>>) -> (i32, i32) {
    %c0_i32 = arith.constant 0 : i32
    %c0_i32_0 = arith.constant 0 : i32
    %c0_i32_1 = arith.constant 0 : i32
    return %c0_i32, %c0_i32_0 : i32, i32
  }
  func.func @transform_15(%arg0: i32, %arg1: memref<2xi32, #tpu.memory_space<smem>>) -> (i32, i32) {
    %c0_i32 = arith.constant 0 : i32
    %c0_i32_0 = arith.constant 0 : i32
    %c0_i32_1 = arith.constant 0 : i32
    return %c0_i32, %c0_i32_0 : i32, i32
  }
  func.func @transform_16(%arg0: i32, %arg1: memref<2xi32, #tpu.memory_space<smem>>) -> (i32, i32) {
    %c0_i32 = arith.constant 0 : i32
    %c0_i32_0 = arith.constant 0 : i32
    %c0_i32_1 = arith.constant 0 : i32
    return %c0_i32, %c0_i32_0 : i32, i32
  }
  func.func @transform_17(%arg0: i32, %arg1: memref<2xi32, #tpu.memory_space<smem>>) -> (i32, i32) {
    %c0_i32 = arith.constant 0 : i32
    %c0_i32_0 = arith.constant 0 : i32
    %c0_i32_1 = arith.constant 0 : i32
    return %c0_i32, %c0_i32_0 : i32, i32
  }
  func.func @transform_18(%arg0: i32, %arg1: memref<2xi32, #tpu.memory_space<smem>>) -> (i32, i32) {
    %c0_i32 = arith.constant 0 : i32
    %c0_i32_0 = arith.constant 0 : i32
    %c0_i32_1 = arith.constant 0 : i32
    return %c0_i32, %c0_i32_0 : i32, i32
  }
  func.func @transform_19(%arg0: i32, %arg1: memref<2xi32, #tpu.memory_space<smem>>) -> (i32, i32) {
    %c0_i32 = arith.constant 0 : i32
    %c0_i32_0 = arith.constant 0 : i32
    %c0_i32_1 = arith.constant 0 : i32
    return %c0_i32, %c0_i32_0 : i32, i32
  }
  func.func @transform_20(%arg0: i32, %arg1: memref<2xi32, #tpu.memory_space<smem>>) -> (i32, i32) {
    %c0_i32 = arith.constant 0 : i32
    %c0_i32_0 = arith.constant 0 : i32
    %c0_i32_1 = arith.constant 0 : i32
    return %c0_i32, %c0_i32_0 : i32, i32
  }
}

</mosaic_0001>

<bundles_post_ra>
// kernel: tpu_custom_call.1
= control target key start
LH: loop header
LB: loop body
LE: loop exit
PB: predicated region body
PF: predicated region fallthrough
CT: control target
= control target key end

     0   :  { %s2963_s0 = inlined_call_operand.vmem [shape: s32[2], index: 0, kind: input, shape index: {}]   ;;  %s2964_s1 = inlined_call_operand.vmem [shape: f32[16,32], index: 1, kind: input, shape index: {}]   ;;  %s2965_s2 = inlined_call_operand.vmem [shape: f32[16,128], index: 2, kind: input, shape index: {}]   ;;  %s2966_s3 = inlined_call_operand.vmem [shape: bf16[2,32,16], index: 3, kind: input, shape index: {}]   ;;  %s2967_s4 = inlined_call_operand.vmem [shape: bf16[2,32,16], index: 4, kind: input, shape index: {}]   ;;  %s2968_s5 = inlined_call_operand.vmem [shape: bf16[2,32,16], index: 5, kind: input, shape index: {}]   ;;  %s2969_s6 = inlined_call_operand.vmem [shape: f32[2,1,16], index: 6, kind: input, shape index: {}]   ;;  %s2970_s7 = inlined_call_operand.vmem [shape: f32[2,1,16], index: 7, kind: input, shape index: {}]   ;;  %s2971_s8 = inlined_call_operand.vmem [shape: f32[2,1,16], index: 8, kind: input, shape index: {}]   ;;  %s2972_s9 = inlined_call_operand.vmem [shape: bf16[2,16,32], index: 9, kind: input, shape index: {}]   ;;  %s2973_s10 = inlined_call_operand.vmem [shape: f32[1,32], index: 10, kind: input, shape index: {}]   ;;  %s2974_s11 = inlined_call_operand.vmem [shape: f32[2,32], index: 11, kind: input, shape index: {}]   ;;  %s2975_s12 = inlined_call_operand.vmem [shape: bf16[32,64], index: 12, kind: input, shape index: {}]   ;;  %s2976_s13 = inlined_call_operand.vmem [shape: f32[1,64], index: 13, kind: input, shape index: {}]   ;;  %s2977_s14 = inlined_call_operand.vmem [shape: bf16[64,32], index: 14, kind: input, shape index: {}]   ;;  %s2978_s15 = inlined_call_operand.vmem [shape: f32[1,32], index: 15, kind: input, shape index: {}]   ;;  %s2979_s16 = inlined_call_operand.vmem [shape: f32[2,32], index: 16, kind: input, shape index: {}]   ;;  %s2980_s17 = inlined_call_operand.vmem [shape: bf16[32,128], index: 17, kind: input, shape index: {}]   ;;  %s2981_s18 = inlined_call_operand.vmem [shape: f32[1,128], index: 18, kind: input, shape index: {}]   ;;  %s2982_s19 = inlined_call_operand.vmem [shape: f32[8,128], index: 19, kind: input, shape index: {}]   ;;  %s2983_s20 = inlined_call_operand.hbm [shape: f32[1,1], index: 20, kind: output, shape index: {0}]   ;;  %s2984_s21 = inlined_call_operand.hbm [shape: f32[16,128], index: 21, kind: output, shape index: {1}]  }
   0x1   :  { %2990 = sst [smem:[#allocation11_spill]] %s2963_s0 }
   0x2   :  { %2991 = sst [smem:[#allocation12_spill]] %s2964_s1 }
   0x3   :  { %2992 = sst [smem:[#allocation13_spill]] %s2965_s2 }
   0x4   :  { %2993 = sst [smem:[#allocation14_spill]] %s2966_s3 }
   0x5   :  { %2994 = sst [smem:[#allocation15_spill]] %s2967_s4 }
   0x6   :  { %2995 = sst [smem:[#allocation16_spill]] %s2968_s5 }
   0x7   :  { %2996 = sst [smem:[#allocation17_spill]] %s2978_s15 }
   0x8   :  { %s2997_s26 = sld [smem:[#allocation11_spill]] }
   0xe   :  { %s27_s15 = sshll.u32 %s2997_s26, 4  ;;  %s28_s15 = int_to_ptr.vmem [resolvable:$true] %s27_s15 }
   0xf   :  { %s2244_s27 = scalar_lea.vmem %s28_s15, 16  ;;  %p2249_p1 = scmp.lt.s32.totalorder %s28_s15, %s28_s15 }
  0x10   :  { %p2245_p0 = scmp.ne.s32.totalorder %s28_s15, %s2244_s27  ;;  %p2250_p2 = scmp.lt.s32.totalorder %s2244_s27, %s2244_s27 }
  0x12   :  { %p2251_p3 = por %p2250_p2, %p2249_p1 }
  0x14   :  { %p2252_p4 = pnand %p2251_p3, %p2245_p0 }
  0x16   :  { %2255 = shalt.err (!%p2252_p4)  }
  0x17   :  { %s2302_s3 = smov [#allocation3]  }
  0x18   :  { %30 = dma.vmem_to_smem %s28_s15, 16, %s2302_s3, [#allocation2] }
  0x19   :  { %2296 = dma.done.wait [#allocation2], 16 }
  0x1a   :  { %2297 = vsyncadd [#allocation2], 4294967280 }
  0x1b   :  { %32 = sfence }
  0x1c   :  { %33 = vsyncpa [#allocation5], 0  ;;  %s2998_s0 = sld [smem:[#allocation15_spill]]  ;;  %v2303_v1 = vmov 0.0   ;;  %vm2304_vm0 = vmmov 0   ;;  %vm184_vm1 = vcmask 261120  }
  0x1d   :  { %1980 = vmatprep.subr.bf16.mxu1 %v2303_v1  ;;  %1972 = vmatprep.subr.bf16.mxu0 %v2303_v1  ;;  %s2999_s5 = sld [smem:[#allocation14_spill]] }
  0x1e   :  { %1984 = vmatprep.mubr.msk.bf16.mxu1 %vm2304_vm0, %v2303_v1  ;;  %s3000_s25 = sld [smem:[#allocation12_spill]]  ;;  %1976 = vmatprep.mubr.msk.bf16.mxu0 %vm2304_vm0, %v2303_v1 }
  0x22   :  { %v2134_v0 = vld [vmem:[%s2998_s0 + $0x8] sm:$0xff]   ;;  %v2136_v3 = vld [vmem:[%s2998_s0] sm:$0xff]  }
  0x23   :  { %v2135_v2 = vld [vmem:[%s2999_s5 + $0x8] sm:$0xff]   ;;  %1981 = vmatpush3.bf16.msra.mxu1 %v2134_v0  ;;  %v2137_v4 = vld [vmem:[%s2999_s5] sm:$0xff]  }
  0x24   :  { %1973 = vmatpush3.bf16.msra.mxu0 %v2135_v2  ;;  %1982 = vmatprep.subr.bf16.mxu1 %v2303_v1  ;;  %v2447_v5 = vld [vmem:[%s3000_s25] sm:$0xff]  ;;  %v2452_v6 = vld [vmem:[%s3000_s25 + $0x8] sm:$0xff] }
  0x25   :  { %1974 = vmatprep.subr.bf16.mxu0 %v2303_v1  ;;  %v2458_v7 = vpack.c.bf16 %v2452_v6, %v2447_v5 }
  0x27   :  { %1983 = vmatpush3.bf16.msra.mxu1 %v2136_v3 }
  0x28   :  { %1975 = vmatpush3.bf16.msra.mxu0 %v2137_v4  ;;  %1996 = vmatprep.subr.bf16.mxu1 %v2303_v1 }
  0x29   :  { %1988 = vmatprep.subr.bf16.mxu0 %v2303_v1 }
  0x2a   :  { %1985 = vmatmul.mubr.msk.bf16.vlgmr.msra.gmra.mxu1 %vm184_vm1, %v2458_v7 }
  0x2b   :  { %1977 = vmatmul.mubr.msk.bf16.vlgmr.msra.gmra.mxu0 %vm184_vm1, %v2458_v7  ;;  %1998 = vmatprep.mubr.msk.bf16.mxu1 %vm2304_vm0, %v2303_v1 }
  0x2c   :  { %1992 = vmatprep.mubr.msk.bf16.mxu0 %vm2304_vm0, %v2303_v1 }
  0x2d   :  { %34 = vsyncpa [#allocation7], 0  ;;  %v1852_v10 = vld [vmem:[%s2970_s7] ss:$0 sm:$0xff]  ;;  %vm359_vm2 = vcmask 130048   ;;  %s3001_s15 = sld [smem:[#allocation16_spill]]  ;;  %v76_v27 = vlaneseq }
  0x2e   :  { %v1848_v20 = vld [vmem:[%s2969_s6] ss:$0 sm:$0xff]  ;;  %s2493_s24 = sld [smem:[#allocation3 + $0x1]]  ;;  %v2305_v32 = vmov -1e+09   ;;  %v2141_v62 = vld [vmem:[%s2999_s5 + $0x18] sm:$0xff]  }
  0x2f   :  { %s2495_s2 = sld [smem:[#allocation3]]  ;;  %v143_v28 = vand.u32 127, %v76_v27  ;;  %v1856_v54 = vld [vmem:[%s2971_s8] ss:$0 sm:$0xff]  ;;  %v2143_v63 = vld [vmem:[%s2999_s5 + $0x10] sm:$0xff]   ;;  %vm1083_vm7 = vcmask 523264  }
  0x30   :  { %s3002_s30 = sld [smem:[#allocation17_spill]] }
  0x31   :  { %vm151_vm4 = vcmp.ge.s32.totalorder %v143_v28, 8 }
  0x33   :  { %v2138_v25 = vld [vmem:[%s3001_s15 + $0x8] sm:$0xff]   ;;  %v2139_v26 = vld [vmem:[%s3001_s15] sm:$0xff]  }
  0x34   :  { %1989 = vmatpush3.bf16.msra.mxu0 %v2138_v25  ;;  %s112_s25 = sadd.s32 8, %s2493_s24 }
  0x35   :  { %1990 = vmatprep.subr.bf16.mxu0 %v2303_v1  ;;  %v2500_v29 = vstv %s2495_s2  ;;  %v2502_v30 = vstv %s112_s25  ;;  %s1840_s29 = sadd.s32 4294967295, %s2495_s2 }
  0x36   :  { %vm145_vm3 = vcmp.lt.s32.totalorder %v143_v28, %v2500_v29  ;;  %vm152_vm5 = vcmp.lt.s32.totalorder %v143_v28, %v2502_v30  ;;  %v1876_v28 = vld [vmem:[%s2970_s7 + $0x1] ss:$0 sm:$0xff] }
  0x37   :  { %v2506_v33 = vsel %vm145_vm3, 0.0, %v2305_v32  ;;  %vm153_vm6 = vmand %vm151_vm4, %vm152_vm5 }
  0x38   :  { %1991 = vmatpush3.bf16.msra.mxu0 %v2139_v26  ;;  %v2509_v38 = vsel %vm153_vm6, 0.0, %v2305_v32 }
  0x39   :  { %2002 = vmatprep.subr.bf16.mxu0 %v2303_v1 }
  0x3b   :  { %1993 = vmatmul.mubr.msk.bf16.vlgmr.msra.gmra.mxu0 %vm184_vm1, %v2458_v7 }
  0x3c   :  { %2004 = vmatprep.mubr.msk.bf16.mxu0 %vm2304_vm0, %v2303_v1 }
  0xea   :  { %v286_v8 = vpop.f32.mrf.mxu1 }
  0xeb   :  { %v222_v9 = vpop.f32.mrf.mxu0  ;;  %v287_v14 = vadd.f32 %v1852_v10, %v286_v8 }
  0xec   :  { %v1986_v11 = vpop.f32.mrf.mxu1  ;;  %v223_v22 = vadd.f32 %v1848_v20, %v222_v9 }
  0xed   :  { %v1978_v12 = vpop.f32.mrf.mxu0 }
  0xee   :  { %v289_v13 = vpop.f32.mrf.mxu1  ;;  %v2142_v12 = vld [vmem:[%s2998_s0 + $0x10] sm:$0xff]  }
  0xef   :  { %v290_v15 = vadd.f32 %v1852_v10, %v289_v13  ;;  %v225_v16 = vpop.f32.mrf.mxu0  ;;  %v2140_v10 = vld [vmem:[%s2998_s0 + $0x18] sm:$0xff]   ;;  %v1867_v13 = vld [vmem:[%s2969_s6 + $0x1] ss:$0 sm:$0xff]  ;;  %s3003_s6 = sld [smem:[#allocation13_spill]] }
  0xf0   :  { %v1987_v17 = vpop.f32.mrf.mxu1  ;;  %v226_v23 = vadd.f32 %v1848_v20, %v225_v16 }
  0xf1   :  { %v358_v18 = vpack.c.bf16 %v290_v15, %v287_v14  ;;  %v1979_v19 = vpop.f32.mrf.mxu0 }
  0xf2   :  { %v357_v24 = vpack.c.bf16 %v226_v23, %v223_v22 }
  0xf3   :  { %v364_v21 = vsel %vm359_vm2, %v358_v18, 0 }
  0xf4   :  { %1997 = vmatpush3.bf16.xpose.msra.mxu1 %v364_v21 }
  0xf5   :  { %2008 = vmatprep.subr.bf16.mxu1 %v2303_v1 }
  0xfb   :  { %1999 = vmatmul.mubr.msk.bf16.vlgmr.msra.gmra.mxu1 %vm359_vm2, %v357_v24  ;;  %v350_v55 = vpop.f32.mrf.mxu0 }
  0xfc   :  { %2012 = vmatprep.mubr.msk.bf16.mxu1 %vm2304_vm0, %v2303_v1  ;;  %v351_v57 = vadd.f32 %v1856_v54, %v350_v55  ;;  %2009 = vmatpush3.bf16.msra.mxu1 %v2141_v62 }
  0xfd   :  { %v1994_v56 = vpop.f32.mrf.mxu0  ;;  %2010 = vmatprep.subr.bf16.mxu1 %v2303_v1 }
  0xff   :  { %v353_v58 = vpop.f32.mrf.mxu0 }
 0x100   :  { %v354_v59 = vadd.f32 %v1856_v54, %v353_v58  ;;  %2011 = vmatpush3.bf16.msra.mxu1 %v2143_v63 }
 0x101   :  { %v1995_v60 = vpop.f32.mrf.mxu0  ;;  %2024 = vmatprep.subr.bf16.mxu1 %v2303_v1 }
 0x102   :  { %v434_v61 = vpack.c.bf16 %v354_v59, %v351_v57 }
 0x103   :  { %2013 = vmatmul.mubr.msk.bf16.vlgmr.msra.gmra.mxu1 %vm184_vm1, %v2458_v7 }
 0x104   :  { %2003 = vmatpush3.bf16.msra.mxu0 %v434_v61  ;;  %2028 = vmatprep.mubr.msk.bf16.mxu1 %vm2304_vm0, %v2303_v1 }
 0x105   :  { %2016 = vmatprep.subr.bf16.mxu0 %v2303_v1 }
 0x1bb   :  { %v400_v31 = vpop.f32.mrf.mxu1 }
 0x1bc   :  { %v407_v34 = vmul.f32 0.25, %v400_v31 }
 0x1bd   :  { %v2000_v35 = vpop.f32.mrf.mxu1 }
 0x1be   :  { %v409_v36 = vadd.f32 %v407_v34, %v2506_v33 }
 0x1bf   :  { %v403_v37 = vpop.f32.mrf.mxu1 }
 0x1c0   :  { %v408_v39 = vmul.f32 0.25, %v403_v37  ;;  %v411_v40 = vsel %vm359_vm2, %v409_v36, -inf }
 0x1c1   :  { %412 = vmax.xlane.f32.xlu0 %v411_v40  ;;  %v2001_v41 = vpop.f32.mrf.mxu1  ;;  %v2144_v40 = vld [vmem:[%s3001_s15 + $0x18] sm:$0xff]  }
 0x1c2   :  { %v410_v42 = vadd.f32 %v408_v39, %v2509_v38  ;;  %2025 = vmatpush3.bf16.msra.mxu1 %v2144_v40  ;;  %v2145_v41 = vld [vmem:[%s3001_s15 + $0x10] sm:$0xff]  }
 0x1c3   :  { %v541_v14 = vpop.f32.mrf.mxu1  ;;  %2026 = vmatprep.subr.bf16.mxu1 %v2303_v1 }
 0x1c4   :  { %v414_v43 = vsel %vm359_vm2, %v410_v42, -inf  ;;  %v542_v16 = vadd.f32 %v1867_v13, %v541_v14 }
 0x1c5   :  { %415 = vmax.xlane.f32.xlu0 %v414_v43  ;;  %v2014_v15 = vpop.f32.mrf.mxu1 }
 0x1c6   :  { %2027 = vmatpush3.bf16.msra.mxu1 %v2145_v41  ;;  %v2147_v15 = vld [vmem:[%s2972_s9 + $0x8] sm:$0xff]  }
 0x1c7   :  { %v544_v17 = vpop.f32.mrf.mxu1  ;;  %2038 = vmatprep.subr.bf16.mxu1 %v2303_v1 }
 0x1c8   :  { %v545_v18 = vadd.f32 %v1867_v13, %v544_v17  ;;  %v2146_v13 = vld [vmem:[%s2972_s9] sm:$0xff]  }
 0x1c9   :  { %v2015_v19 = vpop.f32.mrf.mxu1  ;;  %2029 = vmatmul.mubr.msk.bf16.vlgmr.msra.gmra.mxu1 %vm184_vm1, %v2458_v7 }
 0x1ca   :  { %v680_v20 = vpack.c.bf16 %v545_v18, %v542_v16  ;;  %2040 = vmatprep.mubr.msk.bf16.mxu1 %vm2304_vm0, %v2303_v1 }
 0x24a   :  { %v413_v44 = vpop.xlane.xlu0 %412 }
 0x24b   :  { %v417_v45 = vsub.f32 %v409_v36, %v413_v44 }
 0x24d   :  { %v419_v46 = vmul.f32 1.442695, %v417_v45 }
 0x24e   :  { %v416_v47 = vpop.xlane.xlu0 %415 }
 0x24f   :  { %2156 = vpow2.f32 %v419_v46  ;;  %v418_v48 = vsub.f32 %v410_v42, %v416_v47 }
 0x251   :  { %v421_v49 = vmul.f32 1.442695, %v418_v48 }
 0x253   :  { %2158 = vpow2.f32 %v421_v49 }
 0x25c   :  { %v2157_v50 = vpop.eup %2156 }
 0x25d   :  { %v423_v51 = vsel %vm359_vm2, %v2157_v50, 0.0 }
 0x25e   :  { %424 = vadd.xlane.f32.xlu1 %v423_v51 }
 0x260   :  { %v2159_v52 = vpop.eup %2158 }
 0x261   :  { %v426_v53 = vsel %vm359_vm2, %v2159_v52, 0.0 }
 0x262   :  { %427 = vadd.xlane.f32.xlu1 %v426_v53 }
 0x289   :  { %v673_v60 = vpop.f32.mrf.mxu1 }
 0x28b   :  { %v2030_v61 = vpop.f32.mrf.mxu1 }
 0x28d   :  { %v676_v63 = vpop.f32.mrf.mxu1 }
 0x2e7   :  { %v425_v0 = vpop.xlane.xlu1 %424 }
 0x2e8   :  { %2160 = vrcp.f32 %v425_v0 }
 0x2eb   :  { %v428_v2 = vpop.xlane.xlu1 %427 }
 0x2ec   :  { %2162 = vrcp.f32 %v428_v2  ;;  %v2031_v2 = vpop.f32.mrf.mxu1 }
 0x2f5   :  { %v2161_v3 = vpop.eup %2160 }
 0x2f6   :  { %v430_v8 = vmul.f32 %v2161_v3, %v2157_v50 }
 0x2f9   :  { %v2163_v4 = vpop.eup %2162 }
 0x2fa   :  { %v432_v9 = vmul.f32 %v2163_v4, %v2159_v52 }
 0x2fc   :  { %v433_v11 = vpack.c.bf16 %v432_v9, %v430_v8 }
 0x2fe   :  { %2005 = vmatmul.mubr.msk.bf16.vlgmr.msra.gmra.mxu0 %vm359_vm2, %v433_v11 }
 0x2ff   :  { %2017 = vmatpush3.bf16.msra.mxu0 %v2140_v10  ;;  %2020 = vmatprep.mubr.msk.bf16.mxu0 %vm2304_vm0, %v2303_v1 }
 0x300   :  { %2018 = vmatprep.subr.bf16.mxu0 %v2303_v1 }
 0x303   :  { %2019 = vmatpush3.bf16.msra.mxu0 %v2142_v12 }
 0x304   :  { %2032 = vmatprep.subr.bf16.mxu0 %v2303_v1 }
 0x306   :  { %2021 = vmatmul.mubr.msk.bf16.vlgmr.msra.gmra.mxu0 %vm184_vm1, %v2458_v7 }
 0x307   :  { %2034 = vmatprep.mubr.msk.bf16.mxu0 %vm2304_vm0, %v2303_v1 }
 0x3be   :  { %v2550_v21 = vpop.f32.mrf.mxu0 }
 0x3c0   :  { %v2006_v22 = vpop.f32.mrf.mxu0 }
 0x3c2   :  { %v2552_v23 = vpop.f32.mrf.mxu0 }
 0x3c3   :  { %v479_v24 = vpack.c.bf16 %v2552_v23, %v2550_v21 }
 0x3c4   :  { %v2007_v25 = vpop.f32.mrf.mxu0 }
 0x3c6   :  { %v607_v26 = vpop.f32.mrf.mxu0 }
 0x3c7   :  { %v608_v34 = vadd.f32 %v1876_v28, %v607_v26  ;;  %v1897_v26 = vld [vmem:[%s2973_s10] ss:$0 sm:$0xff] }
 0x3c8   :  { %v2022_v31 = vpop.f32.mrf.mxu0 }
 0x3ca   :  { %v610_v32 = vpop.f32.mrf.mxu0 }
 0x3cb   :  { %v611_v35 = vadd.f32 %v1876_v28, %v610_v32 }
 0x3cc   :  { %v2023_v36 = vpop.f32.mrf.mxu0 }
 0x3cd   :  { %v681_v37 = vpack.c.bf16 %v611_v35, %v608_v34 }
 0x3cf   :  { %v686_v39 = vsel %vm359_vm2, %v681_v37, 0 }
 0x3d0   :  { %2033 = vmatpush3.bf16.xpose.msra.mxu0 %v686_v39 }
 0x3d1   :  { %2044 = vmatprep.subr.bf16.mxu0 %v2303_v1 }
 0x3d7   :  { %2035 = vmatmul.mubr.msk.bf16.vlgmr.msra.gmra.mxu0 %vm359_vm2, %v680_v20 }
 0x3d8   :  { %2046 = vmatprep.mubr.msk.bf16.mxu0 %vm2304_vm0, %v2303_v1  ;;  %2045 = vmatpush3.bf16.msra.mxu0 %v2147_v15 }
 0x3d9   :  { %2056 = vmatprep.subr.bf16.mxu0 %v2303_v1 }
 0x497   :  { %v722_v42 = vpop.f32.mrf.mxu0 }
 0x498   :  { %v729_v43 = vmul.f32 0.25, %v722_v42 }
 0x499   :  { %v2036_v44 = vpop.f32.mrf.mxu0 }
 0x49a   :  { %v731_v45 = vadd.f32 %v729_v43, %v2506_v33 }
 0x49b   :  { %v725_v46 = vpop.f32.mrf.mxu0 }
 0x49c   :  { %v730_v47 = vmul.f32 0.25, %v725_v46  ;;  %v733_v48 = vsel %vm359_vm2, %v731_v45, -inf }
 0x49d   :  { %734 = vmax.xlane.f32.xlu0 %v733_v48  ;;  %v2037_v49 = vpop.f32.mrf.mxu0 }
 0x49e   :  { %v732_v50 = vadd.f32 %v730_v47, %v2509_v38  ;;  %v1885_v38 = vld [vmem:[%s2971_s8 + $0x1] ss:$0 sm:$0xff]  ;;  %s124_s8 = sadd.s32 7, %s2493_s24 }
 0x49f   :  { %v674_v62 = vadd.f32 %v1885_v38, %v673_v60  ;;  %v677_v0 = vadd.f32 %v1885_v38, %v676_v63 }
 0x4a0   :  { %v736_v51 = vsel %vm359_vm2, %v732_v50, -inf }
 0x4a1   :  { %737 = vmax.xlane.f32.xlu1 %v736_v51  ;;  %v756_v3 = vpack.c.bf16 %v677_v0, %v674_v62  ;;  %v1899_v62 = vld [vmem:[%s2974_s11 + $0x1] ss:$0 sm:$0xff] }
 0x4a3   :  { %2039 = vmatpush3.bf16.msra.mxu1 %v756_v3 }
 0x4a4   :  { %2050 = vmatprep.subr.bf16.mxu1 %v2303_v1 }
 0x526   :  { %v735_v7 = vpop.xlane.xlu0 %734 }
 0x527   :  { %v739_v52 = vsub.f32 %v731_v45, %v735_v7  ;;  %v2149_v7 = vld [vmem:[%s2975_s12] sm:$0xff]  }
 0x529   :  { %v741_v53 = vmul.f32 1.442695, %v739_v52 }
 0x52a   :  { %v738_v54 = vpop.xlane.xlu1 %737 }
 0x52b   :  { %2164 = vpow2.f32 %v741_v53  ;;  %v740_v55 = vsub.f32 %v732_v50, %v738_v54 }
 0x52d   :  { %v743_v56 = vmul.f32 1.442695, %v740_v55 }
 0x52f   :  { %2166 = vpow2.f32 %v743_v56 }
 0x538   :  { %v2165_v33 = vpop.eup %2164 }
 0x539   :  { %v745_v57 = vsel %vm359_vm2, %v2165_v33, 0.0 }
 0x53a   :  { %746 = vadd.xlane.f32.xlu0 %v745_v57 }
 0x53c   :  { %v2167_v58 = vpop.eup %2166 }
 0x53d   :  { %v748_v59 = vsel %vm359_vm2, %v2167_v58, 0.0 }
 0x53e   :  { %749 = vadd.xlane.f32.xlu1 %v748_v59  ;;  %v1898_v59 = vld [vmem:[%s2974_s11] ss:$0 sm:$0xff] }
 0x5c3   :  { %v747_v4 = vpop.xlane.xlu0 %746 }
 0x5c4   :  { %2168 = vrcp.f32 %v747_v4  ;;  %v2150_v4 = vld [vmem:[%s2977_s14 + $0x18] sm:$0xff]  }
 0x5c7   :  { %v750_v8 = vpop.xlane.xlu1 %749 }
 0x5c8   :  { %2170 = vrcp.f32 %v750_v8  ;;  %v2151_v8 = vld [vmem:[%s2977_s14 + $0x10] sm:$0xff]  }
 0x5d1   :  { %v2169_v9 = vpop.eup %2168 }
 0x5d2   :  { %v752_v11 = vmul.f32 %v2169_v9, %v2165_v33  ;;  %v2152_v9 = vld [vmem:[%s2977_s14 + $0x8] sm:$0xff]  }
 0x5d5   :  { %v2171_v10 = vpop.eup %2170 }
 0x5d6   :  { %v754_v12 = vmul.f32 %v2171_v10, %v2167_v58  ;;  %v2153_v10 = vld [vmem:[%s2977_s14] sm:$0xff]  }
 0x5d8   :  { %v755_v14 = vpack.c.bf16 %v754_v12, %v752_v11  ;;  %v1900_v11 = vld [vmem:[%s2976_s13] ss:$0 sm:$0xff] }
 0x5da   :  { %2041 = vmatmul.mubr.msk.bf16.vlgmr.msra.gmra.mxu1 %vm359_vm2, %v755_v14 }
 0x5db   :  { %2051 = vmatpush3.bf16.msra.mxu1 %v2146_v13  ;;  %2052 = vmatprep.mubr.msk.bf16.mxu1 %vm2304_vm0, %v2303_v1 }
 0x5dc   :  { %2064 = vmatprep.subr.bf16.mxu1 %v2303_v1 }
 0x5e2   :  { %2053 = vmatmul.mubr.msk.bf16.vlgmr.msra.gmra.mxu1 %vm359_vm2, %v479_v24 }
 0x5e3   :  { %2072 = vmatprep.mubr.msk.bf16.mxu1 %vm2304_vm0, %v2303_v1  ;;  %2065 = vmatpush3.bf16.msra.mxu1 %v2150_v4 }
 0x5e4   :  { %2066 = vmatprep.subr.bf16.mxu1 %v2303_v1 }
 0x5e7   :  { %2067 = vmatpush3.bf16.msra.mxu1 %v2151_v8  ;;  %v1910_v8 = vld [vmem:[%s2979_s16] ss:$0 sm:$0xff] }
 0x5e8   :  { %2068 = vmatprep.subr.bf16.mxu1 %v2303_v1 }
 0x5eb   :  { %2069 = vmatpush3.bf16.msra.mxu1 %v2152_v9 }
 0x5ec   :  { %2070 = vmatprep.subr.bf16.mxu1 %v2303_v1 }
 0x5ef   :  { %2071 = vmatpush3.bf16.msra.mxu1 %v2153_v10 }
 0x69a   :  { %v794_v16 = vpop.f32.mrf.mxu1 }
 0x69c   :  { %v2042_v17 = vpop.f32.mrf.mxu1 }
 0x69e   :  { %v797_v18 = vpop.f32.mrf.mxu1 }
 0x69f   :  { %v801_v19 = vpack.c.bf16 %v797_v18, %v794_v16 }
 0x6a0   :  { %v2043_v20 = vpop.f32.mrf.mxu1 }
 0x6a1   :  { %2047 = vmatmul.mubr.msk.bf16.vlgmr.msra.gmra.mxu0 %vm359_vm2, %v801_v19 }
 0x6a2   :  { %v898_v21 = vpop.f32.mrf.mxu1  ;;  %2060 = vmatprep.mubr.msk.bf16.mxu0 %vm2304_vm0, %v2303_v1 }
 0x6a4   :  { %v2054_v22 = vpop.f32.mrf.mxu1 }
 0x6a6   :  { %v901_v23 = vpop.f32.mrf.mxu1 }
 0x6a8   :  { %v2055_v24 = vpop.f32.mrf.mxu1 }
 0x761   :  { %v848_v25 = vpop.f32.mrf.mxu0 }
 0x762   :  { %v899_v28 = vadd.f32 %v898_v21, %v848_v25 }
 0x763   :  { %v2048_v31 = vpop.f32.mrf.mxu0 }
 0x764   :  { %v912_v32 = vadd.f32 %v1897_v26, %v899_v28 }
 0x765   :  { %v851_v34 = vpop.f32.mrf.mxu0 }
 0x766   :  { %v902_v35 = vadd.f32 %v901_v23, %v851_v34  ;;  %v914_v36 = vadd.f32 %v912_v32, %v2447_v5 }
 0x767   :  { %v2049_v37 = vpop.f32.mrf.mxu0 }
 0x768   :  { %v913_v39 = vadd.f32 %v1897_v26, %v902_v35  ;;  %v918_v40 = vsel %vm184_vm1, %v914_v36, 0.0 }
 0x769   :  { %919 = vadd.xlane.f32.xlu0 %v918_v40 }
 0x76a   :  { %v915_v41 = vadd.f32 %v913_v39, %v2452_v6  ;;  %v2148_v6 = vld [vmem:[%s2975_s12 + $0x8] sm:$0xff]  }
 0x76b   :  { %2057 = vmatpush3.bf16.msra.mxu0 %v2148_v6 }
 0x76c   :  { %v921_v42 = vsel %vm184_vm1, %v915_v41, 0.0  ;;  %2058 = vmatprep.subr.bf16.mxu0 %v2303_v1 }
 0x76d   :  { %922 = vadd.xlane.f32.xlu1 %v921_v42  ;;  %v1904_v42 = vld [vmem:[%s3002_s30] ss:$0 sm:$0xff] }
 0x76f   :  { %2059 = vmatpush3.bf16.msra.mxu0 %v2149_v7 }
 0x770   :  { %2076 = vmatprep.subr.bf16.mxu0 %v2303_v1 }
 0x7f2   :  { %v920_v43 = vpop.xlane.xlu0 %919 }
 0x7f3   :  { %v925_v44 = vmul.f32 0.03125, %v920_v43 }
 0x7f5   :  { %v927_v45 = vsub.f32 %v914_v36, %v925_v44 }
 0x7f6   :  { %v923_v46 = vpop.xlane.xlu1 %922 }
 0x7f7   :  { %v926_v47 = vmul.f32 0.03125, %v923_v46  ;;  %v929_v48 = vmul.f32 %v927_v45, %v927_v45 }
 0x7f9   :  { %v928_v49 = vsub.f32 %v915_v41, %v926_v47  ;;  %v931_v50 = vsel %vm184_vm1, %v929_v48, 0.0 }
 0x7fa   :  { %932 = vadd.xlane.f32.xlu0 %v931_v50 }
 0x7fb   :  { %v930_v5 = vmul.f32 %v928_v49, %v928_v49 }
 0x7fd   :  { %v934_v51 = vsel %vm184_vm1, %v930_v5, 0.0 }
 0x7fe   :  { %935 = vadd.xlane.f32.xlu1 %v934_v51 }
 0x883   :  { %v933_v52 = vpop.xlane.xlu0 %932 }
 0x884   :  { %v937_v53 = vmul.f32 0.03125, %v933_v52 }
 0x886   :  { %v939_v54 = vadd.f32 1e-12, %v937_v53 }
 0x887   :  { %v936_v55 = vpop.xlane.xlu1 %935 }
 0x888   :  { %2172 = vrsqrt.f32 %v939_v54  ;;  %v938_v56 = vmul.f32 0.03125, %v936_v55 }
 0x88a   :  { %v940_v33 = vadd.f32 1e-12, %v938_v56 }
 0x88c   :  { %2174 = vrsqrt.f32 %v940_v33 }
 0x895   :  { %v2173_v57 = vpop.eup %2172 }
 0x896   :  { %v943_v58 = vmul.f32 %v2173_v57, %v927_v45 }
 0x898   :  { %v949_v61 = vmul.f32 %v1898_v59, %v943_v58 }
 0x899   :  { %v2175_v38 = vpop.eup %2174 }
 0x89a   :  { %v944_v60 = vmul.f32 %v2175_v38, %v928_v49  ;;  %v955_v0 = vadd.f32 %v1899_v62, %v949_v61  ;;  %v2155_v38 = vld [vmem:[%s2980_s17] sm:$0xff]  }
 0x89c   :  { %v950_v63 = vmul.f32 %v1898_v59, %v944_v60  ;;  %v2154_v59 = vld [vmem:[%s2980_s17 + $0x8] sm:$0xff]   ;;  %s2309_s17 = smov [#allocation6]  }
 0x89d   :  { %s1825_s25 = sshll.u32 %s2309_s17, 4  ;;  %s1826_s25 = int_to_ptr.vmem [resolvable:$true] %s1825_s25 }
 0x89e   :  { %v956_v2 = vadd.f32 %v1899_v62, %v950_v63  ;;  %s2256_s0 = scalar_lea.vmem %s1826_s25, 256  ;;  %p2261_p6 = scmp.lt.s32.totalorder %s1826_s25, %s1826_s25 }
 0x89f   :  { %p2257_p5 = scmp.ne.s32.totalorder %s1826_s25, %s2256_s0  ;;  %p2262_p7 = scmp.lt.s32.totalorder %s2256_s0, %s2256_s0 }
 0x8a0   :  { %v957_v3 = vpack.c.bf16 %v956_v2, %v955_v0 }
 0x8a1   :  { %p2263_p8 = por %p2262_p7, %p2261_p6 }
 0x8a2   :  { %2061 = vmatmul.mubr.msk.bf16.vlgmr.msra.gmra.mxu0 %vm184_vm1, %v957_v3 }
 0x8a3   :  { %2080 = vmatprep.mubr.msk.bf16.mxu0 %vm2304_vm0, %v2303_v1  ;;  %2077 = vmatpush3.bf16.msra.mxu0 %v2154_v59  ;;  %v1284_v59 = vstv %s2493_s24  ;;  %p2264_p9 = pnand %p2263_p8, %p2257_p5 }
 0x8a4   :  { %2078 = vmatprep.subr.bf16.mxu0 %v2303_v1 }
 0x8a7   :  { %2079 = vmatpush3.bf16.msra.mxu0 %v2155_v38 }
 0x962   :  { %v1018_v12 = vpop.f32.mrf.mxu0 }
 0x963   :  { %v1019_v13 = vadd.f32 %v1900_v11, %v1018_v12  ;;  %v1911_v12 = vld [vmem:[%s2979_s16 + $0x1] ss:$0 sm:$0xff] }
 0x964   :  { %v2062_v14 = vpop.f32.mrf.mxu0 }
 0x965   :  { %v1027_v15 = vmul.f32 0.044715, %v1019_v13  ;;  %v1025_v35 = vmul.f32 0.5, %v1019_v13 }
 0x966   :  { %v1021_v16 = vpop.f32.mrf.mxu0 }
 0x967   :  { %v1029_v17 = vmul.f32 %v1027_v15, %v1019_v13  ;;  %v1022_v18 = vadd.f32 %v1900_v11, %v1021_v16 }
 0x968   :  { %v2063_v19 = vpop.f32.mrf.mxu0 }
 0x969   :  { %v1031_v20 = vmul.f32 %v1029_v17, %v1019_v13  ;;  %v1028_v21 = vmul.f32 0.044715, %v1022_v18  ;;  %v1026_v36 = vmul.f32 0.5, %v1022_v18  ;;  %v2306_v17 = vmov 1   ;;  %v1912_v19 = vld [vmem:[%s2981_s18] ss:$0 sm:$0xff] }
 0x96a   :  { %2096 = vset.pattern.permute.xlu1 %v2306_v17 }
 0x96b   :  { %v1033_v22 = vadd.f32 %v1031_v20, %v1019_v13  ;;  %v1030_v23 = vmul.f32 %v1028_v21, %v1022_v18 }
 0x96d   :  { %v1035_v24 = vmul.f32 0.7978846, %v1033_v22  ;;  %v1032_v25 = vmul.f32 %v1030_v23, %v1022_v18  ;;  %v2679_v23 = vshrl.u32 %v76_v27, 7 }
 0x96f   :  { %2176 = vtanh.f32 %v1035_v24  ;;  %v1034_v26 = vadd.f32 %v1032_v25, %v1022_v18  ;;  %v2307_v18 = vmov 0   ;;  %vm95_vm8 = vcmp.eq.s32.totalorder %v2679_v23, 0 }
 0x970   :  { %2095 = vset.pattern.permute.xlu0 %v2307_v18  ;;  %vm1282_vm9 = vcmp.eq.s32.totalorder %v2679_v23, 1  ;;  %vm89_vm2 = vcmp.lt.s32.totalorder %v2679_v23, %v2500_v29 }
 0x971   :  { %v1036_v28 = vmul.f32 0.7978846, %v1034_v26 }
 0x973   :  { %2178 = vtanh.f32 %v1036_v28  ;;  %v1251_v28 = vsub.s32 3, %v2679_v23 }
 0x97c   :  { %v2177_v31 = vpop.eup %2176 }
 0x97d   :  { %v1039_v32 = vadd.f32 1.0, %v2177_v31  ;;  %v2689_v31 = vld [vmem:[%s2982_s19] sm:$0xff] }
 0x97f   :  { %v1041_v39 = vmul.f32 %v1039_v32, %v1025_v35  ;;  %v2692_v32 = vrot.slane %v2689_v31, %v1251_v28  ;;  %v2308_v35 = vmov 2  }
 0x980   :  { %v2179_v34 = vpop.eup %2178 }
 0x981   :  { %v1040_v37 = vadd.f32 1.0, %v2179_v34 }
 0x983   :  { %v1042_v40 = vmul.f32 %v1040_v37, %v1026_v36  ;;  %v1301_v36 = vsub.s32 0, %v2679_v23  ;;  %v1311_v37 = vsub.s32 1, %v2679_v23 }
 0x985   :  { %v1043_v41 = vpack.c.bf16 %v1042_v40, %v1041_v39  ;;  %v2700_v39 = vrot.slane %v2689_v31, %v1301_v36  ;;  %v2703_v40 = vrot.slane %v2689_v31, %v1311_v37 }
 0x987   :  { %2073 = vmatmul.mubr.msk.bf16.vlgmr.msra.gmra.mxu1 %vm1083_vm7, %v1043_v41  ;;  %v1321_v41 = vsub.s32 2, %v2679_v23 }
 0xa47   :  { %v1121_v43 = vpop.f32.mrf.mxu1 }
 0xa48   :  { %v1122_v44 = vadd.f32 %v1904_v42, %v1121_v43 }
 0xa49   :  { %v2074_v45 = vpop.f32.mrf.mxu1 }
 0xa4a   :  { %v1128_v46 = vadd.f32 %v1122_v44, %v955_v0  ;;  %v2707_v44 = vrot.slane %v2689_v31, %v1321_v41 }
 0xa4b   :  { %v1124_v47 = vpop.f32.mrf.mxu1 }
 0xa4c   :  { %v1125_v48 = vadd.f32 %v1904_v42, %v1124_v47  ;;  %v1132_v49 = vsel %vm184_vm1, %v1128_v46, 0.0 }
 0xa4d   :  { %1133 = vadd.xlane.f32.xlu0 %v1132_v49  ;;  %v2075_v50 = vpop.f32.mrf.mxu1 }
 0xa4e   :  { %v1129_v5 = vadd.f32 %v1125_v48, %v956_v2 }
 0xa50   :  { %v1135_v51 = vsel %vm184_vm1, %v1129_v5, 0.0 }
 0xa51   :  { %1136 = vadd.xlane.f32.xlu1 %v1135_v51 }
 0xad6   :  { %v1134_v6 = vpop.xlane.xlu0 %1133 }
 0xad7   :  { %v1138_v7 = vmul.f32 0.03125, %v1134_v6 }
 0xad9   :  { %v1140_v52 = vsub.f32 %v1128_v46, %v1138_v7 }
 0xada   :  { %v1137_v53 = vpop.xlane.xlu1 %1136 }
 0xadb   :  { %v1139_v54 = vmul.f32 0.03125, %v1137_v53  ;;  %v1142_v55 = vmul.f32 %v1140_v52, %v1140_v52 }
 0xadd   :  { %v1141_v56 = vsub.f32 %v1129_v5, %v1139_v54  ;;  %v1144_v33 = vsel %vm184_vm1, %v1142_v55, 0.0 }
 0xade   :  { %1145 = vadd.xlane.f32.xlu0 %v1144_v33 }
 0xadf   :  { %v1143_v57 = vmul.f32 %v1141_v56, %v1141_v56 }
 0xae1   :  { %v1147_v58 = vsel %vm184_vm1, %v1143_v57, 0.0 }
 0xae2   :  { %1148 = vadd.xlane.f32.xlu1 %v1147_v58  ;;  %v1281_v58 = vsel %vm95_vm8, %v2500_v29, 0 }
 0xb67   :  { %v1146_v60 = vpop.xlane.xlu0 %1145 }
 0xb68   :  { %v1150_v61 = vmul.f32 0.03125, %v1146_v60  ;;  %v2718_v60 = vsel %vm1282_vm9, %v1284_v59, %v1281_v58  ;;  %vm1326_vm9 = vcmask 17408  }
 0xb69   :  { %vm1293_vm10 = vcmp.gt.s32.totalorder %v2718_v60, 1  ;;  %vm1373_vm11 = vcmp.gt.s32.totalorder %v2718_v60, 2  ;;  %vm1440_vm12 = vcmp.gt.s32.totalorder %v2718_v60, 3  ;;  %vm1507_vm13 = vcmp.gt.s32.totalorder %v2718_v60, 4 }
 0xb6a   :  { %v1152_v62 = vadd.f32 1e-12, %v1150_v61  ;;  %vm1574_vm14 = vcmp.gt.s32.totalorder %v2718_v60, 5 }
 0xb6b   :  { %v1149_v63 = vpop.xlane.xlu1 %1148 }
 0xb6c   :  { %2180 = vrsqrt.f32 %v1152_v62  ;;  %v1151_v0 = vmul.f32 0.03125, %v1149_v63 }
 0xb6e   :  { %v1153_v2 = vadd.f32 1e-12, %v1151_v0 }
 0xb70   :  { %2182 = vrsqrt.f32 %v1153_v2 }
 0xb79   :  { %v2181_v3 = vpop.eup %2180 }
 0xb7a   :  { %v1156_v4 = vmul.f32 %v2181_v3, %v1140_v52 }
 0xb7c   :  { %v1162_v11 = vmul.f32 %v1910_v8, %v1156_v4 }
 0xb7d   :  { %v2183_v9 = vpop.eup %2182 }
 0xb7e   :  { %v1157_v10 = vmul.f32 %v2183_v9, %v1141_v56  ;;  %v1168_v14 = vadd.f32 %v1911_v12, %v1162_v11 }
 0xb80   :  { %v1163_v13 = vmul.f32 %v1910_v8, %v1157_v10 }
 0xb82   :  { %v1169_v15 = vadd.f32 %v1911_v12, %v1163_v13 }
 0xb84   :  { %v1170_v16 = vpack.c.bf16 %v1169_v15, %v1168_v14 }
 0xb86   :  { %2081 = vmatmul.mubr.msk.bf16.vlgmr.msra.gmra.mxu0 %vm184_vm1, %v1170_v16  ;;  %vm1641_vm1 = vcmp.gt.s32.totalorder %v2718_v60, 6 }
 0xc46   :  { %v1231_v20 = vpop.f32.mrf.mxu0 }
 0xc47   :  { %v2676_v21 = vadd.f32 %v1912_v19, %v1231_v20 }
 0xc48   :  { %v2082_v22 = vpop.f32.mrf.mxu0 }
 0xc49   :  { %1238 = vst [vmem:[#allocation6] sm:$0xff] %v2676_v21 }
 0xc4a   :  { %v1234_v24 = vpop.f32.mrf.mxu0 }
 0xc4b   :  { %v2682_v25 = vadd.f32 %v1912_v19, %v1234_v24 }
 0xc4c   :  { %v2083_v26 = vpop.f32.mrf.mxu0 }
 0xc4d   :  { %1239 = vst [vmem:[#allocation6 + $0x8] sm:$0xff] %v2682_v25 }
 0xc54   :  { %v1286_v27 = vld [vmem:[#allocation6] ss:$8 sm:$0x3]  ;;  %v1290_v63 = vld [vmem:[#allocation6 + $0x1] ss:$8 sm:$0x3] }
 0xc55   :  { %v1287_v34 = vadd.f32 %v1286_v27, %v2692_v32 }
 0xc57   :  { %1341 = vperm.xlu1 %2096, %v1287_v34   ;;  %1336 = vperm.xlu0 %2095, %v1287_v34  }
 0xc5b   :  { %2097 = vset.pattern.permute.xlu1 %v2308_v35 }
 0xc5c   :  { %1346 = vperm.xlu1 %2097, %v1287_v34  }
 0xc60   :  { %2098 = vset.pattern.permute.xlu1 %v2307_v18 }
 0xcd2   :  { %v1342_v42 = vpop.permute.xlu1 %1341  ;;  %v1337_v43 = vpop.permute.xlu0 %1336 }
 0xcd3   :  { %v1344_v45 = vadd.f32 %v1342_v42, %v2703_v40  ;;  %v1339_v46 = vadd.f32 %v1337_v43, %v2700_v39  ;;  %v1370_v42 = vld [vmem:[#allocation6 + $0x2] ss:$8 sm:$0x3] }
 0xcd5   :  { %v1350_v48 = vmax.f32 %v1339_v46, %v1344_v45 }
 0xcd7   :  { %v1347_v47 = vpop.permute.xlu1 %1346 }
 0xcd8   :  { %v1349_v49 = vadd.f32 %v1347_v47, %v2707_v44 }
 0xcda   :  { %v1351_v50 = vmax.f32 %v1350_v48, %v1349_v49 }
 0xcdc   :  { %v1352_v5 = vsub.f32 %v1339_v46, %v1351_v50  ;;  %v1355_v51 = vsub.f32 %v1344_v45, %v1351_v50  ;;  %v1359_v6 = vsub.f32 %v1349_v49, %v1351_v50 }
 0xcde   :  { %v1353_v7 = vmul.f32 1.442695, %v1352_v5  ;;  %v1356_v52 = vmul.f32 1.442695, %v1355_v51  ;;  %v1360_v53 = vmul.f32 1.442695, %v1359_v6 }
 0xce0   :  { %2184 = vpow2.f32 %v1353_v7 }
 0xce1   :  { %2186 = vpow2.f32 %v1356_v52 }
 0xce2   :  { %2188 = vpow2.f32 %v1360_v53 }
 0xced   :  { %v2185_v54 = vpop.eup %2184 }
 0xcee   :  { %v2187_v55 = vpop.eup %2186 }
 0xcef   :  { %v1358_v56 = vadd.f32 %v2187_v55, %v2185_v54  ;;  %v2189_v33 = vpop.eup %2188 }
 0xcf1   :  { %v1362_v57 = vadd.f32 %v2189_v33, %v1358_v56 }
 0xcf3   :  { %2190 = vlog2.f32 %v1362_v57 }
 0xd00   :  { %v2191_v38 = vpop.eup %2190 }
 0xd01   :  { %v1364_v61 = vmul.f32 0.6931472, %v2191_v38 }
 0xd03   :  { %v1365_v62 = vadd.f32 %v1364_v61, %v1351_v50 }
 0xd05   :  { %v1366_v0 = vadd.f32 %v1365_v62, %v1290_v63 }
 0xd07   :  { %v1368_v2 = vsel %vm1293_vm10, %v1366_v0, %v1287_v34  ;;  %v1437_v0 = vld [vmem:[#allocation6 + $0x3] ss:$8 sm:$0x3] }
 0xd08   :  { %1403 = vperm.xlu1 %2098, %v1368_v2  }
 0xd0c   :  { %2099 = vset.pattern.permute.xlu1 %v2306_v17 }
 0xd0d   :  { %1408 = vperm.xlu1 %2099, %v1368_v2  }
 0xd11   :  { %2100 = vset.pattern.permute.xlu1 %v2308_v35 }
 0xd12   :  { %1413 = vperm.xlu1 %2100, %v1368_v2  }
 0xd16   :  { %2101 = vset.pattern.permute.xlu1 %v2307_v18 }
 0xd83   :  { %v1404_v3 = vpop.permute.xlu1 %1403 }
 0xd84   :  { %v1406_v9 = vadd.f32 %v1404_v3, %v2700_v39 }
 0xd88   :  { %v1409_v4 = vpop.permute.xlu1 %1408 }
 0xd89   :  { %v1411_v8 = vadd.f32 %v1409_v4, %v2703_v40 }
 0xd8b   :  { %v1417_v11 = vmax.f32 %v1406_v9, %v1411_v8 }
 0xd8d   :  { %v1414_v10 = vpop.permute.xlu1 %1413 }
 0xd8e   :  { %v1416_v12 = vadd.f32 %v1414_v10, %v2707_v44 }
 0xd90   :  { %v1418_v13 = vmax.f32 %v1417_v11, %v1416_v12 }
 0xd92   :  { %v1419_v14 = vsub.f32 %v1406_v9, %v1418_v13  ;;  %v1422_v15 = vsub.f32 %v1411_v8, %v1418_v13  ;;  %v1426_v16 = vsub.f32 %v1416_v12, %v1418_v13 }
 0xd94   :  { %v1420_v19 = vmul.f32 1.442695, %v1419_v14  ;;  %v1423_v20 = vmul.f32 1.442695, %v1422_v15  ;;  %v1427_v22 = vmul.f32 1.442695, %v1426_v16 }
 0xd96   :  { %2192 = vpow2.f32 %v1420_v19 }
 0xd97   :  { %2194 = vpow2.f32 %v1423_v20 }
 0xd98   :  { %2196 = vpow2.f32 %v1427_v22 }
 0xda3   :  { %v2193_v24 = vpop.eup %2192 }
 0xda4   :  { %v2195_v26 = vpop.eup %2194 }
 0xda5   :  { %v1425_v28 = vadd.f32 %v2195_v26, %v2193_v24  ;;  %v2197_v27 = vpop.eup %2196 }
 0xda7   :  { %v1429_v34 = vadd.f32 %v2197_v27, %v1425_v28 }
 0xda9   :  { %2198 = vlog2.f32 %v1429_v34 }
 0xdb6   :  { %v2199_v36 = vpop.eup %2198 }
 0xdb7   :  { %v1431_v37 = vmul.f32 0.6931472, %v2199_v36 }
 0xdb9   :  { %v1432_v41 = vadd.f32 %v1431_v37, %v1418_v13 }
 0xdbb   :  { %v1433_v43 = vadd.f32 %v1432_v41, %v1370_v42 }
 0xdbd   :  { %v1435_v45 = vsel %vm1373_vm11, %v1433_v43, %v1368_v2  ;;  %v1504_v43 = vld [vmem:[#allocation6 + $0x4] ss:$8 sm:$0x3] }
 0xdbe   :  { %1470 = vperm.xlu1 %2101, %v1435_v45  }
 0xdc2   :  { %2102 = vset.pattern.permute.xlu1 %v2306_v17 }
 0xdc3   :  { %1475 = vperm.xlu1 %2102, %v1435_v45  }
 0xdc7   :  { %2103 = vset.pattern.permute.xlu1 %v2308_v35 }
 0xdc8   :  { %1480 = vperm.xlu1 %2103, %v1435_v45  }
 0xdcc   :  { %2104 = vset.pattern.permute.xlu1 %v2306_v17 }
 0xe39   :  { %v1471_v46 = vpop.permute.xlu1 %1470 }
 0xe3a   :  { %v1473_v49 = vadd.f32 %v1471_v46, %v2700_v39 }
 0xe3e   :  { %v1476_v47 = vpop.permute.xlu1 %1475 }
 0xe3f   :  { %v1478_v48 = vadd.f32 %v1476_v47, %v2703_v40 }
 0xe41   :  { %v1484_v5 = vmax.f32 %v1473_v49, %v1478_v48 }
 0xe43   :  { %v1481_v50 = vpop.permute.xlu1 %1480 }
 0xe44   :  { %v1483_v51 = vadd.f32 %v1481_v50, %v2707_v44 }
 0xe46   :  { %v1485_v6 = vmax.f32 %v1484_v5, %v1483_v51 }
 0xe48   :  { %v1486_v7 = vsub.f32 %v1473_v49, %v1485_v6  ;;  %v1489_v52 = vsub.f32 %v1478_v48, %v1485_v6  ;;  %v1493_v53 = vsub.f32 %v1483_v51, %v1485_v6 }
 0xe4a   :  { %v1487_v54 = vmul.f32 1.442695, %v1486_v7  ;;  %v1490_v55 = vmul.f32 1.442695, %v1489_v52  ;;  %v1494_v56 = vmul.f32 1.442695, %v1493_v53 }
 0xe4c   :  { %2200 = vpow2.f32 %v1487_v54 }
 0xe4d   :  { %2202 = vpow2.f32 %v1490_v55 }
 0xe4e   :  { %2204 = vpow2.f32 %v1494_v56 }
 0xe59   :  { %v2201_v33 = vpop.eup %2200 }
 0xe5a   :  { %v2203_v57 = vpop.eup %2202 }
 0xe5b   :  { %v1492_v58 = vadd.f32 %v2203_v57, %v2201_v33  ;;  %v2205_v59 = vpop.eup %2204 }
 0xe5d   :  { %v1496_v38 = vadd.f32 %v2205_v59, %v1492_v58 }
 0xe5f   :  { %2206 = vlog2.f32 %v1496_v38 }
 0xe6c   :  { %v2207_v61 = vpop.eup %2206 }
 0xe6d   :  { %v1498_v62 = vmul.f32 0.6931472, %v2207_v61 }
 0xe6f   :  { %v1499_v63 = vadd.f32 %v1498_v62, %v1485_v6 }
 0xe71   :  { %v1500_v2 = vadd.f32 %v1499_v63, %v1437_v0 }
 0xe73   :  { %v1502_v3 = vsel %vm1440_vm12, %v1500_v2, %v1435_v45  ;;  %v1571_v2 = vld [vmem:[#allocation6 + $0x5] ss:$8 sm:$0x3] }
 0xe74   :  { %1542 = vperm.xlu1 %2104, %v1502_v3   ;;  %1537 = vperm.xlu0 %2095, %v1502_v3  }
 0xe78   :  { %2105 = vset.pattern.permute.xlu0 %v2308_v35  ;;  %2106 = vset.pattern.permute.xlu1 %v2307_v18 }
 0xe79   :  { %1547 = vperm.xlu0 %2105, %v1502_v3  }
 0xeef   :  { %v1543_v4 = vpop.permute.xlu1 %1542  ;;  %v1538_v8 = vpop.permute.xlu0 %1537 }
 0xef0   :  { %v1545_v9 = vadd.f32 %v1543_v4, %v2703_v40  ;;  %v1540_v10 = vadd.f32 %v1538_v8, %v2700_v39  ;;  %v1242_v8 = vld [vmem:[%s3003_s6 + $0x8] sm:$0xff] }
 0xef2   :  { %v1551_v12 = vmax.f32 %v1540_v10, %v1545_v9 }
 0xef4   :  { %v1548_v11 = vpop.permute.xlu0 %1547 }
 0xef5   :  { %v1550_v13 = vadd.f32 %v1548_v11, %v2707_v44  ;;  %v1241_v11 = vld [vmem:[%s3003_s6] sm:$0xff] }
 0xef7   :  { %v1552_v14 = vmax.f32 %v1551_v12, %v1550_v13  ;;  %v1253_v12 = vmul.f32 %v2692_v32, %v1241_v11 }
 0xef9   :  { %v1553_v15 = vsub.f32 %v1540_v10, %v1552_v14  ;;  %v1556_v16 = vsub.f32 %v1545_v9, %v1552_v14  ;;  %v1560_v19 = vsub.f32 %v1550_v13, %v1552_v14  ;;  %v1261_v9 = vsub.s32 4, %v2679_v23 }
 0xefa   :  { %v1244_v10 = vmul.f32 %v1242_v8, %v2682_v25 }
 0xefb   :  { %v1554_v20 = vmul.f32 1.442695, %v1553_v15  ;;  %v1557_v22 = vmul.f32 1.442695, %v1556_v16  ;;  %v1561_v24 = vmul.f32 1.442695, %v1560_v19  ;;  %v2776_v13 = vrot.slane %v2689_v31, %v1261_v9 }
 0xefc   :  { %v1243_v15 = vmul.f32 %v1241_v11, %v2676_v21  ;;  %v1254_v16 = vmul.f32 %v2692_v32, %v1242_v8  ;;  %v1288_v19 = vld [vmem:[%s3003_s6] ss:$8 sm:$0x3]  ;;  %v2788_v31 = vld [vmem:[%s3003_s6 + $0x1] ss:$8 sm:$0x3] }
 0xefd   :  { %2208 = vpow2.f32 %v1554_v20  ;;  %v1264_v25 = vmul.f32 %v2776_v13, %v1242_v8 }
 0xefe   :  { %2210 = vpow2.f32 %v1557_v22 }
 0xeff   :  { %2212 = vpow2.f32 %v1561_v24 }
 0xf0a   :  { %v2209_v26 = vpop.eup %2208 }
 0xf0b   :  { %v2211_v28 = vpop.eup %2210 }
 0xf0c   :  { %v1559_v27 = vadd.f32 %v2211_v28, %v2209_v26  ;;  %v2213_v34 = vpop.eup %2212 }
 0xf0e   :  { %v1563_v36 = vadd.f32 %v2213_v34, %v1559_v27 }
 0xf10   :  { %2214 = vlog2.f32 %v1563_v36 }
 0xf1d   :  { %v2215_v37 = vpop.eup %2214 }
 0xf1e   :  { %v1565_v41 = vmul.f32 0.6931472, %v2215_v37 }
 0xf20   :  { %v1566_v42 = vadd.f32 %v1565_v41, %v1552_v14  ;;  %v1263_v14 = vmul.f32 %v2776_v13, %v1241_v11 }
 0xf22   :  { %v1567_v45 = vadd.f32 %v1566_v42, %v1504_v43 }
 0xf24   :  { %v1569_v46 = vsel %vm1507_vm13, %v1567_v45, %v1502_v3 }
 0xf25   :  { %1614 = vperm.xlu0 %2105, %v1569_v46   ;;  %1604 = vperm.xlu1 %2106, %v1569_v46  }
 0xf29   :  { %2107 = vset.pattern.permute.xlu1 %v2306_v17  ;;  %2109 = vset.pattern.permute.xlu0 %v2306_v17 }
 0xf2a   :  { %1609 = vperm.xlu1 %2107, %v1569_v46  }
 0xf2e   :  { %2108 = vset.pattern.permute.xlu1 %v2307_v18 }
 0xfa0   :  { %v1605_v47 = vpop.permute.xlu1 %1604  ;;  %v1615_v48 = vpop.permute.xlu0 %1614 }
 0xfa1   :  { %v1607_v50 = vadd.f32 %v1605_v47, %v2700_v39  ;;  %v1617_v51 = vadd.f32 %v1615_v48, %v2707_v44 }
 0xfa5   :  { %v1610_v49 = vpop.permute.xlu1 %1609 }
 0xfa6   :  { %v1612_v5 = vadd.f32 %v1610_v49, %v2703_v40 }
 0xfa8   :  { %v1618_v6 = vmax.f32 %v1607_v50, %v1612_v5 }
 0xfaa   :  { %v1619_v7 = vmax.f32 %v1618_v6, %v1617_v51 }
 0xfac   :  { %v1620_v52 = vsub.f32 %v1607_v50, %v1619_v7  ;;  %v1623_v53 = vsub.f32 %v1612_v5, %v1619_v7  ;;  %v1627_v54 = vsub.f32 %v1617_v51, %v1619_v7  ;;  %v100_v50 = vstv %s1840_s29 }
 0xfad   :  { %v125_v5 = vstv %s124_s8  ;;  %vm101_vm15 = vcmp.eq.s32.totalorder %v2679_v23, %v100_v50 }
 0xfae   :  { %v1621_v55 = vmul.f32 1.442695, %v1620_v52  ;;  %v1624_v56 = vmul.f32 1.442695, %v1623_v53  ;;  %v1628_v33 = vmul.f32 1.442695, %v1627_v54  ;;  %vm126_vm0 = vcmp.eq.s32.totalorder %v2679_v23, %v125_v5 }
 0xfaf   :  { %v78_v54 = vadd.s32 8, %v2679_v23  ;;  %vm128_vm3 = vmor %vm101_vm15, %vm126_vm0  ;;  %vm1708_vm15 = vcmp.gt.s32.totalorder %v2718_v60, 7 }
 0xfb0   :  { %2216 = vpow2.f32 %v1621_v55  ;;  %v1638_v55 = vld [vmem:[#allocation6 + $0x6] ss:$8 sm:$0x3] }
 0xfb1   :  { %2218 = vpow2.f32 %v1624_v56  ;;  %v1844_v56 = vsel %vm95_vm8, 1.0, %v2303_v1  ;;  %vm115_vm4 = vcmp.lt.s32.totalorder %v78_v54, %v2502_v30  ;;  %vm121_vm5 = vcmp.eq.s32.totalorder %v78_v54, 8 }
 0xfb2   :  { %2220 = vpow2.f32 %v1628_v33  ;;  %vm102_vm6 = vcmp.eq.s32.totalorder %v78_v54, %v100_v50  ;;  %vm127_vm7 = vcmp.eq.s32.totalorder %v78_v54, %v125_v5  ;;  %v2864_v50 = vld [vmem:[%s3003_s6 + $0x5] ss:$8 sm:$0x3]  ;;  %v2873_v5 = vld [vmem:[%s3003_s6 + $0x6] ss:$8 sm:$0x3] }
 0xfb3   :  { %vm129_vm8 = vmor %vm102_vm6, %vm127_vm7 }
 0xfb4   :  { %v1847_v9 = vsel %vm129_vm8, 1.0, %v2303_v1 }
 0xfbd   :  { %v2217_v57 = vpop.eup %2216 }
 0xfbe   :  { %v2219_v58 = vpop.eup %2218 }
 0xfbf   :  { %v1626_v59 = vadd.f32 %v2219_v58, %v2217_v57  ;;  %v2221_v38 = vpop.eup %2220  ;;  %v1842_v58 = vsel %vm89_vm2, 1.0, %v2303_v1 }
 0xfc1   :  { %v1630_v61 = vadd.f32 %v2221_v38, %v1626_v59  ;;  %v1846_v59 = vsel %vm128_vm3, 1.0, %v2303_v1 }
 0xfc3   :  { %2222 = vlog2.f32 %v1630_v61 }
 0xfd0   :  { %v2223_v62 = vpop.eup %2222 }
 0xfd1   :  { %v1632_v63 = vmul.f32 0.6931472, %v2223_v62 }
 0xfd3   :  { %v1633_v0 = vadd.f32 %v1632_v63, %v1619_v7  ;;  %v1843_v63 = vsel %vm115_vm4, 1.0, %v2303_v1 }
 0xfd5   :  { %v1634_v3 = vadd.f32 %v1633_v0, %v1571_v2  ;;  %v1845_v0 = vsel %vm121_vm5, 1.0, %v2303_v1 }
 0xfd7   :  { %v2758_v4 = vsel %vm1574_vm14, %v1634_v3, %v1569_v46 }
 0xfd8   :  { %1676 = vperm.xlu0 %2109, %v2758_v4   ;;  %1671 = vperm.xlu1 %2108, %v2758_v4  }
 0xfdc   :  { %2110 = vset.pattern.permute.xlu1 %v2308_v35  ;;  %2111 = vset.pattern.permute.xlu0 %v2307_v18 }
 0xfdd   :  { %1681 = vperm.xlu1 %2110, %v2758_v4  }
 0xfe1   :  { %2112 = vset.pattern.permute.xlu1 %v2306_v17 }
 0xff7   :  { %1247 = vadd.xlane.f32.xlu0 %v1244_v10 }
 0xffb   :  { %1255 = vadd.xlane.f32.xlu0 %v1253_v12 }
 0xfff   :  { %1265 = vadd.xlane.f32.xlu0 %v1263_v14 }
0x1001   :  { %1245 = vadd.xlane.f32.xlu1 %v1243_v15 }
0x1005   :  { %1257 = vadd.xlane.f32.xlu1 %v1254_v16 }
0x1009   :  { %1267 = vadd.xlane.f32.xlu1 %v1264_v25 }
0x1015   :  { %1296 = vperm.xlu0 %2111, %v1288_v19  }
0x1019   :  { %2117 = vset.pattern.permute.xlu0 %v2306_v17 }
0x101a   :  { %1382 = vperm.xlu0 %2117, %v2788_v31   ;;  %1306 = vperm.xlu1 %2112, %v1288_v19  }
0x101e   :  { %2118 = vset.pattern.permute.xlu0 %v2308_v35  ;;  %2113 = vset.pattern.permute.xlu1 %v2308_v35 }
0x101f   :  { %1388 = vperm.xlu0 %2118, %v2788_v31   ;;  %1316 = vperm.xlu1 %2113, %v1288_v19  }
0x1023   :  { %2119 = vset.pattern.permute.xlu0 %v2307_v18  ;;  %2114 = vset.pattern.permute.xlu1 %v2307_v18 }
0x1024   :  { %1376 = vperm.xlu0 %2119, %v2788_v31  }
0x1053   :  { %v1677_v21 = vpop.permute.xlu0 %1676  ;;  %v1672_v32 = vpop.permute.xlu1 %1671 }
0x1054   :  { %v1679_v20 = vadd.f32 %v1677_v21, %v2703_v40  ;;  %v1674_v22 = vadd.f32 %v1672_v32, %v2700_v39 }
0x1056   :  { %v1685_v26 = vmax.f32 %v1674_v22, %v1679_v20 }
0x1058   :  { %v1682_v24 = vpop.permute.xlu1 %1681 }
0x1059   :  { %v1684_v28 = vadd.f32 %v1682_v24, %v2707_v44 }
0x105b   :  { %v1686_v27 = vmax.f32 %v1685_v26, %v1684_v28 }
0x105d   :  { %v1687_v34 = vsub.f32 %v1674_v22, %v1686_v27  ;;  %v1690_v36 = vsub.f32 %v1679_v20, %v1686_v27  ;;  %v1694_v37 = vsub.f32 %v1684_v28, %v1686_v27  ;;  %v1919_v28 = vld [vmem:[%s3003_s6 + $0x2] ss:$8 sm:$0x3] }
0x105f   :  { %v1688_v41 = vmul.f32 1.442695, %v1687_v34  ;;  %v1691_v42 = vmul.f32 1.442695, %v1690_v36  ;;  %v1695_v43 = vmul.f32 1.442695, %v1694_v37 }
0x1061   :  { %2224 = vpow2.f32 %v1688_v41 }
0x1062   :  { %2226 = vpow2.f32 %v1691_v42 }
0x1063   :  { %2228 = vpow2.f32 %v1695_v43 }
0x106e   :  { %v2225_v45 = vpop.eup %2224 }
0x106f   :  { %v2227_v46 = vpop.eup %2226 }
0x1070   :  { %v1693_v47 = vadd.f32 %v2227_v46, %v2225_v45  ;;  %v2229_v48 = vpop.eup %2228 }
0x1072   :  { %v1697_v49 = vadd.f32 %v2229_v48, %v1693_v47 }
0x1074   :  { %2230 = vlog2.f32 %v1697_v49  ;;  %v2848_v49 = vld [vmem:[%s3003_s6 + $0x3] ss:$8 sm:$0x3] }
0x1080   :  { %v1248_v51 = vpop.xlane.xlu0 %1247 }
0x1081   :  { %v2231_v6 = vpop.eup %2230  ;;  %v1270_v3 = vmul.f32 %v1843_v63, %v1248_v51 }
0x1082   :  { %v1699_v7 = vmul.f32 0.6931472, %v2231_v6 }
0x1084   :  { %v1256_v52 = vpop.xlane.xlu0 %1255  ;;  %v1700_v53 = vadd.f32 %v1699_v7, %v1686_v27 }
0x1085   :  { %v1271_v61 = vmul.f32 %v1844_v56, %v1256_v52 }
0x1086   :  { %v1701_v33 = vadd.f32 %v1700_v53, %v1638_v55 }
0x1088   :  { %v2815_v57 = vsel %vm1641_vm1, %v1701_v33, %v2758_v4  ;;  %v1266_v38 = vpop.xlane.xlu0 %1265 }
0x1089   :  { %1738 = vperm.xlu1 %2114, %v2815_v57   ;;  %v1275_v62 = vmul.f32 %v1846_v59, %v1266_v38 }
0x108a   :  { %v1246_v29 = vpop.xlane.xlu1 %1245 }
0x108b   :  { %v1269_v23 = vmul.f32 %v1842_v58, %v1246_v29 }
0x108d   :  { %v1273_v2 = vadd.f32 %v1271_v61, %v1269_v23  ;;  %2115 = vset.pattern.permute.xlu1 %v2306_v17 }
0x108e   :  { %1743 = vperm.xlu1 %2115, %v2815_v57   ;;  %v1258_v30 = vpop.xlane.xlu1 %1257 }
0x108f   :  { %v1277_v4 = vadd.f32 %v1275_v62, %v1273_v2  ;;  %v1272_v8 = vmul.f32 %v1845_v0, %v1258_v30 }
0x1090   :  { %v1297_v10 = vpop.permute.xlu0 %1296 }
0x1091   :  { %v1274_v11 = vadd.f32 %v1272_v8, %v1270_v3  ;;  %v1303_v34 = vmul.f32 %v2700_v39, %v1297_v10  ;;  %v1705_v8 = vld [vmem:[#allocation6 + $0x7] ss:$8 sm:$0x3] }
0x1092   :  { %2116 = vset.pattern.permute.xlu1 %v2308_v35  ;;  %v1268_v12 = vpop.xlane.xlu1 %1267 }
0x1093   :  { %1748 = vperm.xlu1 %2116, %v2815_v57   ;;  %v1276_v14 = vmul.f32 %v1847_v9, %v1268_v12 }
0x1095   :  { %v1278_v15 = vadd.f32 %v1276_v14, %v1274_v11  ;;  %v1383_v16 = vpop.permute.xlu0 %1382 }
0x1096   :  { %v1385_v21 = vmul.f32 %v1383_v16, %v2703_v40  ;;  %v1307_v24 = vpop.permute.xlu1 %1306 }
0x1097   :  { %v2828_v25 = vadd.f32 %v1278_v15, %v1277_v4  ;;  %2120 = vset.pattern.permute.xlu1 %v2307_v18  ;;  %v1313_v36 = vmul.f32 %v2703_v40, %v1307_v24 }
0x1099   :  { %v1314_v43 = vadd.f32 %v1313_v36, %v1303_v34 }
0x109a   :  { %v1389_v19 = vpop.permute.xlu0 %1388  ;;  %v1317_v41 = vpop.permute.xlu1 %1316 }
0x109b   :  { %v1391_v20 = vmul.f32 %v1389_v19, %v2707_v44  ;;  %v1323_v45 = vmul.f32 %v2707_v44, %v1317_v41 }
0x109d   :  { %v1324_v46 = vadd.f32 %v1323_v45, %v1314_v43 }
0x109f   :  { %v1377_v32 = vpop.permute.xlu0 %1376  ;;  %v1325_v47 = vmul.f32 %v2788_v31, %v1324_v46  ;;  %v2855_v31 = vld [vmem:[%s3003_s6 + $0x4] ss:$8 sm:$0x3] }
0x10a0   :  { %v1379_v22 = vmul.f32 %v1377_v32, %v2700_v39 }
0x10a1   :  { %v1327_v48 = vsel %vm1326_vm9, %v1325_v47, 0.0  ;;  %v1922_v47 = vsel %vm1440_vm12, 1.0, %v2303_v1 }
0x10a2   :  { %v1386_v26 = vadd.f32 %v1385_v21, %v1379_v22 }
0x10a4   :  { %v1392_v27 = vadd.f32 %v1391_v20, %v1386_v26 }
0x10a6   :  { %v1393_v37 = vmul.f32 %v1919_v28, %v1392_v27 }
0x10a8   :  { %v1394_v42 = vsel %vm1326_vm9, %v1393_v37, 0.0 }
0x10a9   :  { %1395 = vadd.xlane.f32.xlu0 %v1394_v42 }
0x10b7   :  { %1328 = vadd.xlane.f32.xlu1 %v1327_v48 }
0x10c8   :  { %1443 = vperm.xlu1 %2120, %v1919_v28  }
0x10cc   :  { %2121 = vset.pattern.permute.xlu1 %v2306_v17 }
0x10cd   :  { %1449 = vperm.xlu1 %2121, %v1919_v28  }
0x10d1   :  { %2122 = vset.pattern.permute.xlu1 %v2308_v35 }
0x10d2   :  { %1455 = vperm.xlu1 %2122, %v1919_v28  }
0x10d6   :  { %2123 = vset.pattern.permute.xlu1 %v2306_v17 }
0x10d7   :  { %1516 = vperm.xlu1 %2123, %v2848_v49  }
0x10db   :  { %2125 = vset.pattern.permute.xlu1 %v2307_v18 }
0x10dc   :  { %1577 = vperm.xlu1 %2125, %v2855_v31  }
0x10e0   :  { %2127 = vset.pattern.permute.xlu1 %v2308_v35 }
0x10e1   :  { %1589 = vperm.xlu1 %2127, %v2855_v31  }
0x10e5   :  { %2128 = vset.pattern.permute.xlu1 %v2307_v18 }
0x10e6   :  { %1644 = vperm.xlu1 %2128, %v2864_v50  }
0x10ea   :  { %2129 = vset.pattern.permute.xlu1 %v2308_v35 }
0x10eb   :  { %1656 = vperm.xlu1 %2129, %v2864_v50  }
0x10ef   :  { %2131 = vset.pattern.permute.xlu1 %v2306_v17 }
0x10f0   :  { %1717 = vperm.xlu1 %2131, %v2873_v5  }
0x10f4   :  { %2132 = vset.pattern.permute.xlu1 %v2308_v35 }
0x1104   :  { %v1739_v51 = vpop.permute.xlu1 %1738 }
0x1105   :  { %v1741_v52 = vadd.f32 %v1739_v51, %v2700_v39 }
0x1109   :  { %v1744_v6 = vpop.permute.xlu1 %1743 }
0x110a   :  { %v1746_v7 = vadd.f32 %v1744_v6, %v2703_v40 }
0x110c   :  { %v1752_v54 = vmax.f32 %v1741_v52, %v1746_v7 }
0x110e   :  { %v1749_v53 = vpop.permute.xlu1 %1748 }
0x110f   :  { %v1751_v55 = vadd.f32 %v1749_v53, %v2707_v44 }
0x1111   :  { %v1753_v56 = vmax.f32 %v1752_v54, %v1751_v55 }
0x1113   :  { %v1754_v33 = vsub.f32 %v1741_v52, %v1753_v56  ;;  %v1757_v58 = vsub.f32 %v1746_v7, %v1753_v56  ;;  %v1761_v59 = vsub.f32 %v1751_v55, %v1753_v56 }
0x1115   :  { %v1755_v38 = vmul.f32 1.442695, %v1754_v33  ;;  %v1758_v61 = vmul.f32 1.442695, %v1757_v58  ;;  %v1762_v29 = vmul.f32 1.442695, %v1761_v59 }
0x1117   :  { %2232 = vpow2.f32 %v1755_v38 }
0x1118   :  { %2234 = vpow2.f32 %v1758_v61 }
0x1119   :  { %2236 = vpow2.f32 %v1762_v29 }
0x1124   :  { %v2233_v23 = vpop.eup %2232 }
0x1125   :  { %v2235_v62 = vpop.eup %2234 }
0x1126   :  { %v1760_v63 = vadd.f32 %v2235_v62, %v2233_v23  ;;  %v2237_v0 = vpop.eup %2236 }
0x1128   :  { %v1764_v2 = vadd.f32 %v2237_v0, %v1760_v63 }
0x112a   :  { %2238 = vlog2.f32 %v1764_v2 }
0x1132   :  { %v1396_v43 = vpop.xlane.xlu0 %1395 }
0x1137   :  { %v2239_v30 = vpop.eup %2238 }
0x1138   :  { %v1766_v3 = vmul.f32 0.6931472, %v2239_v30 }
0x113a   :  { %v1767_v4 = vadd.f32 %v1766_v3, %v1753_v56 }
0x113c   :  { %v1768_v9 = vadd.f32 %v1767_v4, %v1705_v8 }
0x113e   :  { %v1770_v10 = vsel %vm1708_vm15, %v1768_v9, %v2815_v57 }
0x113f   :  { %v1771_v11 = vadd.f32 %v1770_v10, %v2776_v13 }
0x1140   :  { %v1329_v12 = vpop.xlane.xlu1 %1328 }
0x1141   :  { %v1772_v14 = vsel %vm1326_vm9, %v1771_v11, -inf }
0x1142   :  { %1773 = vmax.xlane.f32.xlu1 %v1772_v14 }
0x1144   :  { %v1444_v15 = vpop.permute.xlu1 %1443 }
0x1145   :  { %v1446_v21 = vmul.f32 %v1444_v15, %v2700_v39 }
0x1148   :  { %v1450_v16 = vpop.permute.xlu1 %1449 }
0x1149   :  { %v1452_v19 = vmul.f32 %v1450_v16, %v2703_v40 }
0x114b   :  { %v1453_v20 = vadd.f32 %v1452_v19, %v1446_v21 }
0x114d   :  { %v1456_v32 = vpop.permute.xlu1 %1455 }
0x114e   :  { %v1458_v22 = vmul.f32 %v1456_v32, %v2707_v44 }
0x1150   :  { %v1459_v24 = vadd.f32 %v1458_v22, %v1453_v20 }
0x1152   :  { %v1460_v26 = vmul.f32 %v2848_v49, %v1459_v24  ;;  %v1517_v57 = vpop.permute.xlu1 %1516 }
0x1153   :  { %1723 = vperm.xlu1 %2132, %v2873_v5   ;;  %v1519_v55 = vmul.f32 %v1517_v57, %v2703_v40 }
0x1154   :  { %v1461_v13 = vsel %vm1326_vm9, %v1460_v26, 0.0 }
0x1155   :  { %1462 = vadd.xlane.f32.xlu0 %v1461_v13 }
0x1157   :  { %v1578_v28 = vpop.permute.xlu1 %1577 }
0x1158   :  { %v1580_v29 = vmul.f32 %v1578_v28, %v2700_v39 }
0x115c   :  { %v1590_v27 = vpop.permute.xlu1 %1589 }
0x115d   :  { %v1592_v63 = vmul.f32 %v1590_v27, %v2707_v44 }
0x1161   :  { %v1645_v34 = vpop.permute.xlu1 %1644 }
0x1162   :  { %v1647_v30 = vmul.f32 %v1645_v34, %v2700_v39 }
0x1166   :  { %v1657_v36 = vpop.permute.xlu1 %1656 }
0x1167   :  { %v1659_v8 = vmul.f32 %v1657_v36, %v2707_v44 }
0x116b   :  { %1510 = vperm.xlu0 %2119, %v2848_v49   ;;  %v1718_v37 = vpop.permute.xlu1 %1717 }
0x116c   :  { %v1720_v15 = vmul.f32 %v1718_v37, %v2703_v40 }
0x116f   :  { %2124 = vset.pattern.permute.xlu0 %v2308_v35 }
0x1170   :  { %1522 = vperm.xlu0 %2124, %v2848_v49  }
0x1174   :  { %2126 = vset.pattern.permute.xlu0 %v2306_v17 }
0x1175   :  { %1583 = vperm.xlu0 %2126, %v2855_v31  }
0x1179   :  { %1650 = vperm.xlu0 %2126, %v2864_v50  }
0x117d   :  { %2130 = vset.pattern.permute.xlu0 %v2307_v18  ;;  %v1920_v18 = vsel %vm1373_vm11, 1.0, %v2303_v1 }
0x117e   :  { %1711 = vperm.xlu0 %2130, %v2873_v5   ;;  %v1399_v45 = vmul.f32 %v1920_v18, %v1396_v43 }
0x1182   :  { %2133 = vset.pattern.permute.xlu0 %v2308_v35  ;;  %v1918_v35 = vsel %vm1293_vm10, 1.0, %v2303_v1 }
0x1183   :  { %v1332_v46 = vmul.f32 %v1918_v35, %v1329_v12 }
0x1185   :  { %v1400_v6 = vadd.f32 %v1399_v45, %v1332_v46 }
0x11cb   :  { %v2902_v41 = vpop.xlane.xlu1 %1773 }
0x11cc   :  { %v1775_v17 = vsub.f32 %v1771_v11, %v2902_v41 }
0x11ce   :  { %v1776_v42 = vmul.f32 1.442695, %v1775_v17 }
0x11cf   :  { %v1724_v10 = vpop.permute.xlu1 %1723 }
0x11d0   :  { %2240 = vpow2.f32 %v1776_v42  ;;  %v1726_v19 = vmul.f32 %v1724_v10, %v2707_v44 }
0x11dd   :  { %v2241_v48 = vpop.eup %2240 }
0x11de   :  { %v1463_v49 = vpop.xlane.xlu0 %1462  ;;  %v1778_v51 = vsel %vm1326_vm9, %v2241_v48, 0.0 }
0x11df   :  { %v1466_v7 = vmul.f32 %v1922_v47, %v1463_v49  ;;  %1779 = vadd.xlane.f32.xlu1 %v1778_v51 }
0x11e1   :  { %v2915_v52 = vadd.f32 %v1466_v7, %v1400_v6 }
0x11e6   :  { %v1511_v53 = vpop.permute.xlu0 %1510 }
0x11e7   :  { %v1513_v54 = vmul.f32 %v1511_v53, %v2700_v39 }
0x11e9   :  { %v1520_v33 = vadd.f32 %v1519_v55, %v1513_v54 }
0x11eb   :  { %v1523_v56 = vpop.permute.xlu0 %1522 }
0x11ec   :  { %v1525_v58 = vmul.f32 %v1523_v56, %v2707_v44 }
0x11ee   :  { %v1526_v59 = vadd.f32 %v1525_v58, %v1520_v33 }
0x11f0   :  { %v1584_v38 = vpop.permute.xlu0 %1583  ;;  %v1527_v61 = vmul.f32 %v2855_v31, %v1526_v59 }
0x11f1   :  { %v1586_v23 = vmul.f32 %v1584_v38, %v2703_v40 }
0x11f2   :  { %v1528_v62 = vsel %vm1326_vm9, %v1527_v61, 0.0 }
0x11f3   :  { %v1587_v0 = vadd.f32 %v1586_v23, %v1580_v29  ;;  %1529 = vadd.xlane.f32.xlu0 %v1528_v62 }
0x11f4   :  { %v1651_v2 = vpop.permute.xlu0 %1650 }
0x11f5   :  { %v1653_v3 = vmul.f32 %v1651_v2, %v2703_v40  ;;  %v1593_v4 = vadd.f32 %v1592_v63, %v1587_v0 }
0x11f7   :  { %v1654_v9 = vadd.f32 %v1653_v3, %v1647_v30  ;;  %v1594_v31 = vmul.f32 %v2864_v50, %v1593_v4  ;;  %v1929_v50 = vld [vmem:[%s3003_s6 + $0x7] ss:$8 sm:$0x3] }
0x11f9   :  { %v1712_v11 = vpop.permute.xlu0 %1711  ;;  %v1595_v12 = vsel %vm1326_vm9, %v1594_v31, 0.0  ;;  %v1660_v14 = vadd.f32 %v1659_v8, %v1654_v9 }
0x11fa   :  { %v1714_v16 = vmul.f32 %v1712_v11, %v2700_v39  ;;  %1596 = vadd.xlane.f32.xlu0 %v1595_v12 }
0x11fb   :  { %v1661_v21 = vmul.f32 %v2873_v5, %v1660_v14 }
0x11fc   :  { %v1721_v32 = vadd.f32 %v1720_v15, %v1714_v16 }
0x11fd   :  { %v1662_v20 = vsel %vm1326_vm9, %v1661_v21, 0.0 }
0x11fe   :  { %v1727_v22 = vadd.f32 %v1726_v19, %v1721_v32  ;;  %1663 = vadd.xlane.f32.xlu0 %v1662_v20 }
0x1200   :  { %v1728_v24 = vmul.f32 %v1929_v50, %v1727_v22 }
0x1202   :  { %v1729_v26 = vsel %vm1326_vm9, %v1728_v24, 0.0 }
0x1203   :  { %1730 = vadd.xlane.f32.xlu1 %v1729_v26 }
0x1204   :  { %2267 = shalt.err (!%p2264_p9)
}
0x1205   :  { %s2310_s12 = smov 128   ;;  %s2311_s16 = smov 8   ;;  %v1924_v13 = vsel %vm1507_vm13, 1.0, %v2303_v1  ;;  %v1926_v27 = vsel %vm1574_vm14, 1.0, %v2303_v1  ;;  %vm1791_vm10 = vcmask 1041408   ;;  %v1928_v36 = vsel %vm1641_vm1, 1.0, %v2303_v1 }
0x1206   :  { %1831 = dma.vmem_to_hbm [thread:$0]  %s1826_s25, 256, %s2984_s21, [#allocation7], %s2310_s12, %s2310_s12, %s2311_s16   ;;  %v1785_v18 = vrot.slane %v2828_v25, 4  ;;  %v1930_v35 = vsel %vm1708_vm15, 1.0, %v2303_v1  ;;  %vm1808_vm11 = vcmask 0  }
0x1207   :  { %s2312_s21 = smov [#allocation4]  }
0x1208   :  { %v1786_v47 = vadd.f32 %v1785_v18, %v2828_v25  ;;  %s1816_s19 = sshll.u32 %s2312_s21, 4  ;;  %s1817_s19 = int_to_ptr.vmem [resolvable:$true] %s1816_s19 }
0x1209   :  { %s2276_s6 = scalar_lea.vmem %s1817_s19, 16  ;;  %s2280_s27 = scalar_lea.vmem %s1817_s19, 32 }
0x120a   :  { %v1787_v53 = vrot.slane %v1786_v47, 2  ;;  %p2277_p10 = scmp.ne.s32.totalorder %s1817_s19, %s2276_s6  ;;  %p2281_p11 = scmp.lt.s32.totalorder %s1817_s19, %s1817_s19 }
0x120b   :  { %p2282_p12 = scmp.lt.s32.totalorder %s2280_s27, %s2276_s6 }
0x120c   :  { %v1788_v33 = vadd.f32 %v1787_v53, %v1786_v47 }
0x120d   :  { %p2283_p13 = por %p2282_p12, %p2281_p11 }
0x120e   :  { %v1789_v1 = vrot.slane %v1788_v33, 1 }
0x120f   :  { %p2284_p0 = pnand %p2283_p13, %p2277_p10 }
0x1210   :  { %v1790_v29 = vadd.f32 %v1789_v1, %v1788_v33 }
0x1268   :  { %v1780_v39 = vpop.xlane.xlu1 %1779 }
0x1269   :  { %2242 = vlog2.f32 %v1780_v39 }
0x1276   :  { %v2243_v40 = vpop.eup %2242 }
0x1277   :  { %v1782_v44 = vmul.f32 0.6931472, %v2243_v40 }
0x1279   :  { %v1783_v57 = vadd.f32 %v1782_v44, %v2902_v41 }
0x127b   :  { %v1800_v42 = vsel %vm1791_vm10, %v1783_v57, 0.0 }
0x127c   :  { %v1530_v5 = vpop.xlane.xlu0 %1529  ;;  %v1801_v45 = vrot.slane %v1800_v42, 4 }
0x127d   :  { %v1533_v34 = vmul.f32 %v1924_v13, %v1530_v5 }
0x127e   :  { %v1802_v6 = vadd.f32 %v1801_v45, %v1800_v42 }
0x127f   :  { %v1534_v43 = vadd.f32 %v1533_v34, %v2915_v52 }
0x1280   :  { %v1803_v56 = vrot.slane %v1802_v6, 2 }
0x1282   :  { %v1804_v59 = vadd.f32 %v1803_v56, %v1802_v6 }
0x1283   :  { %v1597_v28 = vpop.xlane.xlu0 %1596 }
0x1284   :  { %v1600_v37 = vmul.f32 %v1926_v27, %v1597_v28  ;;  %v1805_v61 = vrot.slane %v1804_v59, 1 }
0x1286   :  { %v1601_v46 = vadd.f32 %v1600_v37, %v1534_v43  ;;  %v1806_v62 = vadd.f32 %v1805_v61, %v1804_v59 }
0x1287   :  { %v1664_v17 = vpop.xlane.xlu0 %1663 }
0x1288   :  { %v1667_v41 = vmul.f32 %v1928_v36, %v1664_v17 }
0x128a   :  { %v1668_v49 = vadd.f32 %v1667_v41, %v1601_v46 }
0x128c   :  { %v1731_v48 = vpop.xlane.xlu1 %1730 }
0x128d   :  { %v1734_v51 = vmul.f32 %v1930_v35, %v1731_v48 }
0x128f   :  { %v1735_v7 = vadd.f32 %v1734_v51, %v1668_v49 }
0x1291   :  { %v1792_v54 = vsel %vm1791_vm10, %v1735_v7, 0.0 }
0x1292   :  { %v1793_v55 = vrot.slane %v1792_v54, 4 }
0x1294   :  { %v1794_v52 = vadd.f32 %v1793_v55, %v1792_v54 }
0x1296   :  { %v1795_v58 = vrot.slane %v1794_v52, 2 }
0x1298   :  { %v1796_v60 = vadd.f32 %v1795_v58, %v1794_v52 }
0x129a   :  { %v1797_v38 = vrot.slane %v1796_v60, 1 }
0x129c   :  { %v1798_v25 = vadd.f32 %v1797_v38, %v1796_v60 }
0x129e   :  { %v1799_v23 = vadd.f32 %v1798_v25, %v1790_v29 }
0x12a0   :  { %v1807_v63 = vsub.f32 %v1806_v62, %v1799_v23 }
0x12a2   :  { %1809 = vst.msk [vmem:[#allocation4] sm:$0x1] %vm1808_vm11, %v1807_v63 }
0x12a3   :  { %2287 = shalt.err (!%p2284_p0)
}
0x12a4   :  { %1819 = dma.vmem_to_hbm [thread:$0]  %s1817_s19, 16, %s2983_s20, [#allocation5]  }
0x12a5   :  { %2298 = dma.done.wait [#allocation5], 16  }
0x12a6   :  { %2299 = vsyncadd [#allocation5], 4294967280 }
0x12a7   :  { %2300 = dma.done.wait [#allocation7], 256  }
0x12a8   :  { %2301 = vsyncadd [#allocation7], 4294967040 }
0x12a9   :  { %1838 = vsyncpa [#allocation5], 1 }
0x12aa   :  { %1839 = vsyncpa [#allocation7], 1 }

</bundles_post_ra>
